<compile_context>
chip_gen: v7x
topology: tpu7x:2x2x1
jax: 0.10.0
libtpu: 0.0.40
codegen_flags: <defaults>
</compile_context>

<pallas_src>
import functools
import math

import jax
import jax.numpy as jnp
import numpy as np
from jax.experimental import pallas as pl
from jax.experimental.pallas import tpu as pltpu

_INV_SQRT2 = 1.0 / math.sqrt(2.0)


# --------------------------------------------------------------------------
# shared in-kernel helpers
# --------------------------------------------------------------------------
def _layernorm(v, w, b):
    # two-pass statistics: mean, then variance of centred values
    mu = jnp.mean(v, axis=-1, keepdims=True)
    d = v - mu
    var = jnp.mean(d * d, axis=-1, keepdims=True)
    return d * jax.lax.rsqrt(var + 1e-5) * w + b


def _gelu(v):
    return 0.5 * v * (1.0 + jax.lax.erf(v * _INV_SQRT2))


def _affinities(x_f32, xc, inv, bias):
    # -0.5*||x-c||^2/s^2 = (x.c - 0.5*|x|^2)*inv_s2 - 0.5*|c|^2*inv_s2, <= 0
    x2 = jnp.sum(x_f32 * x_f32, axis=-1, keepdims=True)
    logits = jnp.minimum((xc - 0.5 * x2) * inv + bias, 0.0)
    aff = jnp.exp(logits)
    denom = jnp.sum(aff, axis=-1, keepdims=True) + 1e-8
    return aff * pl.reciprocal(denom, approx=True)


def _ffn(h, w1_ref, b1, w2_ref, b2, f_chunk):
    # Linear -> exact GELU -> Linear; streamed over F columns when F is large
    # so the (tile, F) f32 intermediate never exceeds (tile, f_chunk).
    hb = h.astype(jnp.bfloat16)
    F = w1_ref.shape[1]
    if F <= f_chunk:
        ff = jnp.dot(hb, w1_ref[...], preferred_element_type=jnp.float32) + b1
        ff = _gelu(ff)
        return jnp.dot(ff.astype(jnp.bfloat16), w2_ref[...],
                       preferred_element_type=jnp.float32) + b2
    acc = jnp.zeros((h.shape[0], w2_ref.shape[1]), jnp.float32) + b2
    for f0 in range(0, F, f_chunk):
        fc = min(f_chunk, F - f0)
        g = jnp.dot(hb, w1_ref[:, f0:f0 + fc],
                    preferred_element_type=jnp.float32) + b1[:, f0:f0 + fc]
        g = _gelu(g)
        acc = acc + jnp.dot(g.astype(jnp.bfloat16), w2_ref[f0:f0 + fc, :],
                            preferred_element_type=jnp.float32)
    return acc


# --------------------------------------------------------------------------
# Fused kernel: whole (padded) sequence for one batch element per grid step
# --------------------------------------------------------------------------
def _fused_kernel(Kp, f_chunk,
                  x_ref, cw_ref, inv_ref, bias_ref, wo_ref,
                  ln1w_ref, ln1b_ref, w1_ref, b1_ref, w2_ref, b2_ref,
                  ln2w_ref, ln2b_ref, o_ref):
    x = x_ref[0]                                                  # (S, D) f32
    xb = x.astype(jnp.bfloat16)

    # one MXU stream: [xc | tv] = x @ [centers^T | Wv]          (S, Kp + D)
    both = jnp.dot(xb, cw_ref[...], preferred_element_type=jnp.float32)
    xc, tv = both[:, :Kp], both[:, Kp:]

    aff = _affinities(x, xc, inv_ref[...], bias_ref[...])         # (S, Kp)
    affb = aff.astype(jnp.bfloat16)

    # splat_states = aff^T @ tv  (contract dim 0 of both; no transposes)
    ss = jax.lax.dot_general(affb, tv.astype(jnp.bfloat16),
                             dimension_numbers=(((0,), (0,)), ((), ())),
                             preferred_element_type=jnp.float32)  # (Kp, D)

    tok = jnp.dot(affb, ss.astype(jnp.bfloat16),
                  preferred_element_type=jnp.float32)             # (S, D)
    attn = jnp.dot(tok.astype(jnp.bfloat16), wo_ref[...],
                   preferred_element_type=jnp.float32)            # (S, D)

    h = _layernorm(x + attn, ln1w_ref[...], ln1b_ref[...])
    ff = _ffn(h, w1_ref, b1_ref[...], w2_ref, b2_ref[...], f_chunk)
    y = _layernorm(h + ff, ln2w_ref[...], ln2b_ref[...])
    o_ref[0] = y.astype(o_ref.dtype)


# --------------------------------------------------------------------------
# Tiled fallback kernel 1: splat_states[b] += aff[b, tile]^T @ tv[b, tile]
# --------------------------------------------------------------------------
def _splat_states_kernel(Kp, x_ref, cw_ref, inv_ref, bias_ref, ss_ref):
    @pl.when(pl.program_id(1) == 0)
    def _():
        ss_ref[...] = jnp.zeros_like(ss_ref)

    x = x_ref[0]                                                  # (tS, D)
    both = jnp.dot(x.astype(jnp.bfloat16), cw_ref[...],
                   preferred_element_type=jnp.float32)            # (tS, Kp+D)
    xc, tv = both[:, :Kp], both[:, Kp:]
    aff = _affinities(x, xc, inv_ref[...], bias_ref[...])
    ss_ref[0] += jax.lax.dot_general(
        aff.astype(jnp.bfloat16), tv.astype(jnp.bfloat16),
        dimension_numbers=(((0,), (0,)), ((), ())),
        preferred_element_type=jnp.float32)                       # (Kp, D)


# --------------------------------------------------------------------------
# Tiled fallback kernel 2: per seq-tile readout -> proj -> LN1 -> FFN -> LN2
# --------------------------------------------------------------------------
def _splat_out_kernel(f_chunk, x_ref, ss_ref, ct_ref, inv_ref, bias_ref,
                      wo_ref, ln1w_ref, ln1b_ref,
                      w1_ref, b1_ref, w2_ref, b2_ref,
                      ln2w_ref, ln2b_ref, o_ref):
    x = x_ref[0]                                                  # (tS, D)
    xc = jnp.dot(x.astype(jnp.bfloat16), ct_ref[...],
                 preferred_element_type=jnp.float32)              # (tS, Kp)
    aff = _affinities(x, xc, inv_ref[...], bias_ref[...])
    tok = jnp.dot(aff.astype(jnp.bfloat16), ss_ref[0].astype(jnp.bfloat16),
                  preferred_element_type=jnp.float32)             # (tS, D)
    attn = jnp.dot(tok.astype(jnp.bfloat16), wo_ref[...],
                   preferred_element_type=jnp.float32)            # (tS, D)

    h = _layernorm(x + attn, ln1w_ref[...], ln1b_ref[...])
    ff = _ffn(h, w1_ref, b1_ref[...], w2_ref, b2_ref[...], f_chunk)
    y = _layernorm(h + ff, ln2w_ref[...], ln2b_ref[...])
    o_ref[0] = y.astype(o_ref.dtype)


# --------------------------------------------------------------------------
# Wrapper
# --------------------------------------------------------------------------
def _tpu_vmem_capacity_bytes():
    try:
        info = pltpu.get_tpu_info()
        for name in ("vmem_capacity_bytes", "vmem_size_bytes", "vmem_bytes"):
            cap = getattr(info, name, None)
            if cap:
                return int(cap)
    except Exception:
        pass
    return 64 * 1024 * 1024      # conservative (v7x-sized) fallback


def splat_transformer_layer(x, params, *, ts=None, f_chunk=2048,
                            force_tiled=False):
    B, S, D = x.shape
    K = params["centers"].shape[0]
    F = params["w1"].shape[1]

    # ---- generation-aware limits (v7x: 64 MiB VMEM, v5e/v6e: 128 MiB) ----
    cap = _tpu_vmem_capacity_bytes()
    if cap <= 64 * 1024 * 1024:
        vmem_lim = 44 * 1024 * 1024
        ts = 256 if ts is None else ts
    else:
        vmem_lim = 96 * 1024 * 1024
        ts = 512 if ts is None else ts

    # ---- one-time wrapper-side parameter transforms ----
    scales = jnp.clip(jnp.exp(params["log_scales"]), 0.1, 2.0)       # (1, K)
    inv_ssq = 1.0 / (scales * scales)                                # (1, K)
    centers = params["centers"].astype(jnp.float32)                  # (K, D)
    c2 = jnp.sum(centers * centers, axis=-1)[None, :]                # (1, K)
    bias_k = -0.5 * c2 * inv_ssq                                     # (1, K)
    centers_t = centers.T                                            # (D, K)

    # pad splat axis to a multiple of 128 (lane-dense); dummy splats get
    # affinity exactly 0 (inv = 0, bias = -1e30) so results are unchanged.
    Kp = ((K + 127) // 128) * 128
    if Kp != K:
        pad = Kp - K
        centers_t = jnp.pad(centers_t, ((0, 0), (0, pad)))
        inv_ssq = jnp.pad(inv_ssq, ((0, 0), (0, pad)))
        bias_k = jnp.pad(bias_k, ((0, 0), (0, pad)), constant_values=-1e30)

    # bf16 weights; [centers^T | Wv] packed -> one MXU stream of width Kp+D
    wv = params["wv"].astype(jnp.bfloat16)
    wo = params["wo"].astype(jnp.bfloat16)
    w1 = params["w1"].astype(jnp.bfloat16)
    w2 = params["w2"].astype(jnp.bfloat16)
    cw = jnp.concatenate([centers_t.astype(jnp.bfloat16), wv], axis=1)  # (D, Kp+D)

    ln1w, ln1b = params["ln1_w"], params["ln1_b"]
    b1, b2 = params["b1"], params["b2"]
    ln2w, ln2b = params["ln2_w"], params["ln2_b"]
    fc_eff = min(F, f_chunk)

    # ------------------------------------------------------------------
    # fused fast path: grid=(B,), whole padded sequence per step
    # ------------------------------------------------------------------
    Sp8 = ((S + 7) // 8) * 8
    fused_bytes = (
        4 * 4 * Sp8 * D                       # x + out blocks (2 bufs, f32)
        + 2 * 2 * D * (Kp + D)                # packed [ct|Wv] (bf16, 2 bufs)
        + 2 * 2 * D * D                       # Wo
        + 2 * 2 * 2 * D * F                   # W1, W2
        + 4 * Sp8 * (Kp + D)                  # packed matmul result
        + 4 * Sp8 * Kp                        # affinities
        + 4 * 3 * Sp8 * D                     # h / attn / ff temporaries
        + 4 * Kp * D                          # splat states
        + 4 * Sp8 * fc_eff                    # FFN intermediate chunk
    )
    use_fused = (not force_tiled) and fused_bytes <= int(0.55 * vmem_lim)

    if use_fused:
        xp = jnp.pad(x, ((0, 0), (0, Sp8 - S), (0, 0))) if Sp8 != S else x
        const = lambda shape: pl.BlockSpec(shape, lambda b: (0,) * len(shape))
        flops = 2 * B * Sp8 * (D * (Kp + D) + 2 * Kp * D + D * D + 2 * D * F)
        trans = B * Sp8 * (Kp + F)
        byts = 4 * 2 * B * Sp8 * D + 2 * (D * (Kp + D) + D * D + 2 * D * F)
        out = pl.pallas_call(
            functools.partial(_fused_kernel, Kp, f_chunk),
            out_shape=jax.ShapeDtypeStruct((B, Sp8, D), x.dtype),
            grid=(B,),
            in_specs=[
                pl.BlockSpec((1, Sp8, D), lambda b: (b, 0, 0)),   # x
                const((D, Kp + D)),                               # [ct|Wv]
                const((1, Kp)), const((1, Kp)),                   # inv, bias
                const((D, D)),                                    # Wo
                const((1, D)), const((1, D)),                     # LN1 w, b
                const((D, F)), const((1, F)),                     # W1, b1
                const((F, D)), const((1, D)),                     # W2, b2
                const((1, D)), const((1, D)),                     # LN2 w, b
            ],
            out_specs=pl.BlockSpec((1, Sp8, D), lambda b: (b, 0, 0)),
            compiler_params=pltpu.CompilerParams(
                dimension_semantics=("parallel",),
                vmem_limit_bytes=vmem_lim),
            cost_estimate=pl.CostEstimate(flops=int(flops),
                                          transcendentals=int(trans),
                                          bytes_accessed=int(byts)),
        )(xp, cw, inv_ssq, bias_k, wo, ln1w, ln1b, w1, b1, w2, b2, ln2w, ln2b)
        return out[:, :S, :] if Sp8 != S else out

    # ------------------------------------------------------------------
    # tiled fallback (large S): two passes over seq tiles
    # ------------------------------------------------------------------
    ts = min(ts, ((S + 7) // 8) * 8)
    Sp = ((S + ts - 1) // ts) * ts
    xp = jnp.pad(x, ((0, 0), (0, Sp - S), (0, 0))) if Sp != S else x
    n_s = Sp // ts
    ct_bf16 = centers_t.astype(jnp.bfloat16)

    def run_tiled(single_buffer):
        def const(shape, imap=None):
            if imap is None:
                n = len(shape)
                imap = lambda b, s, n=n: (0,) * n
            if single_buffer:
                return pl.BlockSpec(shape, imap, pipeline_mode=pl.Buffered(1))
            return pl.BlockSpec(shape, imap)

        flops1 = 2 * B * Sp * (D * (Kp + D) + Kp * D)
        splat_states = pl.pallas_call(
            functools.partial(_splat_states_kernel, Kp),
            out_shape=jax.ShapeDtypeStruct((B, Kp, D), jnp.float32),
            grid=(B, n_s),
            in_specs=[
                pl.BlockSpec((1, ts, D), lambda b, s: (b, s, 0)),  # x tile
                const((D, Kp + D)),                                # [ct|Wv]
                const((1, Kp)), const((1, Kp)),                    # inv, bias
            ],
            out_specs=pl.BlockSpec((1, Kp, D), lambda b, s: (b, 0, 0)),
            compiler_params=pltpu.CompilerParams(
                dimension_semantics=("parallel", "arbitrary"),
                vmem_limit_bytes=vmem_lim),
            cost_estimate=pl.CostEstimate(
                flops=int(flops1), transcendentals=int(B * Sp * Kp),
                bytes_accessed=int(4 * B * Sp * D + 4 * B * Kp * D
                                   + 2 * D * (Kp + D))),
        )(xp, cw, inv_ssq, bias_k)

        flops2 = 2 * B * Sp * (2 * D * Kp + D * D + 2 * D * F)
        out_p = pl.pallas_call(
            functools.partial(_splat_out_kernel, f_chunk),
            out_shape=jax.ShapeDtypeStruct((B, Sp, D), x.dtype),
            grid=(B, n_s),
            in_specs=[
                pl.BlockSpec((1, ts, D), lambda b, s: (b, s, 0)),  # x tile
                const((1, Kp, D), lambda b, s: (b, 0, 0)),         # splat states
                const((D, Kp)),                                    # centers^T
                const((1, Kp)), const((1, Kp)),                    # inv, bias
                const((D, D)),                                     # Wo
                const((1, D)), const((1, D)),                      # LN1 w, b
                const((D, F)), const((1, F)),                      # W1, b1
                const((F, D)), const((1, D)),                      # W2, b2
                const((1, D)), const((1, D)),                      # LN2 w, b
            ],
            out_specs=pl.BlockSpec((1, ts, D), lambda b, s: (b, s, 0)),
            compiler_params=pltpu.CompilerParams(
                dimension_semantics=("parallel", "parallel"),
                vmem_limit_bytes=vmem_lim),
            cost_estimate=pl.CostEstimate(
                flops=int(flops2), transcendentals=int(B * Sp * (Kp + F)),
                bytes_accessed=int(4 * 2 * B * Sp * D + 4 * B * Kp * D
                                   + 2 * (D * Kp + D * D + 2 * D * F))),
        )(xp, splat_states, ct_bf16, inv_ssq, bias_k,
          wo, ln1w, ln1b, w1, b1, w2, b2, ln2w, ln2b)
        return out_p[:, :S, :] if Sp != S else out_p

    try:
        return run_tiled(True)
    except Exception:
        # pipeline_mode=pl.Buffered not available in this JAX build — degrade
        # to default double-buffered constants (semantics unchanged).
        return run_tiled(False)


# --------------------------------------------------------------------------
# Pure-JAX reference (mirrors the PyTorch forward, eval mode, f32)
# --------------------------------------------------------------------------
def reference_layer(x, params):
    centers = params["centers"]
    scales = jnp.clip(jnp.exp(params["log_scales"][0]), 0.1, 2.0)      # (K,)
    diff = x[:, :, None, :] - centers[None, None, :, :]                # (B,S,K,D)
    dist_sq = jnp.sum(diff * diff, axis=-1)                            # (B,S,K)
    aff = jnp.exp(-0.5 * dist_sq / (scales * scales)[None, None, :])
    aff = aff / (jnp.sum(aff, axis=-1, keepdims=True) + 1e-8)
    tv = x @ params["wv"]
    states = jnp.einsum('bsk,bsd->bkd', aff, tv)
    tok_out = jnp.einsum('bsk,bkd->bsd', aff, states)
    attn = tok_out @ params["wo"]

    def ln(v, w, b):
        mu = jnp.mean(v, axis=-1, keepdims=True)
        var = jnp.mean((v - mu) ** 2, axis=-1, keepdims=True)
        return (v - mu) / jnp.sqrt(var + 1e-5) * w + b

    h = ln(x + attn, params["ln1_w"][0], params["ln1_b"][0])
    ff = h @ params["w1"] + params["b1"][0]
    ff = 0.5 * ff * (1.0 + jax.lax.erf(ff / jnp.sqrt(2.0)))
    ff = ff @ params["w2"] + params["b2"][0]
    return ln(h + ff, params["ln2_w"][0], params["ln2_b"][0])


def init_params(key, model_dim, num_splats, ff_dim):
    ks = jax.random.split(key, 8)
    D, K, F = model_dim, num_splats, ff_dim

    def xavier(k, fan_in, fan_out):
        bound = math.sqrt(6.0 / (fan_in + fan_out))
        return jax.random.uniform(k, (fan_in, fan_out), jnp.float32, -bound, bound)

    centers = 0.02 * jax.random.normal(ks[0], (K, D), jnp.float32)
    scales = 0.4 + 0.6 * jax.random.uniform(ks[1], (1, K), jnp.float32)
    return {
        "centers": centers,
        "log_scales": jnp.log(scales),
        "wv": xavier(ks[2], D, D),                 # token_value_proj.weight^T
        "wo": xavier(ks[3], D, D),                 # output_proj.weight^T
        "ln1_w": jnp.ones((1, D), jnp.float32),
        "ln1_b": jnp.zeros((1, D), jnp.float32),
        "w1": xavier(ks[4], D, F),
        "b1": 0.01 * jax.random.normal(ks[5], (1, F), jnp.float32),
        "w2": xavier(ks[6], F, D),
        "b2": 0.01 * jax.random.normal(ks[7], (1, D), jnp.float32),
        "ln2_w": jnp.ones((1, D), jnp.float32),
        "ln2_b": jnp.zeros((1, D), jnp.float32),
    }


if __name__ == "__main__":
    # TODO(synk): the biological adaptation step (splat mitosis/death, host-side
    # Python object mutation) is training-only control logic and is not part of
    # the eval-mode forward implemented here.
    B, S, D = 2, 256, 128     # batch, seq, model_dim (D multiple of 128)
    K = 16                    # num_splats (module default; padded to 128)
    F = D * 4                 # ff_dim

    key = jax.random.PRNGKey(0)
    kx, kp = jax.random.split(key)
    x = 0.1 * jax.random.normal(kx, (B, S, D), jnp.float32)
    params = init_params(kp, D, K, F)
    ref = reference_layer(x, params)

    # fused fast path (single pallas_call, grid=(B,))
    out_fused = jax.block_until_ready(splat_transformer_layer(x, params))
    np.testing.assert_allclose(np.asarray(out_fused), np.asarray(ref),
                               rtol=3e-2, atol=3e-2)

    # tiled fallback path (exercised explicitly: ts=128 -> 2 seq tiles)
    out_tiled = jax.block_until_ready(
        splat_transformer_layer(x, params, ts=128, force_tiled=True))
    np.testing.assert_allclose(np.asarray(out_tiled), np.asarray(ref),
                               rtol=3e-2, atol=3e-2)

    print("KERNEL_OK")
</pallas_src>

<mosaic_0001>
module attributes {stable_mosaic.version = 11 : i64} {
  func.func @_fused_kernel(%arg0: i32, %arg1: memref<1x256x128xf32, #tpu.memory_space<vmem>>, %arg2: memref<128x256xbf16, #tpu.memory_space<vmem>>, %arg3: memref<1x128xf32, #tpu.memory_space<vmem>>, %arg4: memref<1x128xf32, #tpu.memory_space<vmem>>, %arg5: memref<128x128xbf16, #tpu.memory_space<vmem>>, %arg6: memref<1x128xf32, #tpu.memory_space<vmem>>, %arg7: memref<1x128xf32, #tpu.memory_space<vmem>>, %arg8: memref<128x512xbf16, #tpu.memory_space<vmem>>, %arg9: memref<1x512xf32, #tpu.memory_space<vmem>>, %arg10: memref<512x128xbf16, #tpu.memory_space<vmem>>, %arg11: memref<1x128xf32, #tpu.memory_space<vmem>>, %arg12: memref<1x128xf32, #tpu.memory_space<vmem>>, %arg13: memref<1x128xf32, #tpu.memory_space<vmem>>, %arg14: memref<1x256x128xf32, #tpu.memory_space<vmem>>) attributes {dimension_semantics = [#tpu.dimension_semantics<parallel>], iteration_bounds = array<i64: 2>, scalar_prefetch = 0 : i64, scratch_operands = 0 : i64, tpu.core_type = #tpu.core_type<tc>, window_params = [{transform_indices = @transform_0, window_bounds = array<i64: 1, 256, 128>}, {pipeline_mode = #tpu.pipeline_mode<synchronous>, transform_indices = @transform_1, window_bounds = array<i64: 128, 256>}, {pipeline_mode = #tpu.pipeline_mode<synchronous>, transform_indices = @transform_2, window_bounds = array<i64: 1, 128>}, {pipeline_mode = #tpu.pipeline_mode<synchronous>, transform_indices = @transform_3, window_bounds = array<i64: 1, 128>}, {pipeline_mode = #tpu.pipeline_mode<synchronous>, transform_indices = @transform_4, window_bounds = array<i64: 128, 128>}, {pipeline_mode = #tpu.pipeline_mode<synchronous>, transform_indices = @transform_5, window_bounds = array<i64: 1, 128>}, {pipeline_mode = #tpu.pipeline_mode<synchronous>, transform_indices = @transform_6, window_bounds = array<i64: 1, 128>}, {pipeline_mode = #tpu.pipeline_mode<synchronous>, transform_indices = @transform_7, window_bounds = array<i64: 128, 512>}, {pipeline_mode = #tpu.pipeline_mode<synchronous>, transform_indices = @transform_8, window_bounds = array<i64: 1, 512>}, {pipeline_mode = #tpu.pipeline_mode<synchronous>, transform_indices = @transform_9, window_bounds = array<i64: 512, 128>}, {pipeline_mode = #tpu.pipeline_mode<synchronous>, transform_indices = @transform_10, window_bounds = array<i64: 1, 128>}, {pipeline_mode = #tpu.pipeline_mode<synchronous>, transform_indices = @transform_11, window_bounds = array<i64: 1, 128>}, {pipeline_mode = #tpu.pipeline_mode<synchronous>, transform_indices = @transform_12, window_bounds = array<i64: 1, 128>}, {transform_indices = @transform_13, window_bounds = array<i64: 1, 256, 128>}]} {
    %c0 = arith.constant 0 : index
    %c0_0 = arith.constant 0 : index
    %c0_1 = arith.constant 0 : index
    %0 = vector.load %arg1[%c0, %c0_0, %c0_1] : memref<1x256x128xf32, #tpu.memory_space<vmem>>, vector<1x256x128xf32>
    %1 = vector.shape_cast %0 : vector<1x256x128xf32> to vector<256x128xf32>
    %2 = arith.truncf %1 : vector<256x128xf32> to vector<256x128xbf16>
    %c0_2 = arith.constant 0 : index
    %c0_3 = arith.constant 0 : index
    %3 = vector.load %arg2[%c0_2, %c0_3] : memref<128x256xbf16, #tpu.memory_space<vmem>>, vector<128x256xbf16>
    %cst = arith.constant dense<0.000000e+00> : vector<256x256xf32>
    %4 = tpu.matmul %2, %3, %cst {dimension_numbers = #tpu.dot_dimension_numbers<[1], [0], [0], [1], [0, 0, 1, 1], [], []>} : vector<256x128xbf16>, vector<128x256xbf16>, vector<256x256xf32> -> vector<256x256xf32>
    %5 = vector.extract_strided_slice %4 {offsets = [0, 0], sizes = [256, 128], strides = [1, 1]} : vector<256x256xf32> to vector<256x128xf32>
    %6 = vector.extract_strided_slice %4 {offsets = [0, 128], sizes = [256, 128], strides = [1, 1]} : vector<256x256xf32> to vector<256x128xf32>
    %c0_4 = arith.constant 0 : index
    %c0_5 = arith.constant 0 : index
    %7 = vector.load %arg3[%c0_4, %c0_5] : memref<1x128xf32, #tpu.memory_space<vmem>>, vector<1x128xf32>
    %c0_6 = arith.constant 0 : index
    %c0_7 = arith.constant 0 : index
    %8 = vector.load %arg4[%c0_6, %c0_7] : memref<1x128xf32, #tpu.memory_space<vmem>>, vector<1x128xf32>
    %9 = arith.mulf %1, %1 : vector<256x128xf32>
    %cst_8 = arith.constant dense<0.000000e+00> : vector<256xf32>
    %10 = vector.multi_reduction <add>, %9, %cst_8 [1] : vector<256x128xf32> to vector<256xf32>
    %11 = vector.shape_cast %10 : vector<256xf32> to vector<256x1xf32>
    %cst_9 = arith.constant 5.000000e-01 : f32
    %12 = vector.broadcast %cst_9 : f32 to vector<256x1xf32>
    %13 = arith.mulf %12, %11 : vector<256x1xf32>
    %14 = vector.broadcast %13 : vector<256x1xf32> to vector<256x128xf32>
    %15 = arith.subf %5, %14 : vector<256x128xf32>
    %16 = vector.broadcast %7 : vector<1x128xf32> to vector<256x128xf32>
    %17 = arith.mulf %15, %16 : vector<256x128xf32>
    %18 = vector.broadcast %8 : vector<1x128xf32> to vector<256x128xf32>
    %19 = arith.addf %17, %18 : vector<256x128xf32>
    %cst_10 = arith.constant 0.000000e+00 : f32
    %20 = vector.broadcast %cst_10 : f32 to vector<256x128xf32>
    %21 = arith.minimumf %19, %20 : vector<256x128xf32>
    %22 = math.exp %21 : vector<256x128xf32>
    %cst_11 = arith.constant dense<0.000000e+00> : vector<256xf32>
    %23 = vector.multi_reduction <add>, %22, %cst_11 [1] : vector<256x128xf32> to vector<256xf32>
    %24 = vector.shape_cast %23 : vector<256xf32> to vector<256x1xf32>
    %cst_12 = arith.constant 9.99999993E-9 : f32
    %25 = vector.broadcast %cst_12 : f32 to vector<256x1xf32>
    %26 = arith.addf %24, %25 : vector<256x1xf32>
    %27 = tpu.reciprocal %26 {approx = true} : vector<256x1xf32> -> vector<256x1xf32>
    %28 = vector.broadcast %27 : vector<256x1xf32> to vector<256x128xf32>
    %29 = arith.mulf %22, %28 : vector<256x128xf32>
    %30 = arith.truncf %29 : vector<256x128xf32> to vector<256x128xbf16>
    %31 = arith.truncf %6 : vector<256x128xf32> to vector<256x128xbf16>
    %cst_13 = arith.constant dense<0.000000e+00> : vector<128x128xf32>
    %32 = tpu.matmul %30, %31, %cst_13 {dimension_numbers = #tpu.dot_dimension_numbers<[0], [0], [1], [1], [0, 1, 1, 1], [], []>} : vector<256x128xbf16>, vector<256x128xbf16>, vector<128x128xf32> -> vector<128x128xf32>
    %33 = arith.truncf %32 : vector<128x128xf32> to vector<128x128xbf16>
    %cst_14 = arith.constant dense<0.000000e+00> : vector<256x128xf32>
    %34 = tpu.matmul %30, %33, %cst_14 {dimension_numbers = #tpu.dot_dimension_numbers<[1], [0], [0], [1], [0, 0, 1, 1], [], []>} : vector<256x128xbf16>, vector<128x128xbf16>, vector<256x128xf32> -> vector<256x128xf32>
    %35 = arith.truncf %34 : vector<256x128xf32> to vector<256x128xbf16>
    %c0_15 = arith.constant 0 : index
    %c0_16 = arith.constant 0 : index
    %36 = vector.load %arg5[%c0_15, %c0_16] : memref<128x128xbf16, #tpu.memory_space<vmem>>, vector<128x128xbf16>
    %cst_17 = arith.constant dense<0.000000e+00> : vector<256x128xf32>
    %37 = tpu.matmul %35, %36, %cst_17 {dimension_numbers = #tpu.dot_dimension_numbers<[1], [0], [0], [1], [0, 0, 1, 1], [], []>} : vector<256x128xbf16>, vector<128x128xbf16>, vector<256x128xf32> -> vector<256x128xf32>
    %38 = arith.addf %1, %37 : vector<256x128xf32>
    %c0_18 = arith.constant 0 : index
    %c0_19 = arith.constant 0 : index
    %39 = vector.load %arg6[%c0_18, %c0_19] : memref<1x128xf32, #tpu.memory_space<vmem>>, vector<1x128xf32>
    %c0_20 = arith.constant 0 : index
    %c0_21 = arith.constant 0 : index
    %40 = vector.load %arg7[%c0_20, %c0_21] : memref<1x128xf32, #tpu.memory_space<vmem>>, vector<1x128xf32>
    %cst_22 = arith.constant dense<0.000000e+00> : vector<256xf32>
    %41 = vector.multi_reduction <add>, %38, %cst_22 [1] : vector<256x128xf32> to vector<256xf32>
    %42 = vector.shape_cast %41 : vector<256xf32> to vector<256x1xf32>
    %cst_23 = arith.constant 1.280000e+02 : f32
    %43 = vector.broadcast %cst_23 : f32 to vector<256x1xf32>
    %44 = arith.divf %42, %43 : vector<256x1xf32>
    %45 = vector.broadcast %44 : vector<256x1xf32> to vector<256x128xf32>
    %46 = arith.subf %38, %45 : vector<256x128xf32>
    %47 = arith.mulf %46, %46 : vector<256x128xf32>
    %cst_24 = arith.constant dense<0.000000e+00> : vector<256xf32>
    %48 = vector.multi_reduction <add>, %47, %cst_24 [1] : vector<256x128xf32> to vector<256xf32>
    %49 = vector.shape_cast %48 : vector<256xf32> to vector<256x1xf32>
    %cst_25 = arith.constant 1.280000e+02 : f32
    %50 = vector.broadcast %cst_25 : f32 to vector<256x1xf32>
    %51 = arith.divf %49, %50 : vector<256x1xf32>
    %cst_26 = arith.constant 9.99999974E-6 : f32
    %52 = vector.broadcast %cst_26 : f32 to vector<256x1xf32>
    %53 = arith.addf %51, %52 : vector<256x1xf32>
    %54 = math.rsqrt %53 : vector<256x1xf32>
    %55 = vector.broadcast %54 : vector<256x1xf32> to vector<256x128xf32>
    %56 = arith.mulf %46, %55 : vector<256x128xf32>
    %57 = vector.broadcast %39 : vector<1x128xf32> to vector<256x128xf32>
    %58 = arith.mulf %56, %57 : vector<256x128xf32>
    %59 = vector.broadcast %40 : vector<1x128xf32> to vector<256x128xf32>
    %60 = arith.addf %58, %59 : vector<256x128xf32>
    %c0_27 = arith.constant 0 : index
    %c0_28 = arith.constant 0 : index
    %61 = vector.load %arg9[%c0_27, %c0_28] : memref<1x512xf32, #tpu.memory_space<vmem>>, vector<1x512xf32>
    %c0_29 = arith.constant 0 : index
    %c0_30 = arith.constant 0 : index
    %62 = vector.load %arg11[%c0_29, %c0_30] : memref<1x128xf32, #tpu.memory_space<vmem>>, vector<1x128xf32>
    %63 = arith.truncf %60 : vector<256x128xf32> to vector<256x128xbf16>
    %c0_31 = arith.constant 0 : index
    %c0_32 = arith.constant 0 : index
    %64 = vector.load %arg8[%c0_31, %c0_32] : memref<128x512xbf16, #tpu.memory_space<vmem>>, vector<128x512xbf16>
    %cst_33 = arith.constant dense<0.000000e+00> : vector<256x512xf32>
    %65 = tpu.matmul %63, %64, %cst_33 {dimension_numbers = #tpu.dot_dimension_numbers<[1], [0], [0], [1], [0, 0, 1, 1], [], []>} : vector<256x128xbf16>, vector<128x512xbf16>, vector<256x512xf32> -> vector<256x512xf32>
    %66 = vector.broadcast %61 : vector<1x512xf32> to vector<256x512xf32>
    %67 = arith.addf %65, %66 : vector<256x512xf32>
    %cst_34 = arith.constant 5.000000e-01 : f32
    %68 = vector.broadcast %cst_34 : f32 to vector<256x512xf32>
    %69 = arith.mulf %68, %67 : vector<256x512xf32>
    %cst_35 = arith.constant 0.707106769 : f32
    %70 = vector.broadcast %cst_35 : f32 to vector<256x512xf32>
    %71 = arith.mulf %67, %70 : vector<256x512xf32>
    %72 = math.erf %71 : vector<256x512xf32>
    %cst_36 = arith.constant 1.000000e+00 : f32
    %73 = vector.broadcast %cst_36 : f32 to vector<256x512xf32>
    %74 = arith.addf %73, %72 : vector<256x512xf32>
    %75 = arith.mulf %69, %74 : vector<256x512xf32>
    %76 = arith.truncf %75 : vector<256x512xf32> to vector<256x512xbf16>
    %c0_37 = arith.constant 0 : index
    %c0_38 = arith.constant 0 : index
    %77 = vector.load %arg10[%c0_37, %c0_38] : memref<512x128xbf16, #tpu.memory_space<vmem>>, vector<512x128xbf16>
    %cst_39 = arith.constant dense<0.000000e+00> : vector<256x128xf32>
    %78 = tpu.matmul %76, %77, %cst_39 {dimension_numbers = #tpu.dot_dimension_numbers<[1], [0], [0], [1], [0, 0, 1, 1], [], []>} : vector<256x512xbf16>, vector<512x128xbf16>, vector<256x128xf32> -> vector<256x128xf32>
    %79 = vector.broadcast %62 : vector<1x128xf32> to vector<256x128xf32>
    %80 = arith.addf %78, %79 : vector<256x128xf32>
    %81 = arith.addf %60, %80 : vector<256x128xf32>
    %c0_40 = arith.constant 0 : index
    %c0_41 = arith.constant 0 : index
    %82 = vector.load %arg12[%c0_40, %c0_41] : memref<1x128xf32, #tpu.memory_space<vmem>>, vector<1x128xf32>
    %c0_42 = arith.constant 0 : index
    %c0_43 = arith.constant 0 : index
    %83 = vector.load %arg13[%c0_42, %c0_43] : memref<1x128xf32, #tpu.memory_space<vmem>>, vector<1x128xf32>
    %cst_44 = arith.constant dense<0.000000e+00> : vector<256xf32>
    %84 = vector.multi_reduction <add>, %81, %cst_44 [1] : vector<256x128xf32> to vector<256xf32>
    %85 = vector.shape_cast %84 : vector<256xf32> to vector<256x1xf32>
    %cst_45 = arith.constant 1.280000e+02 : f32
    %86 = vector.broadcast %cst_45 : f32 to vector<256x1xf32>
    %87 = arith.divf %85, %86 : vector<256x1xf32>
    %88 = vector.broadcast %87 : vector<256x1xf32> to vector<256x128xf32>
    %89 = arith.subf %81, %88 : vector<256x128xf32>
    %90 = arith.mulf %89, %89 : vector<256x128xf32>
    %cst_46 = arith.constant dense<0.000000e+00> : vector<256xf32>
    %91 = vector.multi_reduction <add>, %90, %cst_46 [1] : vector<256x128xf32> to vector<256xf32>
    %92 = vector.shape_cast %91 : vector<256xf32> to vector<256x1xf32>
    %cst_47 = arith.constant 1.280000e+02 : f32
    %93 = vector.broadcast %cst_47 : f32 to vector<256x1xf32>
    %94 = arith.divf %92, %93 : vector<256x1xf32>
    %cst_48 = arith.constant 9.99999974E-6 : f32
    %95 = vector.broadcast %cst_48 : f32 to vector<256x1xf32>
    %96 = arith.addf %94, %95 : vector<256x1xf32>
    %97 = math.rsqrt %96 : vector<256x1xf32>
    %98 = vector.broadcast %97 : vector<256x1xf32> to vector<256x128xf32>
    %99 = arith.mulf %89, %98 : vector<256x128xf32>
    %100 = vector.broadcast %82 : vector<1x128xf32> to vector<256x128xf32>
    %101 = arith.mulf %99, %100 : vector<256x128xf32>
    %102 = vector.broadcast %83 : vector<1x128xf32> to vector<256x128xf32>
    %103 = arith.addf %101, %102 : vector<256x128xf32>
    %c0_49 = arith.constant 0 : index
    %c0_50 = arith.constant 0 : index
    %c0_51 = arith.constant 0 : index
    %104 = vector.load %arg14[%c0_49, %c0_50, %c0_51] : memref<1x256x128xf32, #tpu.memory_space<vmem>>, vector<1x256x128xf32>
    %105 = vector.shape_cast %104 : vector<1x256x128xf32> to vector<256x128xf32>
    %106 = vector.shape_cast %103 : vector<256x128xf32> to vector<1x256x128xf32>
    tpu.vector_store %arg14[%c0_49, %c0_50, %c0_51], %106 {strides = array<i32>} : memref<1x256x128xf32, #tpu.memory_space<vmem>>, vector<1x256x128xf32>,
    return
  }
  func.func @transform_0(%arg0: i32) -> (i32, i32, i32) {
    %c0_i32 = arith.constant 0 : i32
    %c0_i32_0 = arith.constant 0 : i32
    %c0_i32_1 = arith.constant 0 : i32
    return %arg0, %c0_i32, %c0_i32_0 : i32, i32, i32
  }
  func.func @transform_1(%arg0: i32) -> (i32, i32) {
    %c0_i32 = arith.constant 0 : i32
    %c0_i32_0 = arith.constant 0 : i32
    %c0_i32_1 = arith.constant 0 : i32
    return %c0_i32, %c0_i32_0 : i32, i32
  }
  func.func @transform_2(%arg0: i32) -> (i32, i32) {
    %c0_i32 = arith.constant 0 : i32
    %c0_i32_0 = arith.constant 0 : i32
    %c0_i32_1 = arith.constant 0 : i32
    return %c0_i32, %c0_i32_0 : i32, i32
  }
  func.func @transform_3(%arg0: i32) -> (i32, i32) {
    %c0_i32 = arith.constant 0 : i32
    %c0_i32_0 = arith.constant 0 : i32
    %c0_i32_1 = arith.constant 0 : i32
    return %c0_i32, %c0_i32_0 : i32, i32
  }
  func.func @transform_4(%arg0: i32) -> (i32, i32) {
    %c0_i32 = arith.constant 0 : i32
    %c0_i32_0 = arith.constant 0 : i32
    %c0_i32_1 = arith.constant 0 : i32
    return %c0_i32, %c0_i32_0 : i32, i32
  }
  func.func @transform_5(%arg0: i32) -> (i32, i32) {
    %c0_i32 = arith.constant 0 : i32
    %c0_i32_0 = arith.constant 0 : i32
    %c0_i32_1 = arith.constant 0 : i32
    return %c0_i32, %c0_i32_0 : i32, i32
  }
  func.func @transform_6(%arg0: i32) -> (i32, i32) {
    %c0_i32 = arith.constant 0 : i32
    %c0_i32_0 = arith.constant 0 : i32
    %c0_i32_1 = arith.constant 0 : i32
    return %c0_i32, %c0_i32_0 : i32, i32
  }
  func.func @transform_7(%arg0: i32) -> (i32, i32) {
    %c0_i32 = arith.constant 0 : i32
    %c0_i32_0 = arith.constant 0 : i32
    %c0_i32_1 = arith.constant 0 : i32
    return %c0_i32, %c0_i32_0 : i32, i32
  }
  func.func @transform_8(%arg0: i32) -> (i32, i32) {
    %c0_i32 = arith.constant 0 : i32
    %c0_i32_0 = arith.constant 0 : i32
    %c0_i32_1 = arith.constant 0 : i32
    return %c0_i32, %c0_i32_0 : i32, i32
  }
  func.func @transform_9(%arg0: i32) -> (i32, i32) {
    %c0_i32 = arith.constant 0 : i32
    %c0_i32_0 = arith.constant 0 : i32
    %c0_i32_1 = arith.constant 0 : i32
    return %c0_i32, %c0_i32_0 : i32, i32
  }
  func.func @transform_10(%arg0: i32) -> (i32, i32) {
    %c0_i32 = arith.constant 0 : i32
    %c0_i32_0 = arith.constant 0 : i32
    %c0_i32_1 = arith.constant 0 : i32
    return %c0_i32, %c0_i32_0 : i32, i32
  }
  func.func @transform_11(%arg0: i32) -> (i32, i32) {
    %c0_i32 = arith.constant 0 : i32
    %c0_i32_0 = arith.constant 0 : i32
    %c0_i32_1 = arith.constant 0 : i32
    return %c0_i32, %c0_i32_0 : i32, i32
  }
  func.func @transform_12(%arg0: i32) -> (i32, i32) {
    %c0_i32 = arith.constant 0 : i32
    %c0_i32_0 = arith.constant 0 : i32
    %c0_i32_1 = arith.constant 0 : i32
    return %c0_i32, %c0_i32_0 : i32, i32
  }
  func.func @transform_13(%arg0: i32) -> (i32, i32, i32) {
    %c0_i32 = arith.constant 0 : i32
    %c0_i32_0 = arith.constant 0 : i32
    %c0_i32_1 = arith.constant 0 : i32
    return %arg0, %c0_i32, %c0_i32_0 : i32, i32, i32
  }
}

</mosaic_0001>

<bundles_post_ra>
// kernel: tpu_custom_call.1
= control target key start
LH: loop header
LB: loop body
LE: loop exit
PB: predicated region body
PF: predicated region fallthrough
CT: control target
= control target key end

     0   :  { %s9340_s0 = inlined_call_operand.hbm [shape: f32[2,256,128], index: 0, kind: input, shape index: {}]   ;;  %s9341_s1 = inlined_call_operand.hbm [shape: bf16[128,256], index: 1, kind: input, shape index: {}]   ;;  %s9342_s2 = inlined_call_operand.vmem [shape: f32[1,128], index: 2, kind: input, shape index: {}]   ;;  %s9343_s3 = inlined_call_operand.vmem [shape: f32[1,128], index: 3, kind: input, shape index: {}]   ;;  %s9344_s4 = inlined_call_operand.hbm [shape: bf16[128,128], index: 4, kind: input, shape index: {}]   ;;  %s9345_s5 = inlined_call_operand.vmem [shape: f32[1,128], index: 5, kind: input, shape index: {}]   ;;  %s9346_s6 = inlined_call_operand.vmem [shape: f32[1,128], index: 6, kind: input, shape index: {}]   ;;  %s9347_s7 = inlined_call_operand.hbm [shape: bf16[128,512], index: 7, kind: input, shape index: {}]   ;;  %s9348_s8 = inlined_call_operand.vmem [shape: f32[1,512], index: 8, kind: input, shape index: {}]   ;;  %s9349_s9 = inlined_call_operand.hbm [shape: bf16[512,128], index: 9, kind: input, shape index: {}]   ;;  %s9350_s10 = inlined_call_operand.vmem [shape: f32[1,128], index: 10, kind: input, shape index: {}]   ;;  %s9351_s11 = inlined_call_operand.vmem [shape: f32[1,128], index: 11, kind: input, shape index: {}]   ;;  %s9352_s12 = inlined_call_operand.vmem [shape: f32[1,128], index: 12, kind: input, shape index: {}]   ;;  %s9353_s13 = inlined_call_operand.hbm [shape: f32[2,256,128], index: 13, kind: output, shape index: {}]  }
   0x1   :  { %9406 = sst [smem:[#allocation64_spill]] %s9341_s1 }
   0x2   :  { %9407 = sst [smem:[#allocation65_spill]] %s9350_s10 }
   0x3   :  { %9408 = sst [smem:[#allocation66_spill]] %s9351_s11 }
   0x4   :  { %9409 = sst [smem:[#allocation67_spill]] %s9352_s12 }
   0x5   :  { %9410 = sst [smem:[#allocation68_spill]] %s9353_s13 }
   0x6   :  { %18 = vsyncpa [#allocation3], 0 }
   0x7   :  { %20 = vsyncpa [#allocation3 + $0x1], 0 }
   0x8   :  { %21 = vsyncpa [#allocation6], 0 }
   0x9   :  { %22 = vsyncpa [#allocation9], 0 }
   0xa   :  { %23 = vsyncpa [#allocation4], 0 }
   0xb   :  { %25 = vsyncpa [#allocation4 + $0x1], 0  ;;  %s6529_s25 = smov 0   ;;  %s6531_s26 = smov 0  }
   0xc   :  { %s6533_s27 = smov 0   ;;  %s6535_s28 = smov 0  }
   0xd LB: > { %9411 = sst [smem:[#allocation16_spill]] %s6430_s25  ;;  %s6550_s29 = sadd.s32 4294967295, %s6442_s28   ;;  %s6442_s28 = sphi %s6535_s28, %s9568_s28   ;;  %s6438_s27 = sphi %s6533_s27, %s9567_s27   ;;  %s6434_s26 = sphi %s6531_s26, %s9566_s26   ;;  %s6430_s25 = sphi %s6529_s25, %s9565_s25  }
   0xe   : > { %s4907_s30 = sadd.s32 4294967294, %s6442_s28   ;;  %p51_p0 = scmp.ne.s32.totalorder %s6434_s26, %s6430_s25 }
   0xf   : > { %p9356_p1 = scmp.eq.s32.totalorder %s6550_s29, 0  ;;  %p333_p3 = scmp.eq.s32.totalorder %s4907_s30, 1 }
  0x10   : > { %p4908_p5 = scmp.ge.s32.totalorder %s6442_s28, 1  ;;  %p340_p7 = scmp.lt.s32.totalorder %s6442_s28, 3 }
  0x11   : > { %p6559_p4 = por %p9356_p1, %p51_p0  ;;  %p6564_p6 = por %p333_p3, %p51_p0 }
  0x12   : > { %p6569_p8 = pnand %p4908_p5, %p340_p7  ;;  %s6444_s17 = smov [#allocation5]  }
  0x13   : > { %s9412_s14 = scalar_select %p6559_p4, 1, 0 }
  0x14   : > { %s9413_s15 = scalar_select %p6564_p6, 1, 0 }
  0x15   : > { %s9415_s16 = scalar_select %p6569_p8, 1, 0 }
  0x16   : > { %9414 = sst [smem:[#allocation17_spill]] %s9413_s15  ;;  %s352_s18 = sshll.u32 %s6444_s17, 4  ;;  %s6573_s18 = int_to_ptr.vmem [resolvable:$true] %s352_s18 }
  0x17   : > { %p5494_p9 = pneg %p6569_p8  ;;  %s6445_s20 = smov [#allocation8]  }
  0x18   : > { %s390_s21 = sshll.u32 %s6445_s20, 4  ;;  %s9417_s1 = sld [smem:[#allocation64_spill]]  ;;  %s6584_s21 = int_to_ptr.vmem [resolvable:$true] %s390_s21 }
  0x19   : > { %p6580_p11 = pnand %p5494_p9, %p9356_p1 }
  0x1b   : > { %p6594_p13 = pneg %p6580_p11 }
  0x1e   : > { %s6226_s24 = scalar_lea.hbm %s9417_s1, 2048 }
  0x1f   : > { %p6227_p12 = scmp.ne.s32.totalorder %s9417_s1, %s6226_s24  ;;  %p6233_p5 = scmp.lt.u32.totalorder %s6226_s24, %s9417_s1 }
  0x21   : > { %p6229_p0 = pnand %p6594_p13, %p6227_p12 }
  0x23   : > { %p6230_p3 = pneg %p6229_p0 }
  0x25   : > { %p6235_p7 = pnand %p6233_p5, %p6230_p3 }
  0x27   : > { %6238 = shalt.err (!%p6235_p7)
}
  0x28   : > { %s6239_s22 = scalar_lea.vmem %s6573_s18, 2048  ;;  %p6247_p2 = scmp.lt.s32.totalorder %s6573_s18, %s6573_s18 }
  0x29   : > { %p6240_p9 = scmp.ne.s32.totalorder %s6573_s18, %s6239_s22  ;;  %p6248_p6 = scmp.lt.s32.totalorder %s6239_s22, %s6239_s22 }
  0x2b   : > { %p6242_p10 = pnand %p6240_p9, %p6594_p13  ;;  %p6249_p12 = por %p6248_p6, %p6247_p2 }
  0x2d   : > { %p6243_p1 = pneg %p6242_p10 }
  0x2f   : > { %p6250_p0 = pnand %p6249_p12, %p6243_p1 }
  0x31   : > { %6253 = shalt.err (!%p6250_p0)
}
  0x32   : > { %s9358_s23 = smov 128   ;;  %s9359_s25 = smov 8  }
  0x33   : > { %5497 = dma.hbm_to_vmem [thread:$0]  (!%p6580_p11), %s9417_s1, 2048, %s6573_s18, [#allocation6], %s9358_s23, %s9358_s23, %s9359_s25  }
  0x34   : > { %s6254_s22 = scalar_lea.hbm %s9347_s7, 4096 }
  0x35   : > { %p6255_p1 = scmp.ne.s32.totalorder %s9347_s7, %s6254_s22  ;;  %p6261_p10 = scmp.lt.u32.totalorder %s6254_s22, %s9347_s7 }
  0x37   : > { %p6257_p2 = pnand %p6255_p1, %p6594_p13 }
  0x39   : > { %p6258_p6 = pneg %p6257_p2 }
  0x3b   : > { %p6263_p3 = pnand %p6261_p10, %p6258_p6 }
  0x3d   : > { %6266 = shalt.err (!%p6263_p3)
}
  0x3e   : > { %s6267_s18 = scalar_lea.vmem %s6584_s21, 4096  ;;  %p6275_p12 = scmp.lt.s32.totalorder %s6584_s21, %s6584_s21 }
  0x3f   : > { %p6268_p5 = scmp.ne.s32.totalorder %s6584_s21, %s6267_s18  ;;  %p6276_p0 = scmp.lt.s32.totalorder %s6267_s18, %s6267_s18 }
  0x41   : > { %p6270_p7 = pnand %p6268_p5, %p6594_p13  ;;  %p6277_p1 = por %p6276_p0, %p6275_p12 }
  0x43   : > { %p6271_p9 = pneg %p6270_p7 }
  0x45   : > { %p6278_p2 = pnand %p6277_p1, %p6271_p9 }
  0x47   : > { %6281 = shalt.err (!%p6278_p2)
}
  0x48   : > { %s6448_s12 = smov 256   ;;  %s6449_s10 = smov 16  }
  0x49   : > { %5503 = dma.hbm_to_vmem [thread:$0]  (!%p6580_p11), %s9347_s7, 4096, %s6584_s21, [#allocation9], %s6448_s12, %s6448_s12, %s6449_s10  }
  0x4a   : > { %s6450_s24 = smov [#allocation7]   ;;  %s6282_s22 = scalar_lea.hbm %s9344_s4, 1024 }
  0x4b   : > { %s371_s30 = sshll.u32 %s6450_s24, 4  ;;  %p6283_p6 = scmp.ne.s32.totalorder %s9344_s4, %s6282_s22  ;;  %s372_s30 = int_to_ptr.vmem [resolvable:$true] %s371_s30 }
  0x4c   : > { %p6289_p5 = scmp.lt.u32.totalorder %s6282_s22, %s9344_s4 }
  0x4d   : > { %p6285_p10 = pnand %p6283_p6, %p6594_p13 }
  0x4f   : > { %p6286_p3 = pneg %p6285_p10 }
  0x51   : > { %p6291_p7 = pnand %p6289_p5, %p6286_p3 }
  0x53   : > { %6294 = shalt.err (!%p6291_p7)
}
  0x54   : > { %s6295_s21 = scalar_lea.vmem %s372_s30, 1024  ;;  %p6303_p1 = scmp.lt.s32.totalorder %s372_s30, %s372_s30 }
  0x55   : > { %p6296_p9 = scmp.ne.s32.totalorder %s372_s30, %s6295_s21  ;;  %p6304_p2 = scmp.lt.s32.totalorder %s6295_s21, %s6295_s21 }
  0x57   : > { %p6298_p12 = pnand %p6296_p9, %p6594_p13  ;;  %p6305_p4 = por %p6304_p2, %p6303_p1 }
  0x59   : > { %p6299_p0 = pneg %p6298_p12 }
  0x5b   : > { %p6306_p8 = pnand %p6305_p4, %p6299_p0 }
  0x5d   : > { %6309 = shalt.err (!%p6306_p8)
}
  0x5e   : > { %s6451_s23 = smov 64   ;;  %s6452_s12 = smov 4  }
  0x5f   : > { %5500 = dma.hbm_to_vmem [thread:$0]  (!%p6580_p11), %s9344_s4, 1024, %s372_s30, [#allocation6], %s6451_s23, %s6451_s23, %s6452_s12  }
  0x60   : > { %s6453_s10 = smov [#allocation10]   ;;  %s6310_s17 = scalar_lea.hbm %s9349_s9, 4096 }
  0x61   : > { %s406_s11 = sshll.u32 %s6453_s10, 4  ;;  %p6311_p4 = scmp.ne.s32.totalorder %s9349_s9, %s6310_s17  ;;  %s407_s11 = int_to_ptr.vmem [resolvable:$true] %s406_s11 }
  0x62   : > { %p6317_p10 = scmp.lt.u32.totalorder %s6310_s17, %s9349_s9 }
  0x63   : > { %p6313_p8 = pnand %p6311_p4, %p6594_p13 }
  0x65   : > { %p6314_p6 = pneg %p6313_p8 }
  0x67   : > { %p6319_p3 = pnand %p6317_p10, %p6314_p6 }
  0x69   : > { %6322 = shalt.err (!%p6319_p3)
}
  0x6a   : > { %s6323_s30 = scalar_lea.vmem %s407_s11, 4096  ;;  %p6331_p12 = scmp.lt.s32.totalorder %s407_s11, %s407_s11 }
  0x6b   : > { %p6324_p5 = scmp.ne.s32.totalorder %s407_s11, %s6323_s30  ;;  %p6332_p0 = scmp.lt.s32.totalorder %s6323_s30, %s6323_s30 }
  0x6d   : > { %p6326_p7 = pnand %p6324_p5, %p6594_p13  ;;  %p6333_p1 = por %p6332_p0, %p6331_p12 }
  0x6f   : > { %p6327_p9 = pneg %p6326_p7 }
  0x71   : > { %p6334_p2 = pnand %p6333_p1, %p6327_p9 }
  0x73   : > { %6337 = shalt.err (!%p6334_p2)
}
  0x74   : > { %5506 = dma.hbm_to_vmem [thread:$0]  (!%p6580_p11), %s9349_s9, 4096, %s407_s11, [#allocation9], %s6451_s23, %s6451_s23, %s6452_s12  }
  0x75   : > { %s6678_s15 = sadd.s32 1, %s6442_s28   ;;  %s38_s10 = sadd.s32 1, %s6438_s27 }
  0x76   : > { %s35_s19 = ssub.s32 %s6442_s28, %s6678_s15  ;;  %p45_p13 = scmp.ne.s32.totalorder %s6438_s27, %s6434_s26 }
  0x77   : > { %p36_p4 = scmp.eq.s32.totalorder %s35_s19, 0  ;;  %p46_p8 = scmp.eq.s32.totalorder %s6442_s28, 0 }
  0x78   : > { %p9419_p6 = scmp.eq.s32.totalorder %s6550_s29, 1  ;;  %p5519_p3 = scmp.lt.s32.totalorder %s6442_s28, 2 }
  0x79   : > { %s6694_s24 = scalar_select %p36_p4, %s6438_s27, %s38_s10  }
  0x7a   : > { %p6688_p10 = por %p9419_p6, %p45_p13  ;;  %p47_p5 = por %p46_p8, %p45_p13 }
  0x7b   : > { %s429_s17 = sand.u32 1, %s6438_s27   ;;  %s5024_s23 = sshll.u32 %s6442_s28, 12 }
  0x7c   : > { %s4914_s20 = sshll.u32 %s429_s17, 8  ;;  %s6701_s22 = scalar_lea.hbm %s9340_s0, %s5024_s23 }
  0x7d   : > { %s433_s18 = scalar_lea.vmem [#allocation2], %s4914_s20  ;;  %p6705_p11 = pnand %p5519_p3, %p47_p5 }
  0x7e   : > { %s440_s21 = sshll.u32 %s433_s18, 4  ;;  %s6709_s1 = scalar_lea.sflag [#allocation3], %s429_s17  ;;  %s6703_s21 = int_to_ptr.vmem [resolvable:$true] %s440_s21 }
  0x7f   : > { %s6338_s25 = scalar_lea.hbm %s6701_s22, 4096  ;;  %p6340_p9 = pneg %p6705_p11 }
  0x80   : > { %p6339_p7 = scmp.ne.s32.totalorder %s6701_s22, %s6338_s25  ;;  %s6343_s20 = scalar_lea.hbm %s9340_s0, 8192 }
  0x81   : > { %p6344_p1 = scmp.lt.u32.totalorder %s6701_s22, %s9340_s0  ;;  %p6345_p2 = scmp.lt.u32.totalorder %s6343_s20, %s6338_s25 }
  0x82   : > { %p6341_p12 = pnand %p6340_p9, %p6339_p7  ;;  %p6347_p4 = scmp.lt.u32.totalorder %s6338_s25, %s6701_s22 }
  0x83   : > { %p6346_p13 = por %p6345_p2, %p6344_p1 }
  0x84   : > { %p6342_p0 = pneg %p6341_p12 }
  0x85   : > { %p6348_p8 = por %p6347_p4, %p6346_p13 }
  0x87   : > { %p6349_p6 = pnand %p6348_p8, %p6342_p0 }
  0x89   : > { %6352 = shalt.err (!%p6349_p6)
}
  0x8a   : > { %s6353_s17 = scalar_lea.vmem %s6703_s21, 4096  ;;  %s6454_s11 = smov [#allocation2]  }
  0x8b   : > { %p6354_p3 = scmp.ne.s32.totalorder %s6703_s21, %s6353_s17  ;;  %s6358_s18 = sshll.u32 %s6454_s11, 4  ;;  %s6359_s18 = int_to_ptr.vmem [resolvable:$false] %s6358_s18 }
  0x8c   : > { %s6360_s10 = scalar_lea.vmem %s6359_s18, 8192  ;;  %p6361_p12 = scmp.lt.s32.totalorder %s6703_s21, %s6359_s18 }
  0x8d   : > { %p6356_p5 = pnand %p6354_p3, %p6340_p9  ;;  %p6362_p1 = scmp.lt.s32.totalorder %s6360_s10, %s6353_s17 }
  0x8f   : > { %p6357_p7 = pneg %p6356_p5  ;;  %p6363_p2 = por %p6362_p1, %p6361_p12 }
  0x91   : > { %p6364_p13 = pnand %p6363_p2, %p6357_p7 }
  0x93   : > { %6367 = shalt.err (!%p6364_p13)
}
  0x94   : > { %s9422_s25 = smov 8   ;;  %s9423_s19 = smov 128  }
  0x95   : > { %5510 = dma.hbm_to_vmem [thread:$0]  (!%p6705_p11), %s6701_s22, 4096, %s6703_s21, %s6709_s1, %s9423_s19, %s9423_s19, %s9422_s25  }
  0x96   : > { %p9424_p9 = scmp.ne.s32.totalorder %s9415_s16, 0 }
  0x98   : > { %452 = sbr.rel (%p9424_p9) target bundleno = 2807 (0xaf7), region = 72 }
  0x9f   : > { %s6743_s20 = sand.u32 1, %s6434_s26   ;;  %p9425_p0 = scmp.ne.s32.totalorder %s9412_s14, 0 }
  0xa0   : > { %s4918_s23 = sshll.u32 %s6743_s20, 8  ;;  %s455_s12 = scalar_lea.sflag [#allocation3], %s6743_s20 }
  0xa1   : > { %s6749_s30 = scalar_lea.vmem [#allocation2], %s4918_s23 }
  0xa2   : > { %6413 = dma.done.wait (%p9425_p0), %s455_s12, 4096  }
  0xa3   : > { %6415 = vsyncadd (%p9425_p0), %s455_s12, 4294963200  ;;  %p9426_p11 = scmp.eq.s32.totalorder %s6550_s29, 0 }
  0xa5   : > { %6417 = dma.done.wait (%p9426_p11), [#allocation6], 3072   ;;  %p9427_p4 = pmov %p9426_p11 }
  0xa7   : > { %6419 = vsyncadd (%p9427_p4), [#allocation6], 4294964224  ;;  %p9428_p8 = pmov %p9427_p4 }
  0xa8   : > { %p9429_p6 = pmov %p9427_p4 }
  0xa9   : > { %6421 = dma.done.wait (%p9428_p8), [#allocation9], 8192  }
  0xaa   : > { %6423 = vsyncadd (%p9429_p6), [#allocation9], 4294959104  ;;  %v9362_v0 = vmov 0   ;;  %v5570_v1 = vld [vmem:[#allocation5 + $0x4] ss:$8 sps:$4 sm:$0xff]   ;;  %v6784_v19 = vld [vmem:[%s6749_s30 + $0x98] sm:$0xff] }
  0xab   : > { %694 = vmatprep.mubr.bf16.mxu0 %v9362_v0  ;;  %814 = vmatprep.mubr.bf16.mxu1 %v9362_v0  ;;  %v5572_v2 = vld [vmem:[#allocation5] ss:$8 sps:$4 sm:$0xff]   ;;  %v5573_v3 = vld [vmem:[#allocation5 + $0x14] ss:$8 sps:$4 sm:$0xff]   ;;  %v5575_v4 = vld [vmem:[#allocation5 + $0x10] ss:$8 sps:$4 sm:$0xff]   ;;  %v876_v21 = vmul.f32 %v6784_v19, %v6784_v19 }
  0xac   : > { %662 = vmatprep.subr.bf16.mxu0 %v5570_v1  ;;  %5458 = vmatprep.subr.bf16.mxu1 %v5570_v1  ;;  %v5576_v5 = vld [vmem:[#allocation5 + $0x24] ss:$8 sps:$4 sm:$0xff]   ;;  %v5578_v6 = vld [vmem:[#allocation5 + $0x20] ss:$8 sps:$4 sm:$0xff]   ;;  %v5579_v7 = vld [vmem:[#allocation5 + $0x34] ss:$8 sps:$4 sm:$0xff]  }
  0xad   : > { %663 = vmatpush1.bf16.msra.mxu0 %v5572_v2  ;;  %5466 = vmatpush1.bf16.msra.mxu1 %v5572_v2  ;;  %v6766_v8 = vld [vmem:[%s6749_s30] sm:$0xff]  ;;  %v5581_v9 = vld [vmem:[#allocation5 + $0x30] ss:$8 sps:$4 sm:$0xff]   ;;  %v6771_v12 = vld [vmem:[%s6749_s30 + $0x8] sm:$0xff]  ;;  %s9558_s22 = sld [smem:[#allocation66_spill]]  ;;  %s9559_s17 = sld [smem:[#allocation67_spill]] }
  0xae   : > { %664 = vmatprep.subr.bf16.mxu0 %v5573_v3  ;;  %5459 = vmatprep.subr.bf16.mxu1 %v5573_v3  ;;  %v857_v10 = vmul.f32 %v6766_v8, %v6766_v8  ;;  %v5582_v11 = vld [vmem:[#allocation5 + $0x44] ss:$8 sps:$4 sm:$0xff]   ;;  %v858_v13 = vmul.f32 %v6771_v12, %v6771_v12  ;;  %v5584_v14 = vld [vmem:[#allocation5 + $0x40] ss:$8 sps:$4 sm:$0xff]   ;;  %v5585_v15 = vld [vmem:[#allocation5 + $0x54] ss:$8 sps:$4 sm:$0xff]   ;;  %v550_v41 = vpack.c.bf16 %v6771_v12, %v6766_v8 }
  0xaf   : > { %v6776_v16 = vld [vmem:[%s6749_s30 + $0x80] sm:$0xff]  ;;  %v6781_v18 = vld [vmem:[%s6749_s30 + $0x88] sm:$0xff]  ;;  %v5587_v20 = vld [vmem:[#allocation5 + $0x50] ss:$8 sps:$4 sm:$0xff]   ;;  %s9164_s11 = scalar_lea.vmem [#allocation11], %s4918_s23  ;;  %s5025_s23 = sshll.u32 %s6550_s29, 12 }
  0xb0   : > { %889 = vadd.xlane.f32.xlu1 %v857_v10  ;;  %v873_v17 = vmul.f32 %v6776_v16, %v6776_v16  ;;  %v5588_v22 = vld [vmem:[#allocation5 + $0x64] ss:$8 sps:$4 sm:$0xff]   ;;  %v521_v23 = vld [vmem:[%s6749_s30 + $0x18] sm:$0xff]  ;;  %v6790_v24 = vld [vmem:[%s6749_s30 + $0x90] sm:$0xff]  ;;  %v874_v26 = vmul.f32 %v6781_v18, %v6781_v18  ;;  %s4796_s18 = sshll.u32 %s9164_s11, 4  ;;  %s9560_s19 = sld [smem:[#allocation68_spill]]  ;;  %s9294_s18 = int_to_ptr.vmem [resolvable:$true] %s4796_s18 }
  0xb1   : > { %665 = vmatpush1.bf16.msra.mxu0 %v5575_v4  ;;  %5467 = vmatpush1.bf16.msra.mxu1 %v5575_v4  ;;  %v5590_v25 = vld [vmem:[#allocation5 + $0x60] ss:$8 sps:$4 sm:$0xff]   ;;  %v860_v27 = vmul.f32 %v521_v23, %v521_v23  ;;  %v5591_v29 = vld [vmem:[#allocation5 + $0x74] ss:$8 sps:$4 sm:$0xff]   ;;  %v5593_v30 = vld [vmem:[#allocation5 + $0x70] ss:$8 sps:$4 sm:$0xff]   ;;  %v875_v33 = vmul.f32 %v6790_v24, %v6790_v24 }
  0xb2   : > { %666 = vmatprep.subr.bf16.mxu0 %v5576_v5  ;;  %5460 = vmatprep.subr.bf16.mxu1 %v5576_v5  ;;  %v6795_v28 = vld [vmem:[%s6749_s30 + $0xa8] sm:$0xff]  ;;  %v542_v31 = vld [vmem:[%s6749_s30 + $0xc0] sm:$0xff]  ;;  %v520_v35 = vld [vmem:[%s6749_s30 + $0x10] sm:$0xff]  ;;  %s6368_s14 = scalar_lea.vmem %s9294_s18, 4096  ;;  %s6456_s29 = smov [#allocation11]  }
  0xb3   : > { %921 = vadd.xlane.f32.xlu0 %v873_v17  ;;  %v543_v32 = vld [vmem:[%s6749_s30 + $0xc8] sm:$0xff]  ;;  %v878_v34 = vmul.f32 %v6795_v28, %v6795_v28  ;;  %v6806_v37 = vld [vmem:[%s6749_s30 + $0xa0] sm:$0xff]  ;;  %v6809_v38 = vld [vmem:[%s6749_s30 + $0xb8] sm:$0xff]  ;;  %v859_v39 = vmul.f32 %v520_v35, %v520_v35  ;;  %v551_v52 = vpack.c.bf16 %v521_v23, %v520_v35  ;;  %v881_v1 = vmul.f32 %v542_v31, %v542_v31  ;;  %p6369_p3 = scmp.ne.s32.totalorder %s9294_s18, %s6368_s14  ;;  %s6372_s16 = sshll.u32 %s6456_s29, 4  ;;  %s6373_s16 = int_to_ptr.vmem [resolvable:$false] %s6372_s16 }
  0xb4   : > { %891 = vadd.xlane.f32.xlu1 %v858_v13  ;;  %v523_v36 = vld [vmem:[%s6749_s30 + $0x28] sm:$0xff]  ;;  %v562_v42 = vpack.c.bf16 %v543_v32, %v542_v31  ;;  %v544_v43 = vld [vmem:[%s6749_s30 + $0xd0] sm:$0xff]  ;;  %v545_v44 = vld [vmem:[%s6749_s30 + $0xd8] sm:$0xff]  ;;  %v877_v45 = vmul.f32 %v6806_v37, %v6806_v37  ;;  %v880_v46 = vmul.f32 %v6809_v38, %v6809_v38  ;;  %v882_v57 = vmul.f32 %v543_v32, %v543_v32  ;;  %p6375_p12 = scmp.lt.s32.totalorder %s9294_s18, %s6373_s16 }
  0xb5   : > { %667 = vmatpush1.bf16.msra.mxu0 %v5578_v6  ;;  %5468 = vmatpush1.bf16.msra.mxu1 %v5578_v6  ;;  %v862_v40 = vmul.f32 %v523_v36, %v523_v36  ;;  %v522_v47 = vld [vmem:[%s6749_s30 + $0x20] sm:$0xff]  ;;  %v525_v48 = vld [vmem:[%s6749_s30 + $0x38] sm:$0xff]  ;;  %v6824_v49 = vld [vmem:[%s6749_s30 + $0xb0] sm:$0xff]  ;;  %v563_v53 = vpack.c.bf16 %v545_v44, %v544_v43  ;;  %v884_v2 = vmul.f32 %v545_v44, %v545_v44  ;;  %p6370_p5 = pnand %p6369_p3, %p6688_p10 }
  0xb6   : > { %668 = vmatprep.subr.bf16.mxu0 %v5579_v7  ;;  %5461 = vmatprep.subr.bf16.mxu1 %v5579_v7  ;;  %v861_v50 = vmul.f32 %v522_v47, %v522_v47  ;;  %v864_v51 = vmul.f32 %v525_v48, %v525_v48  ;;  %v546_v54 = vld [vmem:[%s6749_s30 + $0xe0] sm:$0xff]  ;;  %v547_v55 = vld [vmem:[%s6749_s30 + $0xe8] sm:$0xff]  ;;  %v879_v56 = vmul.f32 %v6824_v49, %v6824_v49  ;;  %v524_v58 = vld [vmem:[%s6749_s30 + $0x30] sm:$0xff]  ;;  %s9292_s12 = scalar_lea.hbm %s9560_s19, %s5025_s23 }
  0xb7   : > { %923 = vadd.xlane.f32.xlu0 %v874_v26  ;;  %v527_v59 = vld [vmem:[%s6749_s30 + $0x48] sm:$0xff]  ;;  %v863_v60 = vmul.f32 %v524_v58, %v524_v58  ;;  %v552_v62 = vpack.c.bf16 %v523_v36, %v522_v47  ;;  %v564_v63 = vpack.c.bf16 %v547_v55, %v546_v54  ;;  %v548_v3 = vld [vmem:[%s6749_s30 + $0xf0] sm:$0xff]  ;;  %v549_v4 = vld [vmem:[%s6749_s30 + $0xf8] sm:$0xff]  ;;  %v886_v12 = vmul.f32 %v547_v55, %v547_v55  ;;  %p6371_p7 = pneg %p6370_p5 }
  0xb8   : > { %927 = vadd.xlane.f32.xlu1 %v876_v21  ;;  %v866_v61 = vmul.f32 %v527_v59, %v527_v59  ;;  %v526_v5 = vld [vmem:[%s6749_s30 + $0x40] sm:$0xff]  ;;  %v529_v6 = vld [vmem:[%s6749_s30 + $0x58] sm:$0xff]  ;;  %v565_v10 = vpack.c.bf16 %v549_v4, %v548_v3  ;;  %v528_v13 = vld [vmem:[%s6749_s30 + $0x50] sm:$0xff]  ;;  %v885_v21 = vmul.f32 %v546_v54, %v546_v54  ;;  %v558_v35 = vpack.c.bf16 %v6781_v18, %v6776_v16 }
  0xb9   : > { %669 = vmatpush1.bf16.msra.mxu0 %v5581_v9  ;;  %5469 = vmatpush1.bf16.msra.mxu1 %v5581_v9  ;;  %v865_v7 = vmul.f32 %v526_v5, %v526_v5  ;;  %v868_v8 = vmul.f32 %v529_v6, %v529_v6  ;;  %v553_v9 = vpack.c.bf16 %v525_v48, %v524_v58  ;;  %v530_v23 = vld [vmem:[%s6749_s30 + $0x60] sm:$0xff]  ;;  %v532_v31 = vld [vmem:[%s6749_s30 + $0x70] sm:$0xff] }
  0xba   : > { %670 = vmatprep.subr.bf16.mxu0 %v5582_v11  ;;  %5462 = vmatprep.subr.bf16.mxu1 %v5582_v11  ;;  %v883_v11 = vmul.f32 %v544_v43, %v544_v43  ;;  %v869_v26 = vmul.f32 %v530_v23, %v530_v23  ;;  %v871_v32 = vmul.f32 %v532_v31, %v532_v31 }
  0xbb   : > { %925 = vadd.xlane.f32.xlu0 %v875_v33  ;;  %v559_v36 = vpack.c.bf16 %v6784_v19, %v6790_v24 }
  0xbc   : > { %895 = vadd.xlane.f32.xlu1 %v860_v27 }
  0xbd   : > { %671 = vmatpush1.bf16.msra.mxu0 %v5584_v14  ;;  %5470 = vmatpush1.bf16.msra.mxu1 %v5584_v14  ;;  %v531_v14 = vld [vmem:[%s6749_s30 + $0x68] sm:$0xff] }
  0xbe   : > { %672 = vmatprep.subr.bf16.mxu0 %v5585_v15  ;;  %5463 = vmatprep.subr.bf16.mxu1 %v5585_v15  ;;  %v867_v15 = vmul.f32 %v528_v13, %v528_v13  ;;  %v870_v17 = vmul.f32 %v531_v14, %v531_v14  ;;  %v556_v33 = vpack.c.bf16 %v531_v14, %v530_v23 }
  0xbf   : > { %893 = vadd.xlane.f32.xlu0 %v859_v39  ;;  %v560_v39 = vpack.c.bf16 %v6795_v28, %v6806_v37 }
  0xc0   : > { %931 = vadd.xlane.f32.xlu1 %v878_v34 }
  0xc1   : > { %673 = vmatpush1.bf16.msra.mxu0 %v5587_v20  ;;  %5471 = vmatpush1.bf16.msra.mxu1 %v5587_v20  ;;  %v554_v20 = vpack.c.bf16 %v527_v59, %v526_v5  ;;  %v6901_v5 = vld [vmem:[%s9343_s3] ss:$0 sm:$0xff] }
  0xc2   : > { %674 = vmatprep.subr.bf16.mxu0 %v5588_v22  ;;  %5464 = vmatprep.subr.bf16.mxu1 %v5588_v22  ;;  %v888_v22 = vmul.f32 %v549_v4, %v549_v4 }
  0xc3   : > { %929 = vadd.xlane.f32.xlu0 %v877_v45 }
  0xc4   : > { %899 = vadd.xlane.f32.xlu1 %v862_v40  ;;  %v561_v40 = vpack.c.bf16 %v6809_v38, %v6824_v49 }
  0xc5   : > { %675 = vmatpush1.bf16.msra.mxu0 %v5590_v25  ;;  %5472 = vmatpush1.bf16.msra.mxu1 %v5590_v25  ;;  %v533_v25 = vld [vmem:[%s6749_s30 + $0x78] sm:$0xff] }
  0xc6   : > { %676 = vmatprep.subr.bf16.mxu0 %v5591_v29  ;;  %5465 = vmatprep.subr.bf16.mxu1 %v5591_v29  ;;  %v872_v27 = vmul.f32 %v533_v25, %v533_v25  ;;  %v555_v29 = vpack.c.bf16 %v529_v6, %v528_v13  ;;  %v557_v34 = vpack.c.bf16 %v533_v25, %v532_v31 }
  0xc7   : > { %897 = vadd.xlane.f32.xlu0 %v861_v50 }
  0xc8   : > { %935 = vadd.xlane.f32.xlu1 %v880_v46 }
  0xc9   : > { %677 = vmatpush1.bf16.msra.mxu0 %v5593_v30  ;;  %5473 = vmatpush1.bf16.msra.mxu1 %v5593_v30  ;;  %v887_v30 = vmul.f32 %v548_v3, %v548_v3 }
  0xcb   : > { %933 = vadd.xlane.f32.xlu0 %v879_v56 }
  0xcc   : > { %695 = vmatmul.mubr.bf16.vlgmr.msra.gmra.mrb[0].mxu0 %v550_v41  ;;  %815 = vmatmul.mubr.bf16.vlgmr.msra.gmra.mrb[0].mxu1 %v562_v42 }
  0xcd   : > { %704 = vmatprep.mubr.bf16.mxu0 %v9362_v0  ;;  %824 = vmatprep.mubr.bf16.mxu1 %v9362_v0 }
  0xce   : > { %903 = vadd.xlane.f32.xlu1 %v864_v51 }
  0xcf   : > { %901 = vadd.xlane.f32.xlu0 %v863_v60 }
  0xd2   : > { %939 = vadd.xlane.f32.xlu1 %v882_v57 }
  0xd3   : > { %937 = vadd.xlane.f32.xlu0 %v881_v1 }
  0xd4   : > { %705 = vmatmul.mubr.bf16.gmra.mrb[4].mxu0 %v551_v52  ;;  %825 = vmatmul.mubr.bf16.gmra.mrb[4].mxu1 %v563_v53 }
  0xd5   : > { %714 = vmatprep.mubr.bf16.mxu0 %v9362_v0  ;;  %834 = vmatprep.mubr.bf16.mxu1 %v9362_v0 }
  0xd6   : > { %907 = vadd.xlane.f32.xlu1 %v866_v61 }
  0xd7   : > { %905 = vadd.xlane.f32.xlu0 %v865_v7 }
  0xda   : > { %943 = vadd.xlane.f32.xlu1 %v884_v2 }
  0xdb   : > { %941 = vadd.xlane.f32.xlu0 %v883_v11 }
  0xdc   : > { %715 = vmatmul.mubr.bf16.gmra.mrb[8].mxu0 %v552_v62  ;;  %835 = vmatmul.mubr.bf16.gmra.mrb[8].mxu1 %v564_v63  ;;  %v6892_v62 = vld [vmem:[%s9342_s2] ss:$0 sm:$0xff] }
  0xdd   : > { %724 = vmatprep.mubr.bf16.mxu0 %v9362_v0  ;;  %844 = vmatprep.mubr.bf16.mxu1 %v9362_v0 }
  0xde   : > { %911 = vadd.xlane.f32.xlu1 %v868_v8 }
  0xdf   : > { %909 = vadd.xlane.f32.xlu0 %v867_v15 }
  0xe2   : > { %947 = vadd.xlane.f32.xlu1 %v886_v12 }
  0xe3   : > { %945 = vadd.xlane.f32.xlu0 %v885_v21 }
  0xe4   : > { %725 = vmatmul.mubr.bf16.gmra.mrb[12].mxu0 %v553_v9  ;;  %845 = vmatmul.mubr.bf16.gmra.mrb[12].mxu1 %v565_v10 }
  0xe5   : > { %734 = vmatprep.mubr.bf16.mxu0 %v9362_v0 }
  0xe6   : > { %915 = vadd.xlane.f32.xlu1 %v870_v17 }
  0xe7   : > { %913 = vadd.xlane.f32.xlu0 %v869_v26 }
  0xea   : > { %951 = vadd.xlane.f32.xlu1 %v888_v22 }
  0xeb   : > { %949 = vadd.xlane.f32.xlu0 %v887_v30 }
  0xec   : > { %735 = vmatmul.mubr.bf16.gmra.mrb[16].mxu0 %v554_v20 }
  0xed   : > { %744 = vmatprep.mubr.bf16.mxu0 %v9362_v0 }
  0xee   : > { %919 = vadd.xlane.f32.xlu1 %v872_v27 }
  0xef   : > { %917 = vadd.xlane.f32.xlu0 %v871_v32 }
  0xf4   : > { %745 = vmatmul.mubr.bf16.gmra.mrb[20].mxu0 %v555_v29 }
  0xf5   : > { %754 = vmatprep.mubr.bf16.mxu0 %v9362_v0 }
  0xfc   : > { %755 = vmatmul.mubr.bf16.gmra.mrb[24].mxu0 %v556_v33 }
  0xfd   : > { %764 = vmatprep.mubr.bf16.mxu0 %v9362_v0 }
 0x104   : > { %765 = vmatmul.mubr.bf16.gmra.mrb[28].mxu0 %v557_v34 }
 0x105   : > { %774 = vmatprep.mubr.bf16.mxu0 %v9362_v0 }
 0x10c   : > { %775 = vmatmul.mubr.bf16.gmra.mrb[32].mxu0 %v558_v35 }
 0x10d   : > { %784 = vmatprep.mubr.bf16.mxu0 %v9362_v0 }
 0x114   : > { %785 = vmatmul.mubr.bf16.gmra.mrb[36].mxu0 %v559_v36 }
 0x115   : > { %794 = vmatprep.mubr.bf16.mxu0 %v9362_v0 }
 0x11c   : > { %795 = vmatmul.mubr.bf16.gmra.mrb[40].mxu0 %v560_v39 }
 0x11d   : > { %804 = vmatprep.mubr.bf16.mxu0 %v9362_v0 }
 0x124   : > { %805 = vmatmul.mubr.bf16.gmra.mrb[44].mxu0 %v561_v40 }
 0x13d   : > { %v890_v18 = vpop.xlane.xlu1 %889 }
 0x13e   : > { %v953_v55 = vmul.f32 0.5, %v890_v18 }
 0x140   : > { %v6861_v16 = vpop.xlane.xlu0 %921 }
 0x141   : > { %v892_v42 = vpop.xlane.xlu1 %891  ;;  %v969_v15 = vmul.f32 0.5, %v6861_v16 }
 0x142   : > { %v954_v57 = vmul.f32 0.5, %v892_v42 }
 0x144   : > { %v6863_v41 = vpop.xlane.xlu0 %923 }
 0x145   : > { %v6867_v24 = vpop.xlane.xlu1 %927 }
 0x148   : > { %v6865_v19 = vpop.xlane.xlu0 %925 }
 0x149   : > { %v896_v44 = vpop.xlane.xlu1 %895  ;;  %v971_v16 = vmul.f32 0.5, %v6865_v19 }
 0x14a   : > { %v956_v33 = vmul.f32 0.5, %v896_v44 }
 0x14c   : > { %v894_v43 = vpop.xlane.xlu0 %893 }
 0x14d   : > { %v6871_v37 = vpop.xlane.xlu1 %931  ;;  %v955_v23 = vmul.f32 0.5, %v894_v43 }
 0x150   : > { %v6869_v28 = vpop.xlane.xlu0 %929 }
 0x151   : > { %v6873_v46 = vpop.xlane.xlu1 %899 }
 0x154   : > { %v898_v45 = vpop.xlane.xlu0 %897 }
 0x155   : > { %v6877_v47 = vpop.xlane.xlu1 %935 }
 0x158   : > { %v6875_v38 = vpop.xlane.xlu0 %933 }
 0x15b   : > { %v6881_v49 = vpop.xlane.xlu1 %903 }
 0x15c   : > { %v6879_v48 = vpop.xlane.xlu0 %901 }
 0x15f   : > { %v940_v51 = vpop.xlane.xlu1 %939 }
 0x160   : > { %v938_v50 = vpop.xlane.xlu0 %937  ;;  %v978_v58 = vmul.f32 0.5, %v940_v51 }
 0x161   : > { %v977_v56 = vmul.f32 0.5, %v938_v50  ;;  %v957_v50 = vmul.f32 0.5, %v898_v45 }
 0x163   : > { %v6885_v53 = vpop.xlane.xlu1 %907 }
 0x164   : > { %v6883_v52 = vpop.xlane.xlu0 %905 }
 0x167   : > { %v944_v59 = vpop.xlane.xlu1 %943 }
 0x168   : > { %v942_v54 = vpop.xlane.xlu0 %941  ;;  %v980_v36 = vmul.f32 0.5, %v944_v59 }
 0x169   : > { %v979_v25 = vmul.f32 0.5, %v942_v54 }
 0x16b   : > { %v6919_v31 = vpop.xlane.xlu1 %911 }
 0x16c   : > { %v6887_v60 = vpop.xlane.xlu0 %909 }
 0x170   : > { %v946_v32 = vpop.xlane.xlu0 %945 }
 0x19f   : > { %v696_v61 = vpop.f32.mrb[0].mxu0  ;;  %v816_v63 = vpop.f32.mrb[0].mxu1 }
 0x1a0   : > { %v985_v1 = vsub.f32 %v696_v61, %v953_v55  ;;  %v6894_v2 = vpop.f32.mrb[1].mxu0  ;;  %v1009_v3 = vsub.f32 %v816_v63, %v977_v56  ;;  %v6896_v4 = vpop.f32.mrb[1].mxu1  ;;  %v981_v56 = vmul.f32 0.5, %v946_v32 }
 0x1a1   : > { %v700_v6 = vpop.f32.mrb[2].mxu0  ;;  %v820_v7 = vpop.f32.mrb[2].mxu1 }
 0x1a2   : > { %v1023_v8 = vmul.f32 %v6892_v62, %v985_v1  ;;  %v986_v9 = vsub.f32 %v700_v6, %v954_v57  ;;  %v6904_v10 = vpop.f32.mrb[3].mxu0  ;;  %v1047_v11 = vmul.f32 %v6892_v62, %v1009_v3  ;;  %v1010_v12 = vsub.f32 %v820_v7, %v978_v58  ;;  %v6907_v13 = vpop.f32.mrb[3].mxu1 }
 0x1a4   : > { %v1061_v17 = vadd.f32 %v6901_v5, %v1023_v8  ;;  %v1024_v20 = vmul.f32 %v6892_v62, %v986_v9  ;;  %v1085_v21 = vadd.f32 %v6901_v5, %v1047_v11  ;;  %v1048_v22 = vmul.f32 %v6892_v62, %v1010_v12  ;;  %v948_v9 = vpop.xlane.xlu1 %947 }
 0x1a6   : > { %v1093_v26 = vmin.f32 %v1061_v17, 0.0  ;;  %v1062_v27 = vadd.f32 %v6901_v5, %v1024_v20  ;;  %v1117_v29 = vmin.f32 %v1085_v21, 0.0  ;;  %v1086_v30 = vadd.f32 %v6901_v5, %v1048_v22 }
 0x1a7   : > { %v706_v34 = vpop.f32.mrb[4].mxu0  ;;  %v826_v35 = vpop.f32.mrb[4].mxu1  ;;  %v958_v20 = vmul.f32 0.5, %v6873_v46 }
 0x1a8   : > { %v1125_v39 = vmul.f32 1.442695, %v1093_v26  ;;  %v1094_v40 = vmin.f32 %v1062_v27, 0.0  ;;  %v1173_v18 = vmul.f32 1.442695, %v1117_v29  ;;  %v1118_v42 = vmin.f32 %v1086_v30, 0.0 }
 0x1a9   : > { %v987_v43 = vsub.f32 %v706_v34, %v955_v23  ;;  %v6921_v51 = vpop.f32.mrb[5].mxu0  ;;  %v1011_v54 = vsub.f32 %v826_v35, %v979_v25  ;;  %v6923_v55 = vpop.f32.mrb[5].mxu1  ;;  %v982_v29 = vmul.f32 0.5, %v948_v9  ;;  %v959_v30 = vmul.f32 0.5, %v6879_v48 }
 0x1aa   : > { %5682 = vpow2.f32 %v1125_v39  ;;  %v1127_v57 = vmul.f32 1.442695, %v1094_v40  ;;  %v1175_v58 = vmul.f32 1.442695, %v1118_v42  ;;  %v710_v61 = vpop.f32.mrb[6].mxu0  ;;  %v830_v44 = vpop.f32.mrb[6].mxu1 }
 0x1ab   : > { %5684 = vpow2.f32 %v1173_v18  ;;  %v1025_v59 = vmul.f32 %v6892_v62, %v987_v43  ;;  %v988_v63 = vsub.f32 %v710_v61, %v956_v33  ;;  %v6926_v1 = vpop.f32.mrb[7].mxu0  ;;  %v1049_v45 = vmul.f32 %v6892_v62, %v1011_v54  ;;  %v6929_v3 = vpop.f32.mrb[7].mxu1 }
 0x1ac   : > { %5686 = vpow2.f32 %v1127_v57  ;;  %v1012_v7 = vsub.f32 %v830_v44, %v980_v36 }
 0x1ad   : > { %v1063_v11 = vadd.f32 %v6901_v5, %v1025_v59  ;;  %v1026_v12 = vmul.f32 %v6892_v62, %v988_v63  ;;  %v1087_v17 = vadd.f32 %v6901_v5, %v1049_v45  ;;  %5688 = vpow2.f32 %v1175_v58 }
 0x1ae   : > { %v1050_v21 = vmul.f32 %v6892_v62, %v1012_v7 }
 0x1af   : > { %v1095_v22 = vmin.f32 %v1063_v11, 0.0  ;;  %v1064_v23 = vadd.f32 %v6901_v5, %v1026_v12  ;;  %v1119_v25 = vmin.f32 %v1087_v17, 0.0  ;;  %v716_v26 = vpop.f32.mrb[8].mxu0  ;;  %v836_v27 = vpop.f32.mrb[8].mxu1 }
 0x1b0   : > { %v1088_v32 = vadd.f32 %v6901_v5, %v1050_v21  ;;  %v989_v33 = vsub.f32 %v716_v26, %v957_v50  ;;  %v6943_v34 = vpop.f32.mrb[9].mxu0  ;;  %v1013_v35 = vsub.f32 %v836_v27, %v981_v56  ;;  %v6945_v36 = vpop.f32.mrb[9].mxu1  ;;  %v960_v21 = vmul.f32 0.5, %v6881_v49 }
 0x1b1   : > { %v1129_v46 = vmul.f32 1.442695, %v1095_v22  ;;  %v1096_v39 = vmin.f32 %v1064_v23, 0.0  ;;  %v1177_v40 = vmul.f32 1.442695, %v1119_v25  ;;  %v720_v18 = vpop.f32.mrb[10].mxu0 }
 0x1b2   : > { %v1120_v42 = vmin.f32 %v1088_v32, 0.0  ;;  %v1027_v43 = vmul.f32 %v6892_v62, %v989_v33  ;;  %v990_v54 = vsub.f32 %v720_v18, %v958_v20  ;;  %v6948_v57 = vpop.f32.mrb[11].mxu0  ;;  %v1051_v48 = vmul.f32 %v6892_v62, %v1013_v35  ;;  %v840_v58 = vpop.f32.mrb[10].mxu1 }
 0x1b3   : > { %5690 = vpow2.f32 %v1129_v46  ;;  %v1131_v50 = vmul.f32 1.442695, %v1096_v39  ;;  %v1014_v61 = vsub.f32 %v840_v58, %v982_v29  ;;  %v6953_v44 = vpop.f32.mrb[11].mxu1  ;;  %v970_v56 = vmul.f32 0.5, %v6863_v41 }
 0x1b4   : > { %v6955_v59 = vpop.eup %5682  ;;  %5692 = vpow2.f32 %v1177_v40  ;;  %v1179_v63 = vmul.f32 1.442695, %v1120_v42  ;;  %v1065_v45 = vadd.f32 %v6901_v5, %v1027_v43  ;;  %v1028_v7 = vmul.f32 %v6892_v62, %v990_v54 }
 0x1b5   : > { %v6959_v9 = vpop.eup %5684  ;;  %5694 = vpow2.f32 %v1131_v50  ;;  %v1089_v11 = vadd.f32 %v6901_v5, %v1051_v48  ;;  %v1052_v12 = vmul.f32 %v6892_v62, %v1014_v61  ;;  %1189 = vadd.xlane.f32.xlu0 %v6955_v59  ;;  %v9440_v41 = vpack.c.bf16 %v6904_v10, %v6894_v2 }
 0x1b6   : > { %9430 = vst [vmem:[#allocation18_spill] sm:$0xff] %v6959_v9  ;;  %v6966_v20 = vpop.eup %5686  ;;  %v1097_v22 = vmin.f32 %v1065_v45, 0.0  ;;  %v1066_v23 = vadd.f32 %v6901_v5, %v1028_v7  ;;  %5696 = vpow2.f32 %v1179_v63  ;;  %v961_v45 = vmul.f32 0.5, %v6883_v52 }
 0x1b7   : > { %v1121_v25 = vmin.f32 %v1089_v11, 0.0  ;;  %v1090_v26 = vadd.f32 %v6901_v5, %v1052_v12  ;;  %1191 = vadd.xlane.f32.xlu1 %v6966_v20  ;;  %v726_v27 = vpop.f32.mrb[12].mxu0  ;;  %v6972_v29 = vpop.f32.mrb[12].mxu1 }
 0x1b8   : > { %v6974_v32 = vpop.eup %5688  ;;  %v1133_v33 = vmul.f32 1.442695, %v1097_v22  ;;  %v1098_v35 = vmin.f32 %v1066_v23, 0.0  ;;  %v991_v46 = vsub.f32 %v726_v27, %v959_v30  ;;  %v6976_v39 = vpop.f32.mrb[13].mxu0  ;;  %v962_v23 = vmul.f32 0.5, %v6885_v53 }
 0x1b9   : > { %9431 = vst [vmem:[#allocation19_spill] sm:$0xff] %v6974_v32  ;;  %v6978_v49 = vpop.f32.mrb[13].mxu1  ;;  %v1181_v40 = vmul.f32 1.442695, %v1121_v25  ;;  %v1122_v18 = vmin.f32 %v1090_v26, 0.0  ;;  %1237 = vadd.xlane.f32.xlu0 %v6959_v9  ;;  %v730_v42 = vpop.f32.mrb[14].mxu0 }
 0x1ba   : > { %v6981_v43 = vpop.f32.mrb[14].mxu1  ;;  %5698 = vpow2.f32 %v1133_v33  ;;  %v1135_v54 = vmul.f32 1.442695, %v1098_v35  ;;  %v1029_v48 = vmul.f32 %v6892_v62, %v991_v46  ;;  %v992_v58 = vsub.f32 %v730_v42, %v960_v21  ;;  %v6984_v50 = vpop.f32.mrb[15].mxu0 }
 0x1bb   : > { %v6986_v61 = vpop.f32.mrb[15].mxu1  ;;  %v1183_v30 = vmul.f32 1.442695, %v1122_v18  ;;  %1239 = vadd.xlane.f32.xlu1 %v6974_v32 }
 0x1bc   : > { %5700 = vpow2.f32 %v1135_v54  ;;  %v1067_v7 = vadd.f32 %v6901_v5, %v1029_v48  ;;  %v1030_v11 = vmul.f32 %v6892_v62, %v992_v58 }
 0x1bd   : > { %v6994_v12 = vpop.eup %5690  ;;  %5702 = vpow2.f32 %v1181_v40 }
 0x1be   : > { %v6998_v22 = vpop.eup %5692  ;;  %v1099_v25 = vmin.f32 %v1067_v7, 0.0  ;;  %v1068_v26 = vadd.f32 %v6901_v5, %v1030_v11  ;;  %1193 = vadd.xlane.f32.xlu0 %v6994_v12  ;;  %5704 = vpow2.f32 %v1183_v30 }
 0x1bf   : > { %9432 = vst [vmem:[#allocation20_spill] sm:$0xff] %v6998_v22  ;;  %v7003_v52 = vpop.eup %5694  ;;  %v736_v27 = vpop.f32.mrb[16].mxu0 }
 0x1c0   : > { %v1137_v33 = vmul.f32 1.442695, %v1099_v25  ;;  %v1100_v35 = vmin.f32 %v1068_v26, 0.0  ;;  %1195 = vadd.xlane.f32.xlu1 %v7003_v52  ;;  %v993_v46 = vsub.f32 %v736_v27, %v961_v45  ;;  %v7006_v40 = vpop.f32.mrb[17].mxu0  ;;  %v7008_v18 = vpop.eup %5696  ;;  %v963_v45 = vmul.f32 0.5, %v6887_v60 }
 0x1c1   : > { %9433 = vst [vmem:[#allocation21_spill] sm:$0xff] %v7008_v18  ;;  %v740_v42 = vpop.f32.mrb[18].mxu0 }
 0x1c2   : > { %5706 = vpow2.f32 %v1137_v33  ;;  %v1139_v53 = vmul.f32 1.442695, %v1100_v35  ;;  %v1031_v54 = vmul.f32 %v6892_v62, %v993_v46  ;;  %1241 = vadd.xlane.f32.xlu0 %v6998_v22  ;;  %v994_v48 = vsub.f32 %v740_v42, %v962_v23  ;;  %v7012_v58 = vpop.f32.mrb[19].mxu0 }
 0x1c3   : > { %v964_v23 = vmul.f32 0.5, %v6919_v31 }
 0x1c4   : > { %v7016_v7 = vpop.eup %5698  ;;  %5708 = vpow2.f32 %v1139_v53  ;;  %v1069_v11 = vadd.f32 %v6901_v5, %v1031_v54  ;;  %v1032_v25 = vmul.f32 %v6892_v62, %v994_v48  ;;  %1243 = vadd.xlane.f32.xlu1 %v7008_v18 }
 0x1c6   : > { %v7022_v26 = vpop.eup %5700  ;;  %v1101_v27 = vmin.f32 %v1069_v11, 0.0  ;;  %v1070_v33 = vadd.f32 %v6901_v5, %v1032_v25  ;;  %1197 = vadd.xlane.f32.xlu0 %v7016_v7 }
 0x1c7   : > { %v7027_v35 = vpop.eup %5702  ;;  %v746_v46 = vpop.f32.mrb[20].mxu0 }
 0x1c8   : > { %9434 = vst [vmem:[#allocation22_spill] sm:$0xff] %v7027_v35  ;;  %v1141_v60 = vmul.f32 1.442695, %v1101_v27  ;;  %v1102_v42 = vmin.f32 %v1070_v33, 0.0  ;;  %1199 = vadd.xlane.f32.xlu1 %v7022_v26  ;;  %v995_v53 = vsub.f32 %v746_v46, %v963_v45  ;;  %v7030_v54 = vpop.f32.mrb[21].mxu0  ;;  %v7032_v48 = vpop.eup %5704 }
 0x1c9   : > { %9435 = vst [vmem:[#allocation23_spill] sm:$0xff] %v7032_v48  ;;  %v750_v0 = vpop.f32.mrb[22].mxu0 }
 0x1ca   : > { %5710 = vpow2.f32 %v1141_v60  ;;  %v1143_v31 = vmul.f32 1.442695, %v1102_v42  ;;  %v1033_v11 = vmul.f32 %v6892_v62, %v995_v53  ;;  %1245 = vadd.xlane.f32.xlu0 %v7027_v35  ;;  %v996_v25 = vsub.f32 %v750_v0, %v964_v23  ;;  %v7036_v21 = vpop.f32.mrb[23].mxu0 }
 0x1cc   : > { %v7040_v33 = vpop.eup %5706  ;;  %5712 = vpow2.f32 %v1143_v31  ;;  %v1071_v45 = vadd.f32 %v6901_v5, %v1033_v11  ;;  %v1034_v46 = vmul.f32 %v6892_v62, %v996_v25  ;;  %1247 = vadd.xlane.f32.xlu1 %v7032_v48 }
 0x1ce   : > { %v7045_v60 = vpop.eup %5708  ;;  %v1103_v42 = vmin.f32 %v1071_v45, 0.0  ;;  %v1072_v53 = vadd.f32 %v6901_v5, %v1034_v46  ;;  %1201 = vadd.xlane.f32.xlu0 %v7040_v33 }
 0x1cf   : > { %v7049_v0 = vpop.f32.mrb[24].mxu0 }
 0x1d0   : > { %v1145_v23 = vmul.f32 1.442695, %v1103_v42  ;;  %v1104_v17 = vmin.f32 %v1072_v53, 0.0  ;;  %1203 = vadd.xlane.f32.xlu1 %v7045_v60  ;;  %v7052_v31 = vpop.f32.mrb[25].mxu0 }
 0x1d1   : > { %v7054_v11 = vpop.f32.mrb[26].mxu0 }
 0x1d2   : > { %5714 = vpow2.f32 %v1145_v23  ;;  %v1147_v25 = vmul.f32 1.442695, %v1104_v17  ;;  %v7056_v27 = vpop.f32.mrb[27].mxu0 }
 0x1d4   : > { %v7060_v46 = vpop.eup %5710  ;;  %5716 = vpow2.f32 %v1147_v25 }
 0x1d5   : > { %9436 = vst [vmem:[#allocation24_spill] sm:$0xff] %v7060_v46  ;;  %1205 = vadd.xlane.f32.xlu0 %v7060_v46 }
 0x1d6   : > { %v7063_v42 = vpop.eup %5712 }
 0x1d7   : > { %9437 = vst [vmem:[#allocation25_spill] sm:$0xff] %v7063_v42  ;;  %1207 = vadd.xlane.f32.xlu1 %v7063_v42  ;;  %v7066_v53 = vpop.f32.mrb[28].mxu0 }
 0x1d8   : > { %v7068_v8 = vpop.f32.mrb[29].mxu0 }
 0x1d9   : > { %v7070_v23 = vpop.f32.mrb[30].mxu0 }
 0x1da   : > { %v7072_v17 = vpop.f32.mrb[31].mxu0 }
 0x1dc   : > { %v7076_v30 = vpop.eup %5714 }
 0x1dd   : > { %9438 = vst [vmem:[#allocation26_spill] sm:$0xff] %v7076_v30  ;;  %1209 = vadd.xlane.f32.xlu0 %v7076_v30  ;;  %v914_v30 = vpop.xlane.xlu0 %913 }
 0x1de   : > { %v7079_v25 = vpop.eup %5716 }
 0x1df   : > { %9439 = vst [vmem:[#allocation27_spill] sm:$0xff] %v7079_v25  ;;  %1211 = vadd.xlane.f32.xlu1 %v7079_v25  ;;  %v776_v63 = vpop.f32.mrb[32].mxu0 }
 0x1e0   : > { %v1001_v6 = vsub.f32 %v776_v63, %v969_v15  ;;  %v778_v14 = vpop.f32.mrb[33].mxu0 }
 0x1e1   : > { %v780_v35 = vpop.f32.mrb[34].mxu0  ;;  %v950_v46 = vpop.xlane.xlu0 %949 }
 0x1e2   : > { %v1039_v48 = vmul.f32 %v6892_v62, %v1001_v6  ;;  %v1002_v22 = vsub.f32 %v780_v35, %v970_v56  ;;  %v782_v45 = vpop.f32.mrb[35].mxu0  ;;  %v972_v6 = vmul.f32 0.5, %v6867_v24  ;;  %v965_v24 = vmul.f32 0.5, %v914_v30 }
 0x1e3   : > { %v1373_v18 = vpack.c.bf16 %v782_v45, %v778_v14 }
 0x1e4   : > { %v1077_v9 = vadd.f32 %v6901_v5, %v1039_v48  ;;  %v1040_v32 = vmul.f32 %v6892_v62, %v1002_v22  ;;  %v916_v48 = vpop.xlane.xlu1 %915 }
 0x1e5   : > { %5026 = vmatprep.subr.bf16.mxu1 %v1373_v18 }
 0x1e6   : > { %v1109_v25 = vmin.f32 %v1077_v9, 0.0  ;;  %v1078_v42 = vadd.f32 %v6901_v5, %v1040_v32  ;;  %5027 = vmatpush3.bf16.msra.mxu1 %v9440_v41  ;;  %v9441_v41 = vpack.c.bf16 %v6926_v1, %v6921_v51 }
 0x1e7   : > { %v786_v15 = vpop.f32.mrb[36].mxu0 }
 0x1e8   : > { %v1157_v56 = vmul.f32 1.442695, %v1109_v25  ;;  %v1110_v14 = vmin.f32 %v1078_v42, 0.0  ;;  %v1003_v63 = vsub.f32 %v786_v15, %v971_v16  ;;  %v788_v35 = vpop.f32.mrb[37].mxu0  ;;  %v973_v42 = vmul.f32 0.5, %v6869_v28 }
 0x1e9   : > { %v790_v22 = vpop.f32.mrb[38].mxu0  ;;  %v966_v15 = vmul.f32 0.5, %v916_v48 }
 0x1ea   : > { %5718 = vpow2.f32 %v1157_v56  ;;  %v1159_v18 = vmul.f32 1.442695, %v1110_v14  ;;  %v1041_v19 = vmul.f32 %v6892_v62, %v1003_v63  ;;  %v1004_v9 = vsub.f32 %v790_v22, %v972_v6  ;;  %v792_v45 = vpop.f32.mrb[39].mxu0  ;;  %v952_v56 = vpop.xlane.xlu1 %951 }
 0x1eb   : > { %v1374_v32 = vpack.c.bf16 %v792_v45, %v788_v35  ;;  %v983_v6 = vmul.f32 0.5, %v950_v46  ;;  %v974_v63 = vmul.f32 0.5, %v6871_v37  ;;  %v984_v28 = vmul.f32 0.5, %v952_v56  ;;  %v918_v45 = vpop.xlane.xlu0 %917 }
 0x1ec   : > { %5720 = vpow2.f32 %v1159_v18  ;;  %v1079_v2 = vadd.f32 %v6901_v5, %v1041_v19  ;;  %v1042_v10 = vmul.f32 %v6892_v62, %v1004_v9  ;;  %v997_v19 = vsub.f32 %v7049_v0, %v965_v24 }
 0x1ed   : > { %5028 = vmatprep.subr.bf16.mxu1 %v1374_v32  ;;  %v998_v46 = vsub.f32 %v7054_v11, %v966_v15  ;;  %v1015_v37 = vsub.f32 %v6972_v29, %v983_v6  ;;  %v975_v29 = vmul.f32 0.5, %v6875_v38  ;;  %v9442_v56 = vpack.c.bf16 %v6948_v57, %v6943_v34 }
 0x1ee   : > { %v1111_v25 = vmin.f32 %v1079_v2, 0.0  ;;  %v1080_v16 = vadd.f32 %v6901_v5, %v1042_v10  ;;  %5029 = vmatpush3.bf16.msra.mxu1 %v9441_v41  ;;  %v1035_v24 = vmul.f32 %v6892_v62, %v997_v19  ;;  %v1016_v41 = vsub.f32 %v6981_v43, %v984_v28 }
 0x1ef   : > { %v796_v14 = vpop.f32.mrb[40].mxu0  ;;  %v1053_v43 = vmul.f32 %v6892_v62, %v1015_v37 }
 0x1f0   : > { %v1161_v35 = vmul.f32 1.442695, %v1111_v25  ;;  %v1112_v22 = vmin.f32 %v1080_v16, 0.0  ;;  %v1005_v18 = vsub.f32 %v796_v14, %v973_v42  ;;  %v798_v30 = vpop.f32.mrb[41].mxu0  ;;  %v967_v25 = vmul.f32 0.5, %v918_v45  ;;  %v920_v16 = vpop.xlane.xlu1 %919 }
 0x1f1   : > { %v800_v9 = vpop.f32.mrb[42].mxu0  ;;  %v976_v14 = vmul.f32 0.5, %v6877_v47  ;;  %v1073_v28 = vadd.f32 %v6901_v5, %v1035_v24  ;;  %v1054_v57 = vmul.f32 %v6892_v62, %v1016_v41 }
 0x1f2   : > { %5722 = vpow2.f32 %v1161_v35  ;;  %v1163_v32 = vmul.f32 1.442695, %v1112_v22  ;;  %v1043_v51 = vmul.f32 %v6892_v62, %v1005_v18  ;;  %v1006_v1 = vsub.f32 %v800_v9, %v974_v63  ;;  %v802_v48 = vpop.f32.mrb[43].mxu0 }
 0x1f3   : > { %v1375_v2 = vpack.c.bf16 %v802_v48, %v798_v30  ;;  %v1036_v63 = vmul.f32 %v6892_v62, %v998_v46  ;;  %v968_v22 = vmul.f32 0.5, %v920_v16  ;;  %v999_v9 = vsub.f32 %v7066_v53, %v967_v25 }
 0x1f4   : > { %v7106_v10 = vpop.eup %5718  ;;  %5724 = vpow2.f32 %v1163_v32  ;;  %v1081_v42 = vadd.f32 %v6901_v5, %v1043_v51  ;;  %v1044_v0 = vmul.f32 %v6892_v62, %v1006_v1  ;;  %v1091_v46 = vadd.f32 %v6901_v5, %v1053_v43 }
 0x1f5   : > { %1221 = vadd.xlane.f32.xlu0 %v7106_v10  ;;  %5030 = vmatprep.subr.bf16.mxu1 %v1375_v2  ;;  %v1074_v1 = vadd.f32 %v6901_v5, %v1036_v63  ;;  %v1000_v37 = vsub.f32 %v7070_v23, %v968_v22  ;;  %v1105_v25 = vmin.f32 %v1073_v28, 0.0  ;;  %v1037_v16 = vmul.f32 %v6892_v62, %v999_v9 }
 0x1f6   : > { %v7113_v11 = vpop.eup %5720  ;;  %v1113_v15 = vmin.f32 %v1081_v42, 0.0  ;;  %v1082_v6 = vadd.f32 %v6901_v5, %v1044_v0  ;;  %5031 = vmatpush3.bf16.msra.mxu1 %v9442_v56  ;;  %v1092_v0 = vadd.f32 %v6901_v5, %v1054_v57  ;;  %v9443_v23 = vpack.c.bf16 %v6984_v50, %v6976_v39 }
 0x1f7   : > { %1223 = vadd.xlane.f32.xlu1 %v7113_v11  ;;  %v806_v35 = vpop.f32.mrb[44].mxu0  ;;  %v1106_v56 = vmin.f32 %v1074_v1, 0.0  ;;  %v1149_v22 = vmul.f32 1.442695, %v1105_v25  ;;  %v9445_v39 = vpack.c.bf16 %v7012_v58, %v7006_v40  ;;  %v9447_v40 = vpack.c.bf16 %v7036_v21, %v7030_v54 }
 0x1f8   : > { %v1165_v18 = vmul.f32 1.442695, %v1113_v15  ;;  %v1114_v30 = vmin.f32 %v1082_v6, 0.0  ;;  %v1007_v38 = vsub.f32 %v806_v35, %v975_v29  ;;  %v808_v19 = vpop.f32.mrb[45].mxu0  ;;  %v1123_v15 = vmin.f32 %v1091_v46, 0.0 }
 0x1f9   : > { %v810_v34 = vpop.f32.mrb[46].mxu0  ;;  %v9444_v6 = vpack.c.bf16 %v6907_v13, %v6896_v4  ;;  %v1124_v43 = vmin.f32 %v1092_v0, 0.0  ;;  %v9446_v4 = vpack.c.bf16 %v6929_v3, %v6923_v55  ;;  %v9448_v55 = vpack.c.bf16 %v6953_v44, %v6945_v36 }
 0x1fa   : > { %5726 = vpow2.f32 %v1165_v18  ;;  %v1167_v47 = vmul.f32 1.442695, %v1114_v30  ;;  %v1045_v45 = vmul.f32 %v6892_v62, %v1007_v38  ;;  %v1008_v32 = vsub.f32 %v810_v34, %v976_v14  ;;  %v812_v51 = vpop.f32.mrb[47].mxu0 }
 0x1fb   : > { %v1376_v48 = vpack.c.bf16 %v812_v51, %v808_v19  ;;  %v1038_v14 = vmul.f32 %v6892_v62, %v1000_v37  ;;  %v1075_v18 = vadd.f32 %v6901_v5, %v1037_v16  ;;  %v1185_v50 = vmul.f32 1.442695, %v1123_v15 }
 0x1fc   : > { %v7130_v2 = vpop.eup %5722  ;;  %5728 = vpow2.f32 %v1167_v47  ;;  %v1083_v53 = vadd.f32 %v6901_v5, %v1045_v45  ;;  %v1046_v42 = vmul.f32 %v6892_v62, %v1008_v32  ;;  %v1151_v62 = vmul.f32 1.442695, %v1106_v56 }
 0x1fd   : > { %1225 = vadd.xlane.f32.xlu0 %v7130_v2  ;;  %5032 = vmatprep.subr.bf16.mxu1 %v1376_v48  ;;  %v1076_v38 = vadd.f32 %v6901_v5, %v1038_v14  ;;  %v1107_v28 = vmin.f32 %v1075_v18, 0.0  ;;  %v1187_v9 = vmul.f32 1.442695, %v1124_v43  ;;  %v9449_v58 = vpack.c.bf16 %v7056_v27, %v7052_v31 }
 0x1fe   : > { %v7137_v24 = vpop.eup %5724  ;;  %v1115_v41 = vmin.f32 %v1083_v53, 0.0  ;;  %v1084_v29 = vadd.f32 %v6901_v5, %v1046_v42  ;;  %5033 = vmatpush3.bf16.msra.mxu1 %v9443_v23  ;;  %v9450_v34 = vpack.c.bf16 %v6986_v61, %v6978_v49  ;;  %v9451_v36 = vpack.c.bf16 %v7072_v17, %v7068_v8 }
 0x1ff   : > { %1227 = vadd.xlane.f32.xlu1 %v7137_v24  ;;  %5034 = vmatprep.subr.bf16.mxu1 %v9444_v6  ;;  %v1108_v5 = vmin.f32 %v1076_v38, 0.0  ;;  %v1153_v3 = vmul.f32 1.442695, %v1107_v28 }
 0x200   : > { %v1169_v63 = vmul.f32 1.442695, %v1115_v41  ;;  %v1116_v35 = vmin.f32 %v1084_v29, 0.0 }
 0x201   : > { %v1155_v54 = vmul.f32 1.442695, %v1108_v5 }
 0x202   : > { %5730 = vpow2.f32 %v1169_v63  ;;  %v1171_v30 = vmul.f32 1.442695, %v1116_v35  ;;  %5035 = vmatpush3.bf16.msra.mxu1 %v9445_v39 }
 0x203   : > { %5036 = vmatprep.subr.bf16.mxu1 %v9446_v4 }
 0x204   : > { %v7156_v13 = vpop.eup %5726  ;;  %5732 = vpow2.f32 %v1171_v30 }
 0x205   : > { %1229 = vadd.xlane.f32.xlu0 %v7156_v13  ;;  %5734 = vpow2.f32 %v1149_v22 }
 0x206   : > { %v7160_v19 = vpop.eup %5728  ;;  %5037 = vmatpush3.bf16.msra.mxu1 %v9447_v40  ;;  %5736 = vpow2.f32 %v1185_v50 }
 0x207   : > { %1231 = vadd.xlane.f32.xlu1 %v7160_v19  ;;  %5038 = vmatprep.subr.bf16.mxu1 %v9448_v55  ;;  %5738 = vpow2.f32 %v1151_v62 }
 0x208   : > { %5740 = vpow2.f32 %v1187_v9 }
 0x209   : > { %5742 = vpow2.f32 %v1153_v3 }
 0x20a   : > { %5039 = vmatpush3.bf16.msra.mxu1 %v9449_v58  ;;  %5744 = vpow2.f32 %v1155_v54 }
 0x20b   : > { %5040 = vmatprep.subr.bf16.mxu1 %v9450_v34 }
 0x20c   : > { %v7175_v21 = vpop.eup %5730 }
 0x20d   : > { %1233 = vadd.xlane.f32.xlu0 %v7175_v21 }
 0x20e   : > { %v7178_v57 = vpop.eup %5732  ;;  %5041 = vmatpush3.bf16.msra.mxu1 %v9451_v36 }
 0x20f   : > { %1235 = vadd.xlane.f32.xlu1 %v7178_v57  ;;  %v7184_v44 = vpop.eup %5734 }
 0x210   : > { %v7186_v27 = vpop.eup %5736 }
 0x211   : > { %1213 = vadd.xlane.f32.xlu0 %v7184_v44  ;;  %v7189_v49 = vpop.eup %5738 }
 0x212   : > { %v7192_v61 = vpop.eup %5740 }
 0x213   : > { %1215 = vadd.xlane.f32.xlu1 %v7189_v49  ;;  %v7196_v8 = vpop.eup %5742 }
 0x214   : > { %v7199_v31 = vpop.eup %5744 }
 0x215   : > { %1249 = vadd.xlane.f32.xlu0 %v7186_v27 }
 0x217   : > { %1251 = vadd.xlane.f32.xlu1 %v7192_v61 }
 0x219   : > { %1217 = vadd.xlane.f32.xlu0 %v7196_v8 }
 0x21b   : > { %1219 = vadd.xlane.f32.xlu1 %v7199_v31 }
 0x242   : > { %v1190_v17 = vpop.xlane.xlu0 %1189 }
 0x243   : > { %v1253_v47 = vadd.f32 1e-08, %v1190_v17 }
 0x244   : > { %v1192_v45 = vpop.xlane.xlu1 %1191 }
 0x245   : > { %5746 = vrcp.f32 %v1253_v47  ;;  %v1254_v32 = vadd.f32 1e-08, %v1192_v45 }
 0x246   : > { %v7202_v51 = vpop.xlane.xlu0 %1237 }
 0x247   : > { %5748 = vrcp.f32 %v1254_v32 }
 0x248   : > { %v7204_v1 = vpop.xlane.xlu1 %1239 }
 0x24b   : > { %v1194_v48 = vpop.xlane.xlu0 %1193 }
 0x24c   : > { %v1255_v46 = vadd.f32 1e-08, %v1194_v48  ;;  %v9452_v48 = vld [vmem:[#allocation24_spill] sm:$0xff] }
 0x24d   : > { %v1196_v37 = vpop.xlane.xlu1 %1195 }
 0x24e   : > { %5750 = vrcp.f32 %v1255_v46  ;;  %v1256_v53 = vadd.f32 1e-08, %v1196_v37  ;;  %v9453_v37 = vld [vmem:[#allocation25_spill] sm:$0xff] }
 0x24f   : > { %v5747_v42 = vpop.eup %5746  ;;  %v7206_v0 = vpop.xlane.xlu0 %1241 }
 0x250   : > { %5752 = vrcp.f32 %v1256_v53  ;;  %v1317_v41 = vmul.f32 %v5747_v42, %v6955_v59 }
 0x251   : > { %v5749_v25 = vpop.eup %5748  ;;  %v7208_v16 = vpop.xlane.xlu1 %1243 }
 0x252   : > { %v1318_v29 = vmul.f32 %v5749_v25, %v6966_v20  ;;  %v9454_v25 = vld [vmem:[#allocation26_spill] sm:$0xff] }
 0x253   : > { %v1198_v23 = vpop.xlane.xlu0 %1197 }
 0x254   : > { %v1257_v15 = vadd.f32 1e-08, %v1198_v23  ;;  %v7212_v6 = vpack.c.bf16 %v1318_v29, %v1317_v41  ;;  %v9455_v29 = vld [vmem:[#allocation27_spill] sm:$0xff] }
 0x255   : > { %v1200_v56 = vpop.xlane.xlu1 %1199 }
 0x256   : > { %5754 = vrcp.f32 %v1257_v15  ;;  %v1258_v14 = vadd.f32 1e-08, %v1200_v56  ;;  %1381 = vxpose.xlu1.c.b16.start [1/8] %v7212_v6, 128 }
 0x257   : > { %v7215_v63 = vpop.xlane.xlu0 %1245 }
 0x258   : > { %v5751_v35 = vpop.eup %5750  ;;  %5756 = vrcp.f32 %v1258_v14 }
 0x259   : > { %v7217_v43 = vpop.xlane.xlu1 %1247  ;;  %v1319_v59 = vmul.f32 %v5751_v35, %v6994_v12 }
 0x25a   : > { %v5753_v22 = vpop.eup %5752 }
 0x25b   : > { %v1202_v18 = vpop.xlane.xlu0 %1201  ;;  %v1320_v20 = vmul.f32 %v5753_v22, %v7003_v52 }
 0x25c   : > { %v1259_v30 = vadd.f32 1e-08, %v1202_v18 }
 0x25d   : > { %v1204_v39 = vpop.xlane.xlu1 %1203  ;;  %v7221_v50 = vpack.c.bf16 %v1320_v20, %v1319_v59 }
 0x25e   : > { %5758 = vrcp.f32 %v1259_v30  ;;  %v1260_v4 = vadd.f32 1e-08, %v1204_v39 }
 0x25f   : > { %1382 = vxpose.xlu1.c.b16.cont [2/8] %v7221_v50, 128 }
 0x260   : > { %v5755_v62 = vpop.eup %5754  ;;  %5760 = vrcp.f32 %v1260_v4 }
 0x261   : > { %v1321_v40 = vmul.f32 %v5755_v62, %v7016_v7 }
 0x262   : > { %v5757_v38 = vpop.eup %5756  ;;  %v1206_v28 = vpop.xlane.xlu0 %1205 }
 0x263   : > { %v1261_v9 = vadd.f32 1e-08, %v1206_v28  ;;  %v1322_v55 = vmul.f32 %v5757_v38, %v7022_v26 }
 0x264   : > { %v1208_v12 = vpop.xlane.xlu1 %1207 }
 0x265   : > { %5762 = vrcp.f32 %v1261_v9  ;;  %v1262_v52 = vadd.f32 1e-08, %v1208_v12  ;;  %v7226_v5 = vpack.c.bf16 %v1322_v55, %v1321_v40 }
 0x267   : > { %5764 = vrcp.f32 %v1262_v52  ;;  %1383 = vxpose.xlu1.c.b16.cont [3/8] %v7226_v5, 128 }
 0x268   : > { %v5759_v3 = vpop.eup %5758 }
 0x269   : > { %v1323_v36 = vmul.f32 %v5759_v3, %v7040_v33 }
 0x26a   : > { %v5761_v58 = vpop.eup %5760  ;;  %v1210_v34 = vpop.xlane.xlu0 %1209 }
 0x26b   : > { %v1263_v54 = vadd.f32 1e-08, %v1210_v34  ;;  %v1324_v17 = vmul.f32 %v5761_v58, %v7045_v60  ;;  %v1278_v58 = vadd.f32 1e-08, %v7204_v1 }
 0x26c   : > { %v1212_v47 = vpop.xlane.xlu1 %1211 }
 0x26d   : > { %5766 = vrcp.f32 %v1263_v54  ;;  %v1264_v7 = vadd.f32 1e-08, %v1212_v47  ;;  %v7231_v26 = vpack.c.bf16 %v1324_v17, %v1323_v36 }
 0x26f   : > { %v5763_v45 = vpop.eup %5762  ;;  %5768 = vrcp.f32 %v1264_v7  ;;  %1384 = vxpose.xlu1.c.b16.cont [4/8] %v7231_v26, 128 }
 0x270   : > { %v1325_v46 = vmul.f32 %v5763_v45, %v9452_v48  ;;  %v1280_v45 = vadd.f32 1e-08, %v7208_v16  ;;  %v1282_v16 = vadd.f32 1e-08, %v7217_v43 }
 0x271   : > { %v5765_v32 = vpop.eup %5764 }
 0x272   : > { %v1326_v53 = vmul.f32 %v5765_v32, %v9453_v37 }
 0x274   : > { %v7236_v42 = vpack.c.bf16 %v1326_v53, %v1325_v46  ;;  %v1279_v46 = vadd.f32 1e-08, %v7206_v0 }
 0x276   : > { %1385 = vxpose.xlu1.c.b16.cont [5/8] %v7236_v42, 128 }
 0x277   : > { %v5767_v33 = vpop.eup %5766 }
 0x278   : > { %v1327_v41 = vmul.f32 %v5767_v33, %v9454_v25 }
 0x279   : > { %v5769_v60 = vpop.eup %5768 }
 0x27a   : > { %v1328_v23 = vmul.f32 %v5769_v60, %v9455_v29  ;;  %v1281_v60 = vadd.f32 1e-08, %v7215_v63 }
 0x27c   : > { %v7241_v15 = vpack.c.bf16 %v1328_v23, %v1327_v41 }
 0x27e   : > { %1386 = vxpose.xlu1.c.b16.cont [6/8] %v7241_v15, 128 }
 0x282   : > { %v1222_v56 = vpop.xlane.xlu0 %1221 }
 0x283   : > { %v1269_v14 = vadd.f32 1e-08, %v1222_v56 }
 0x284   : > { %v1224_v35 = vpop.xlane.xlu1 %1223 }
 0x285   : > { %5770 = vrcp.f32 %v1269_v14  ;;  %v1270_v22 = vadd.f32 1e-08, %v1224_v35 }
 0x287   : > { %5772 = vrcp.f32 %v1270_v22 }
 0x28a   : > { %v1226_v18 = vpop.xlane.xlu0 %1225 }
 0x28b   : > { %v1271_v59 = vadd.f32 1e-08, %v1226_v18 }
 0x28c   : > { %v1228_v20 = vpop.xlane.xlu1 %1227 }
 0x28d   : > { %5774 = vrcp.f32 %v1271_v59  ;;  %v1272_v30 = vadd.f32 1e-08, %v1228_v20 }
 0x28f   : > { %v5771_v39 = vpop.eup %5770  ;;  %5776 = vrcp.f32 %v1272_v30 }
 0x290   : > { %v1333_v38 = vmul.f32 %v5771_v39, %v7106_v10  ;;  %v9456_v39 = vld [vmem:[#allocation19_spill] sm:$0xff] }
 0x291   : > { %v5773_v4 = vpop.eup %5772 }
 0x292   : > { %v1230_v62 = vpop.xlane.xlu0 %1229  ;;  %v1334_v28 = vmul.f32 %v5773_v4, %v7113_v11  ;;  %v1277_v11 = vadd.f32 1e-08, %v7202_v51 }
 0x293   : > { %v1273_v9 = vadd.f32 1e-08, %v1230_v62 }
 0x294   : > { %v1232_v40 = vpop.xlane.xlu1 %1231  ;;  %v7246_v55 = vpack.c.bf16 %v1334_v28, %v1333_v38  ;;  %v9457_v38 = vld [vmem:[#allocation18_spill] sm:$0xff] }
 0x295   : > { %5778 = vrcp.f32 %v1273_v9  ;;  %v1274_v12 = vadd.f32 1e-08, %v1232_v40 }
 0x296   : > { %1397 = vxpose.xlu0.c.b16.start [1/8] %v7246_v55, 128 }
 0x297   : > { %v5775_v52 = vpop.eup %5774  ;;  %5780 = vrcp.f32 %v1274_v12 }
 0x298   : > { %v1335_v54 = vmul.f32 %v5775_v52, %v7130_v2  ;;  %v9458_v52 = vld [vmem:[#allocation21_spill] sm:$0xff] }
 0x299   : > { %v5777_v3 = vpop.eup %5776 }
 0x29a   : > { %v1234_v34 = vpop.xlane.xlu0 %1233  ;;  %v1336_v10 = vmul.f32 %v5777_v3, %v7137_v24 }
 0x29b   : > { %v1275_v36 = vadd.f32 1e-08, %v1234_v34 }
 0x29c   : > { %v1236_v17 = vpop.xlane.xlu1 %1235  ;;  %v7253_v47 = vpack.c.bf16 %v1336_v10, %v1335_v54  ;;  %v9459_v54 = vld [vmem:[#allocation20_spill] sm:$0xff] }
 0x29d   : > { %5782 = vrcp.f32 %v1275_v36  ;;  %v1276_v7 = vadd.f32 1e-08, %v1236_v17 }
 0x29e   : > { %5784 = vrcp.f32 %v1278_v58  ;;  %1398 = vxpose.xlu0.c.b16.cont [2/8] %v7253_v47, 128  ;;  %v1214_v32 = vpop.xlane.xlu0 %1213 }
 0x29f   : > { %v5779_v1 = vpop.eup %5778  ;;  %5786 = vrcp.f32 %v1276_v7  ;;  %v1265_v48 = vadd.f32 1e-08, %v1214_v32 }
 0x2a0   : > { %5788 = vrcp.f32 %v1277_v11  ;;  %v1216_v2 = vpop.xlane.xlu1 %1215  ;;  %v1337_v53 = vmul.f32 %v5779_v1, %v7156_v13 }
 0x2a1   : > { %v5781_v24 = vpop.eup %5780  ;;  %5790 = vrcp.f32 %v1265_v48  ;;  %v1266_v51 = vadd.f32 1e-08, %v1216_v2 }
 0x2a2   : > { %5792 = vrcp.f32 %v1280_v45  ;;  %v1250_v37 = vpop.xlane.xlu0 %1249  ;;  %v1338_v33 = vmul.f32 %v5781_v24, %v7160_v19  ;;  %v9461_v45 = vld [vmem:[#allocation22_spill] sm:$0xff] }
 0x2a3   : > { %5794 = vrcp.f32 %v1266_v51  ;;  %v1283_v35 = vadd.f32 1e-08, %v1250_v37 }
 0x2a4   : > { %v1252_v25 = vpop.xlane.xlu1 %1251  ;;  %v7262_v41 = vpack.c.bf16 %v1338_v33, %v1337_v53  ;;  %5796 = vrcp.f32 %v1279_v46 }
 0x2a5   : > { %v1284_v29 = vadd.f32 1e-08, %v1252_v25  ;;  %5798 = vrcp.f32 %v1282_v16 }
 0x2a6   : > { %1399 = vxpose.xlu0.c.b16.cont [3/8] %v7262_v41, 128  ;;  %v1218_v0 = vpop.xlane.xlu0 %1217  ;;  %5800 = vrcp.f32 %v1281_v60 }
 0x2a7   : > { %v5783_v23 = vpop.eup %5782  ;;  %v1267_v56 = vadd.f32 1e-08, %v1218_v0 }
 0x2a8   : > { %v5785_v14 = vpop.eup %5784  ;;  %v1220_v13 = vpop.xlane.xlu1 %1219  ;;  %v1339_v63 = vmul.f32 %v5783_v23, %v7175_v21 }
 0x2a9   : > { %v5787_v19 = vpop.eup %5786  ;;  %5802 = vrcp.f32 %v1267_v56  ;;  %v1268_v43 = vadd.f32 1e-08, %v1220_v13  ;;  %v1342_v4 = vmul.f32 %v5785_v14, %v9456_v39 }
 0x2aa   : > { %v5789_v22 = vpop.eup %5788  ;;  %5804 = vrcp.f32 %v1284_v29  ;;  %v1340_v18 = vmul.f32 %v5787_v19, %v7178_v57 }
 0x2ab   : > { %v5791_v59 = vpop.eup %5790  ;;  %5806 = vrcp.f32 %v1268_v43  ;;  %v1341_v28 = vmul.f32 %v5789_v22, %v9457_v38  ;;  %v5594_v43 = vld [vmem:[#allocation7] sm:$0xff]   ;;  %v5595_v22 = vld [vmem:[#allocation7 + $0x8] sm:$0xff]   ;;  %v5597_v38 = vld [vmem:[#allocation7 + $0x18] sm:$0xff]  }
 0x2ac   : > { %v5793_v20 = vpop.eup %5792  ;;  %v7267_v30 = vpack.c.bf16 %v1340_v18, %v1339_v63  ;;  %5808 = vrcp.f32 %v1283_v35  ;;  %v1329_v9 = vmul.f32 %v5791_v59, %v7184_v44  ;;  %5410 = vmatprep.subr.bf16.mxu0 %v5594_v43  ;;  %v5596_v18 = vld [vmem:[#allocation7 + $0x10] sm:$0xff]  }
 0x2ad   : > { %v5795_v62 = vpop.eup %5794  ;;  %v7274_v12 = vpack.c.bf16 %v1342_v4, %v1341_v28  ;;  %v1344_v3 = vmul.f32 %v5793_v20, %v9458_v52  ;;  %5411 = vmatpush3.bf16.msra.mxu0 %v5594_v43 }
 0x2ae   : > { %1400 = vxpose.xlu0.c.b16.cont [4/8] %v7267_v30, 128  ;;  %v1330_v40 = vmul.f32 %v5795_v62, %v7189_v49  ;;  %v5797_v21 = vpop.eup %5796  ;;  %v9460_v49 = vld [vmem:[#allocation23_spill] sm:$0xff]  ;;  %5412 = vmatprep.subr.bf16.mxu0 %v5595_v22 }
 0x2af   : > { %v5799_v58 = vpop.eup %5798  ;;  %v1343_v10 = vmul.f32 %v5797_v21, %v9459_v54 }
 0x2b0   : > { %v7276_v57 = vpack.c.bf16 %v1330_v40, %v1329_v9  ;;  %v5801_v34 = vpop.eup %5800  ;;  %v1346_v17 = vmul.f32 %v5799_v58, %v9460_v49 }
 0x2b1   : > { %v7282_v44 = vpack.c.bf16 %v1344_v3, %v1343_v10  ;;  %v1345_v32 = vmul.f32 %v5801_v34, %v9461_v45  ;;  %5413 = vmatpush3.bf16.msra.mxu0 %v5595_v22  ;;  %v5599_v34 = vld [vmem:[#allocation7 + $0x28] sm:$0xff]  }
 0x2b2   : > { %1401 = vxpose.xlu0.c.b16.cont [5/8] %v7274_v12, 128  ;;  %1387 = vxpose.xlu1.c.b16.cont [7/8] %v7276_v57, 128 }
 0x2b3   : > { %v5803_v36 = vpop.eup %5802  ;;  %v7289_v24 = vpack.c.bf16 %v1346_v17, %v1345_v32  ;;  %5414 = vmatprep.subr.bf16.mxu0 %v5596_v18  ;;  %v5601_v32 = vld [vmem:[#allocation7 + $0x38] sm:$0xff]  }
 0x2b4   : > { %v5805_v11 = vpop.eup %5804  ;;  %v1331_v1 = vmul.f32 %v5803_v36, %v7196_v8  ;;  %v5600_v36 = vld [vmem:[#allocation7 + $0x30] sm:$0xff]  }
 0x2b5   : > { %v5807_v7 = vpop.eup %5806  ;;  %v1348_v51 = vmul.f32 %v5805_v11, %v7192_v61  ;;  %5415 = vmatpush3.bf16.msra.mxu0 %v5596_v18 }
 0x2b6   : > { %1402 = vxpose.xlu0.c.b16.cont [6/8] %v7282_v44, 128  ;;  %v1332_v48 = vmul.f32 %v5807_v7, %v7199_v31  ;;  %v5809_v2 = vpop.eup %5808  ;;  %5416 = vmatprep.subr.bf16.mxu0 %v5597_v38 }
 0x2b7   : > { %v1347_v37 = vmul.f32 %v5809_v2, %v7186_v27 }
 0x2b8   : > { %v7291_v46 = vpack.c.bf16 %v1332_v48, %v1331_v1 }
 0x2b9   : > { %v7297_v53 = vpack.c.bf16 %v1348_v51, %v1347_v37  ;;  %5417 = vmatpush3.bf16.msra.mxu0 %v5597_v38 }
 0x2ba   : > { %1403 = vxpose.xlu0.c.b16.cont [7/8] %v7289_v24, 128  ;;  %1388 = vxpose.xlu1.c.b16.end [8/8] %v7291_v46, 128 }
 0x2be   : > { %1404 = vxpose.xlu0.c.b16.end [8/8] %v7297_v53, 128 }
 0x304   : > { %v1389_v8 = vpop.trf.xlu1 }
 0x308   : > { %v1405_v33 = vpop.trf.xlu0  ;;  %v1390_v16 = vpop.trf.xlu1 }
 0x309   : > { %1445 = vmatprep.mubr.bf16.mxu1 %v1405_v33 }
 0x30a   : > { %1446 = vmatmul.mubr.bf16.vlgmr.msra.gmra.mrb[16].mxu1 %v1389_v8 }
 0x30c   : > { %v1406_v31 = vpop.trf.xlu0  ;;  %v1391_v61 = vpop.trf.xlu1 }
 0x30d   : > { %1453 = vmatprep.mubr.bf16.mxu1 %v1406_v31 }
 0x310   : > { %v1407_v60 = vpop.trf.xlu0  ;;  %v1392_v29 = vpop.trf.xlu1 }
 0x312   : > { %1454 = vmatmul.mubr.bf16.gmra.mrb[20].mxu1 %v1390_v16 }
 0x313   : > { %1461 = vmatprep.mubr.bf16.mxu1 %v1407_v60 }
 0x314   : > { %v1408_v25 = vpop.trf.xlu0  ;;  %v1393_v0 = vpop.trf.xlu1 }
 0x318   : > { %v1409_v27 = vpop.trf.xlu0  ;;  %v1394_v56 = vpop.trf.xlu1 }
 0x31a   : > { %1462 = vmatmul.mubr.bf16.gmra.mrb[24].mxu1 %v1391_v61 }
 0x31b   : > { %1469 = vmatprep.mubr.bf16.mxu1 %v1408_v25 }
 0x31c   : > { %v1410_v23 = vpop.trf.xlu0  ;;  %v1395_v13 = vpop.trf.xlu1 }
 0x320   : > { %v1411_v14 = vpop.trf.xlu0  ;;  %v1396_v35 = vpop.trf.xlu1 }
 0x322   : > { %1470 = vmatmul.mubr.bf16.gmra.mrb[28].mxu1 %v1392_v29 }
 0x323   : > { %1477 = vmatprep.mubr.bf16.mxu1 %v1409_v27 }
 0x324   : > { %v1412_v19 = vpop.trf.xlu0 }
 0x32a   : > { %1478 = vmatmul.mubr.bf16.gmra.mrb[32].mxu1 %v1393_v0 }
 0x32b   : > { %1485 = vmatprep.mubr.bf16.mxu1 %v1410_v23 }
 0x332   : > { %1486 = vmatmul.mubr.bf16.gmra.mrb[36].mxu1 %v1394_v56 }
 0x333   : > { %1493 = vmatprep.mubr.bf16.mxu1 %v1411_v14 }
 0x33a   : > { %1494 = vmatmul.mubr.bf16.gmra.mrb[40].mxu1 %v1395_v13 }
 0x33b   : > { %1501 = vmatprep.mubr.bf16.mxu1 %v1412_v19 }
 0x342   : > { %1502 = vmatmul.mubr.bf16.gmra.mrb[44].mxu1 %v1396_v35 }
 0x343   : > { %5378 = vmatprep.mubr.bf16.mxu1 %v7212_v6  ;;  %v5598_v6 = vld [vmem:[#allocation7 + $0x20] sm:$0xff]  }
 0x344   : > { %5418 = vmatprep.subr.bf16.mxu0 %v5598_v6 }
 0x345   : > { %5419 = vmatpush3.bf16.msra.mxu0 %v5598_v6 }
 0x346   : > { %5420 = vmatprep.subr.bf16.mxu0 %v5599_v34 }
 0x349   : > { %5421 = vmatpush3.bf16.msra.mxu0 %v5599_v34 }
 0x34a   : > { %5422 = vmatprep.subr.bf16.mxu0 %v5600_v36 }
 0x34d   : > { %5423 = vmatpush3.bf16.msra.mxu0 %v5600_v36 }
 0x34e   : > { %5424 = vmatprep.subr.bf16.mxu0 %v5601_v32 }
 0x351   : > { %5425 = vmatpush3.bf16.msra.mxu0 %v5601_v32 }
 0x3dd   : > { %v5042_v63 = vpop.f32.mrb[16].mxu1 }
 0x3de   : > { %v5043_v59 = vpop.f32.mrb[17].mxu1 }
 0x3df   : > { %v5044_v20 = vadd.f32 %v5043_v59, %v5042_v63  ;;  %v5045_v39 = vpop.f32.mrb[18].mxu1 }
 0x3e0   : > { %v5046_v4 = vpop.f32.mrb[19].mxu1 }
 0x3e1   : > { %v5047_v62 = vadd.f32 %v5046_v4, %v5045_v39 }
 0x3e3   : > { %v1510_v28 = vpack.c.bf16 %v5047_v62, %v5044_v20 }
 0x3e5   : > { %v5048_v9 = vpop.f32.mrb[20].mxu1  ;;  %5362 = vmatprep.subr.bf16.mxu1 %v1510_v28 }
 0x3e6   : > { %v5049_v40 = vpop.f32.mrb[21].mxu1  ;;  %5363 = vmatpush3.bf16.msra.mxu1 %v1510_v28 }
 0x3e7   : > { %v5050_v21 = vadd.f32 %v5049_v40, %v5048_v9  ;;  %v5051_v52 = vpop.f32.mrb[22].mxu1 }
 0x3e8   : > { %v5052_v3 = vpop.f32.mrb[23].mxu1 }
 0x3e9   : > { %v5053_v58 = vadd.f32 %v5052_v3, %v5051_v52 }
 0x3eb   : > { %v1511_v54 = vpack.c.bf16 %v5053_v58, %v5050_v21 }
 0x3ed   : > { %v5054_v10 = vpop.f32.mrb[24].mxu1  ;;  %5364 = vmatprep.subr.bf16.mxu1 %v1511_v54 }
 0x3ee   : > { %v5055_v11 = vpop.f32.mrb[25].mxu1  ;;  %5365 = vmatpush3.bf16.msra.mxu1 %v1511_v54 }
 0x3ef   : > { %v5056_v49 = vadd.f32 %v5055_v11, %v5054_v10  ;;  %v5057_v17 = vpop.f32.mrb[26].mxu1 }
 0x3f0   : > { %v5058_v7 = vpop.f32.mrb[27].mxu1 }
 0x3f1   : > { %v5059_v45 = vadd.f32 %v5058_v7, %v5057_v17 }
 0x3f3   : > { %v1512_v1 = vpack.c.bf16 %v5059_v45, %v5056_v49 }
 0x3f5   : > { %v5060_v48 = vpop.f32.mrb[28].mxu1  ;;  %5366 = vmatprep.subr.bf16.mxu1 %v1512_v1 }
 0x3f6   : > { %v5061_v2 = vpop.f32.mrb[29].mxu1  ;;  %5367 = vmatpush3.bf16.msra.mxu1 %v1512_v1 }
 0x3f7   : > { %v5062_v51 = vadd.f32 %v5061_v2, %v5060_v48  ;;  %v5063_v37 = vpop.f32.mrb[30].mxu1 }
 0x3f8   : > { %v5064_v8 = vpop.f32.mrb[31].mxu1 }
 0x3f9   : > { %v5065_v33 = vadd.f32 %v5064_v8, %v5063_v37 }
 0x3fb   : > { %v1513_v31 = vpack.c.bf16 %v5065_v33, %v5062_v51 }
 0x3fd   : > { %v5066_v16 = vpop.f32.mrb[32].mxu1  ;;  %5368 = vmatprep.subr.bf16.mxu1 %v1513_v31 }
 0x3fe   : > { %v5067_v60 = vpop.f32.mrb[33].mxu1  ;;  %5369 = vmatpush3.bf16.msra.mxu1 %v1513_v31 }
 0x3ff   : > { %v5068_v61 = vadd.f32 %v5067_v60, %v5066_v16  ;;  %v5069_v25 = vpop.f32.mrb[34].mxu1 }
 0x400   : > { %v5070_v29 = vpop.f32.mrb[35].mxu1 }
 0x401   : > { %v5071_v27 = vadd.f32 %v5070_v29, %v5069_v25 }
 0x403   : > { %v1514_v0 = vpack.c.bf16 %v5071_v27, %v5068_v61 }
 0x405   : > { %v5072_v23 = vpop.f32.mrb[36].mxu1  ;;  %5370 = vmatprep.subr.bf16.mxu1 %v1514_v0 }
 0x406   : > { %v5073_v56 = vpop.f32.mrb[37].mxu1  ;;  %5371 = vmatpush3.bf16.msra.mxu1 %v1514_v0 }
 0x407   : > { %v5074_v14 = vadd.f32 %v5073_v56, %v5072_v23  ;;  %v5075_v13 = vpop.f32.mrb[38].mxu1 }
 0x408   : > { %v5076_v19 = vpop.f32.mrb[39].mxu1 }
 0x409   : > { %v5077_v35 = vadd.f32 %v5076_v19, %v5075_v13 }
 0x40b   : > { %v1515_v43 = vpack.c.bf16 %v5077_v35, %v5074_v14 }
 0x40d   : > { %v5078_v22 = vpop.f32.mrb[40].mxu1  ;;  %5372 = vmatprep.subr.bf16.mxu1 %v1515_v43 }
 0x40e   : > { %v5079_v63 = vpop.f32.mrb[41].mxu1  ;;  %5373 = vmatpush3.bf16.msra.mxu1 %v1515_v43 }
 0x40f   : > { %v5080_v18 = vadd.f32 %v5079_v63, %v5078_v22  ;;  %v5081_v59 = vpop.f32.mrb[42].mxu1  ;;  %v6194_v63 = vld [vmem:[%s6749_s30] sm:$0xff] }
 0x410   : > { %v5082_v20 = vpop.f32.mrb[43].mxu1 }
 0x411   : > { %v5083_v39 = vadd.f32 %v5082_v20, %v5081_v59 }
 0x413   : > { %v1516_v4 = vpack.c.bf16 %v5083_v39, %v5080_v18  ;;  %v6195_v39 = vld [vmem:[%s6749_s30 + $0x8] sm:$0xff] }
 0x415   : > { %v5084_v62 = vpop.f32.mrb[44].mxu1  ;;  %5374 = vmatprep.subr.bf16.mxu1 %v1516_v4 }
 0x416   : > { %v5085_v38 = vpop.f32.mrb[45].mxu1  ;;  %5375 = vmatpush3.bf16.msra.mxu1 %v1516_v4 }
 0x417   : > { %v5086_v28 = vadd.f32 %v5085_v38, %v5084_v62  ;;  %v5087_v9 = vpop.f32.mrb[46].mxu1  ;;  %v6196_v62 = vld [vmem:[%s6749_s30 + $0x10] sm:$0xff] }
 0x418   : > { %v5088_v6 = vpop.f32.mrb[47].mxu1 }
 0x419   : > { %v5089_v40 = vadd.f32 %v5088_v6, %v5087_v9 }
 0x41b   : > { %v1517_v21 = vpack.c.bf16 %v5089_v40, %v5086_v28  ;;  %v6197_v28 = vld [vmem:[%s6749_s30 + $0x18] sm:$0xff] }
 0x41d   : > { %5376 = vmatprep.subr.bf16.mxu1 %v1517_v21 }
 0x41e   : > { %5377 = vmatpush3.bf16.msra.mxu1 %v1517_v21  ;;  %v6198_v21 = vld [vmem:[%s6749_s30 + $0x20] sm:$0xff] }
 0x421   : > { %5379 = vmatmul.mubr.bf16.vlgmr.msra.gmra.mrb[48].mxu1 %v7221_v50  ;;  %v9462_v50 = vmov 0  }
 0x422   : > { %5382 = vmatprep.mubr.bf16.mxu1 %v7226_v5 }
 0x429   : > { %5383 = vmatmul.mubr.bf16.gmra.mrb[52].mxu1 %v7231_v26 }
 0x42a   : > { %5386 = vmatprep.mubr.bf16.mxu1 %v7236_v42 }
 0x431   : > { %5387 = vmatmul.mubr.bf16.gmra.mrb[56].mxu1 %v7241_v15 }
 0x432   : > { %5390 = vmatprep.mubr.bf16.mxu1 %v7276_v57 }
 0x439   : > { %5391 = vmatmul.mubr.bf16.gmra.mrb[60].mxu1 %v7291_v46 }
 0x43a   : > { %5394 = vmatprep.mubr.bf16.mxu1 %v7246_v55 }
 0x441   : > { %5395 = vmatmul.mubr.bf16.gmra.mrb[64].mxu1 %v7253_v47 }
 0x442   : > { %5398 = vmatprep.mubr.bf16.mxu1 %v7262_v41 }
 0x449   : > { %5399 = vmatmul.mubr.bf16.gmra.mrb[68].mxu1 %v7267_v30 }
 0x44a   : > { %5402 = vmatprep.mubr.bf16.mxu1 %v7274_v12 }
 0x451   : > { %5403 = vmatmul.mubr.bf16.gmra.mrb[72].mxu1 %v7282_v44 }
 0x452   : > { %5406 = vmatprep.mubr.bf16.mxu1 %v7289_v24 }
 0x459   : > { %5407 = vmatmul.mubr.bf16.gmra.mrb[76].mxu1 %v7297_v53 }
 0x45a   : > { %2646 = vmatprep.mubr.bf16.mxu1 %v9462_v50 }
 0x4f4   : > { %v5380_v5 = vpop.f32.mrb[48].mxu1 }
 0x4f5   : > { %v1552_v26 = vpop.f32.mrb[49].mxu1 }
 0x4f6   : > { %v5381_v42 = vpop.f32.mrb[50].mxu1 }
 0x4f7   : > { %v1680_v15 = vpack.c.bf16 %v5381_v42, %v5380_v5  ;;  %v1555_v55 = vpop.f32.mrb[51].mxu1 }
 0x4f8   : > { %v1679_v47 = vpack.c.bf16 %v1555_v55, %v1552_v26 }
 0x4fa   : > { %5426 = vmatprep.mubr.bf16.mxu0 %v1679_v47  ;;  %v6200_v47 = vld [vmem:[%s6749_s30 + $0x30] sm:$0xff] }
 0x4fb   : > { %5427 = vmatmul.mubr.bf16.vlgmr.msra.gmra.mrb[48].mxu0 %v1680_v15  ;;  %v6199_v15 = vld [vmem:[%s6749_s30 + $0x28] sm:$0xff] }
 0x4fc   : > { %v5384_v41 = vpop.f32.mrb[52].mxu1 }
 0x4fd   : > { %v1568_v30 = vpop.f32.mrb[53].mxu1 }
 0x4fe   : > { %v5385_v57 = vpop.f32.mrb[54].mxu1 }
 0x4ff   : > { %v1682_v12 = vpack.c.bf16 %v5385_v57, %v5384_v41  ;;  %v1571_v46 = vpop.f32.mrb[55].mxu1 }
 0x500   : > { %v1681_v44 = vpack.c.bf16 %v1571_v46, %v1568_v30  ;;  %v6201_v30 = vld [vmem:[%s6749_s30 + $0x38] sm:$0xff] }
 0x502   : > { %5430 = vmatprep.mubr.bf16.mxu0 %v1681_v44  ;;  %v6202_v44 = vld [vmem:[%s6749_s30 + $0x40] sm:$0xff] }
 0x503   : > { %5431 = vmatmul.mubr.bf16.gmra.mrb[52].mxu0 %v1682_v12 }
 0x504   : > { %v5388_v24 = vpop.f32.mrb[56].mxu1 }
 0x505   : > { %v1584_v53 = vpop.f32.mrb[57].mxu1 }
 0x506   : > { %v5389_v52 = vpop.f32.mrb[58].mxu1 }
 0x507   : > { %v1684_v3 = vpack.c.bf16 %v5389_v52, %v5388_v24  ;;  %v1587_v58 = vpop.f32.mrb[59].mxu1 }
 0x508   : > { %v1683_v34 = vpack.c.bf16 %v1587_v58, %v1584_v53 }
 0x50a   : > { %5434 = vmatprep.mubr.bf16.mxu0 %v1683_v34  ;;  %v6204_v34 = vld [vmem:[%s6749_s30 + $0x50] sm:$0xff] }
 0x50b   : > { %5435 = vmatmul.mubr.bf16.gmra.mrb[56].mxu0 %v1684_v3  ;;  %v6203_v3 = vld [vmem:[%s6749_s30 + $0x48] sm:$0xff] }
 0x50c   : > { %v5392_v54 = vpop.f32.mrb[60].mxu1 }
 0x50d   : > { %v1600_v10 = vpop.f32.mrb[61].mxu1 }
 0x50e   : > { %v5393_v36 = vpop.f32.mrb[62].mxu1 }
 0x50f   : > { %v1686_v11 = vpack.c.bf16 %v5393_v36, %v5392_v54  ;;  %v1603_v49 = vpop.f32.mrb[63].mxu1 }
 0x510   : > { %v1685_v17 = vpack.c.bf16 %v1603_v49, %v1600_v10  ;;  %v6205_v10 = vld [vmem:[%s6749_s30 + $0x58] sm:$0xff] }
 0x512   : > { %5438 = vmatprep.mubr.bf16.mxu0 %v1685_v17  ;;  %v6206_v17 = vld [vmem:[%s6749_s30 + $0x60] sm:$0xff] }
 0x513   : > { %5439 = vmatmul.mubr.bf16.gmra.mrb[60].mxu0 %v1686_v11 }
 0x514   : > { %v5396_v7 = vpop.f32.mrb[64].mxu1 }
 0x515   : > { %v1616_v45 = vpop.f32.mrb[65].mxu1 }
 0x516   : > { %v5397_v32 = vpop.f32.mrb[66].mxu1 }
 0x517   : > { %v1688_v1 = vpack.c.bf16 %v5397_v32, %v5396_v7  ;;  %v1619_v48 = vpop.f32.mrb[67].mxu1 }
 0x518   : > { %v1687_v2 = vpack.c.bf16 %v1619_v48, %v1616_v45 }
 0x51a   : > { %5442 = vmatprep.mubr.bf16.mxu0 %v1687_v2  ;;  %v6208_v2 = vld [vmem:[%s6749_s30 + $0x70] sm:$0xff] }
 0x51b   : > { %5443 = vmatmul.mubr.bf16.gmra.mrb[64].mxu0 %v1688_v1  ;;  %v6207_v1 = vld [vmem:[%s6749_s30 + $0x68] sm:$0xff] }
 0x51c   : > { %v5400_v51 = vpop.f32.mrb[68].mxu1 }
 0x51d   : > { %v1632_v37 = vpop.f32.mrb[69].mxu1 }
 0x51e   : > { %v5401_v8 = vpop.f32.mrb[70].mxu1 }
 0x51f   : > { %v1690_v33 = vpack.c.bf16 %v5401_v8, %v5400_v51  ;;  %v1635_v31 = vpop.f32.mrb[71].mxu1 }
 0x520   : > { %v1689_v16 = vpack.c.bf16 %v1635_v31, %v1632_v37  ;;  %v6209_v37 = vld [vmem:[%s6749_s30 + $0x78] sm:$0xff] }
 0x522   : > { %5446 = vmatprep.mubr.bf16.mxu0 %v1689_v16  ;;  %v6210_v16 = vld [vmem:[%s6749_s30 + $0x80] sm:$0xff] }
 0x523   : > { %5447 = vmatmul.mubr.bf16.gmra.mrb[68].mxu0 %v1690_v33 }
 0x524   : > { %v5404_v60 = vpop.f32.mrb[72].mxu1 }
 0x525   : > { %v1648_v61 = vpop.f32.mrb[73].mxu1 }
 0x526   : > { %v5405_v25 = vpop.f32.mrb[74].mxu1 }
 0x527   : > { %v1692_v29 = vpack.c.bf16 %v5405_v25, %v5404_v60  ;;  %v1651_v27 = vpop.f32.mrb[75].mxu1 }
 0x528   : > { %v1691_v0 = vpack.c.bf16 %v1651_v27, %v1648_v61 }
 0x52a   : > { %5450 = vmatprep.mubr.bf16.mxu0 %v1691_v0  ;;  %v6212_v0 = vld [vmem:[%s6749_s30 + $0x90] sm:$0xff] }
 0x52b   : > { %5451 = vmatmul.mubr.bf16.gmra.mrb[72].mxu0 %v1692_v29  ;;  %v6211_v29 = vld [vmem:[%s6749_s30 + $0x88] sm:$0xff] }
 0x52c   : > { %v5408_v23 = vpop.f32.mrb[76].mxu1 }
 0x52d   : > { %v1664_v56 = vpop.f32.mrb[77].mxu1 }
 0x52e   : > { %v5409_v14 = vpop.f32.mrb[78].mxu1 }
 0x52f   : > { %v1694_v13 = vpack.c.bf16 %v5409_v14, %v5408_v23  ;;  %v1667_v19 = vpop.f32.mrb[79].mxu1 }
 0x530   : > { %v1693_v35 = vpack.c.bf16 %v1667_v19, %v1664_v56  ;;  %v6213_v56 = vld [vmem:[%s6749_s30 + $0x98] sm:$0xff] }
 0x532   : > { %5454 = vmatprep.mubr.bf16.mxu0 %v1693_v35 }
 0x533   : > { %5455 = vmatmul.mubr.bf16.gmra.mrb[76].mxu0 %v1694_v13 }
 0x534   : > { %2839 = vmatprep.mubr.bf16.mxu0 %v9462_v50 }
 0x5ce   : > { %v5428_v43 = vpop.f32.mrb[48].mxu0 }
 0x5cf   : > { %v1793_v22 = vpop.f32.mrb[49].mxu0  ;;  %v7326_v38 = vadd.f32 %v6196_v62, %v5428_v43 }
 0x5d0   : > { %v7319_v18 = vadd.f32 %v6194_v63, %v1793_v22  ;;  %v5429_v59 = vpop.f32.mrb[50].mxu0 }
 0x5d1   : > { %v1796_v20 = vpop.f32.mrb[51].mxu0  ;;  %v7330_v9 = vadd.f32 %v6197_v28, %v5429_v59 }
 0x5d2   : > { %v7322_v4 = vadd.f32 %v6195_v39, %v1796_v20  ;;  %1954 = vadd.xlane.f32.xlu0 %v7319_v18 }
 0x5d4   : > { %1956 = vadd.xlane.f32.xlu1 %v7322_v4 }
 0x5d6   : > { %1958 = vadd.xlane.f32.xlu0 %v7326_v38  ;;  %v5432_v6 = vpop.f32.mrb[52].mxu0 }
 0x5d7   : > { %v1809_v40 = vpop.f32.mrb[53].mxu0  ;;  %v7342_v41 = vadd.f32 %v6200_v47, %v5432_v6  ;;  %v5613_v47 = vld [vmem:[#allocation8 + $0x2c] ss:$16 sps:$4 sm:$0xff]  }
 0x5d8   : > { %v7334_v5 = vadd.f32 %v6198_v21, %v1809_v40  ;;  %1960 = vadd.xlane.f32.xlu1 %v7330_v9  ;;  %v5433_v26 = vpop.f32.mrb[54].mxu0  ;;  %v5602_v40 = vld [vmem:[#allocation8] ss:$16 sps:$4 sm:$0xff]   ;;  %v5604_v21 = vld [vmem:[#allocation8 + $0x4] ss:$16 sps:$4 sm:$0xff]  }
 0x5d9   : > { %v1812_v42 = vpop.f32.mrb[55].mxu0  ;;  %v7346_v57 = vadd.f32 %v6201_v30, %v5433_v26  ;;  %v5605_v26 = vld [vmem:[#allocation8 + $0x8] ss:$16 sps:$4 sm:$0xff]   ;;  %2614 = vmatprep.subr.bf16.mxu1 %v5604_v21  ;;  %v5608_v30 = vld [vmem:[#allocation8 + $0x20] ss:$16 sps:$4 sm:$0xff]  }
 0x5da   : > { %v7338_v55 = vadd.f32 %v6199_v15, %v1812_v42  ;;  %1962 = vadd.xlane.f32.xlu0 %v7334_v5  ;;  %v5607_v42 = vld [vmem:[#allocation8 + $0xc] ss:$16 sps:$4 sm:$0xff]   ;;  %v5610_v15 = vld [vmem:[#allocation8 + $0x24] ss:$16 sps:$4 sm:$0xff]   ;;  %2615 = vmatpush1.bf16.msra.mxu1 %v5602_v40 }
 0x5db   : > { %2807 = vmatprep.subr.bf16.mxu0 %v5607_v42  ;;  %2616 = vmatprep.subr.bf16.mxu1 %v5610_v15  ;;  %v5619_v15 = vld [vmem:[#allocation8 + $0x4c] ss:$16 sps:$4 sm:$0xff]  }
 0x5dc   : > { %1964 = vadd.xlane.f32.xlu1 %v7338_v55  ;;  %2808 = vmatpush1.bf16.msra.mxu0 %v5605_v26 }
 0x5dd   : > { %2809 = vmatprep.subr.bf16.mxu0 %v5613_v47  ;;  %v5614_v47 = vld [vmem:[#allocation8 + $0x40] ss:$16 sps:$4 sm:$0xff]  }
 0x5de   : > { %1966 = vadd.xlane.f32.xlu0 %v7342_v41  ;;  %v5436_v12 = vpop.f32.mrb[56].mxu0  ;;  %2617 = vmatpush1.bf16.msra.mxu1 %v5608_v30  ;;  %v5617_v30 = vld [vmem:[#allocation8 + $0x48] ss:$16 sps:$4 sm:$0xff]  }
 0x5df   : > { %v1825_v46 = vpop.f32.mrb[57].mxu0  ;;  %v7358_v54 = vadd.f32 %v6204_v34, %v5436_v12  ;;  %v5611_v12 = vld [vmem:[#allocation8 + $0x28] ss:$16 sps:$4 sm:$0xff]  }
 0x5e0   : > { %v7350_v24 = vadd.f32 %v6202_v44, %v1825_v46  ;;  %1968 = vadd.xlane.f32.xlu1 %v7346_v57  ;;  %v5437_v53 = vpop.f32.mrb[58].mxu0  ;;  %2810 = vmatpush1.bf16.msra.mxu0 %v5611_v12 }
 0x5e1   : > { %v1828_v52 = vpop.f32.mrb[59].mxu0  ;;  %v7362_v36 = vadd.f32 %v6205_v10, %v5437_v53  ;;  %2811 = vmatprep.subr.bf16.mxu0 %v5619_v15 }
 0x5e2   : > { %v7354_v58 = vadd.f32 %v6203_v3, %v1828_v52  ;;  %1970 = vadd.xlane.f32.xlu0 %v7350_v24 }
 0x5e4   : > { %1972 = vadd.xlane.f32.xlu1 %v7354_v58  ;;  %2812 = vmatpush1.bf16.msra.mxu0 %v5617_v30 }
 0x5e6   : > { %1974 = vadd.xlane.f32.xlu0 %v7358_v54  ;;  %v5440_v11 = vpop.f32.mrb[60].mxu0 }
 0x5e7   : > { %v1841_v49 = vpop.f32.mrb[61].mxu0  ;;  %v7374_v51 = vadd.f32 %v6208_v2, %v5440_v11 }
 0x5e8   : > { %v7366_v7 = vadd.f32 %v6206_v17, %v1841_v49  ;;  %1976 = vadd.xlane.f32.xlu1 %v7362_v36  ;;  %v5441_v45 = vpop.f32.mrb[62].mxu0 }
 0x5e9   : > { %v1844_v32 = vpop.f32.mrb[63].mxu0  ;;  %v7378_v8 = vadd.f32 %v6209_v37, %v5441_v45  ;;  %v6215_v37 = vld [vmem:[%s6749_s30 + $0xa8] sm:$0xff] }
 0x5ea   : > { %v7370_v48 = vadd.f32 %v6207_v1, %v1844_v32  ;;  %1978 = vadd.xlane.f32.xlu0 %v7366_v7  ;;  %v6214_v1 = vld [vmem:[%s6749_s30 + $0xa0] sm:$0xff] }
 0x5ec   : > { %1980 = vadd.xlane.f32.xlu1 %v7370_v48 }
 0x5ee   : > { %1982 = vadd.xlane.f32.xlu0 %v7374_v51  ;;  %v5444_v33 = vpop.f32.mrb[64].mxu0 }
 0x5ef   : > { %v1857_v31 = vpop.f32.mrb[65].mxu0  ;;  %v7390_v23 = vadd.f32 %v6212_v0, %v5444_v33  ;;  %v6216_v0 = vld [vmem:[%s6749_s30 + $0xb0] sm:$0xff] }
 0x5f0   : > { %v7382_v60 = vadd.f32 %v6210_v16, %v1857_v31  ;;  %1984 = vadd.xlane.f32.xlu1 %v7378_v8  ;;  %v5445_v61 = vpop.f32.mrb[66].mxu0 }
 0x5f1   : > { %v1860_v25 = vpop.f32.mrb[67].mxu0  ;;  %v7394_v14 = vadd.f32 %v6213_v56, %v5445_v61 }
 0x5f2   : > { %v7386_v27 = vadd.f32 %v6211_v29, %v1860_v25  ;;  %1986 = vadd.xlane.f32.xlu0 %v7382_v60 }
 0x5f4   : > { %1988 = vadd.xlane.f32.xlu1 %v7386_v27 }
 0x5f6   : > { %1990 = vadd.xlane.f32.xlu0 %v7390_v23  ;;  %v5448_v13 = vpop.f32.mrb[68].mxu0 }
 0x5f7   : > { %v1873_v19 = vpop.f32.mrb[69].mxu0  ;;  %v7443_v56 = vadd.f32 %v6216_v0, %v5448_v13 }
 0x5f8   : > { %1992 = vadd.xlane.f32.xlu1 %v7394_v14  ;;  %v5449_v35 = vpop.f32.mrb[70].mxu0  ;;  %v7425_v2 = vadd.f32 %v6214_v1, %v1873_v19 }
 0x5f9   : > { %v1876_v43 = vpop.f32.mrb[71].mxu0 }
 0x5fa   : > { %v7431_v33 = vadd.f32 %v6215_v37, %v1876_v43  ;;  %v6217_v43 = vld [vmem:[%s6749_s30 + $0xb8] sm:$0xff] }
 0x5fb   : > { %v7449_v40 = vadd.f32 %v6217_v43, %v5449_v35  ;;  %v5631_v37 = vld [vmem:[#allocation8 + $0x8c] ss:$16 sps:$4 sm:$0xff]   ;;  %v5634_v43 = vld [vmem:[#allocation8 + $0xa4] ss:$16 sps:$4 sm:$0xff]  }
 0x5fe   : > { %v7398_v22 = vpop.f32.mrb[72].mxu0 }
 0x5ff   : > { %v7400_v63 = vpop.f32.mrb[73].mxu0 }
 0x600   : > { %v7402_v59 = vpop.f32.mrb[74].mxu0 }
 0x601   : > { %v7404_v20 = vpop.f32.mrb[75].mxu0 }
 0x606   : > { %v7406_v39 = vpop.f32.mrb[76].mxu0 }
 0x607   : > { %v7408_v62 = vpop.f32.mrb[77].mxu0 }
 0x608   : > { %v7410_v28 = vpop.f32.mrb[78].mxu0 }
 0x609   : > { %v7412_v6 = vpop.f32.mrb[79].mxu0 }
 0x65f   : > { %v1955_v46 = vpop.xlane.xlu0 %1954 }
 0x660   : > { %v2019_v44 = vmul.f32 0.0078125, %v1955_v46  ;;  %v6218_v46 = vld [vmem:[%s6749_s30 + $0xc0] sm:$0xff] }
 0x661   : > { %v1957_v53 = vpop.xlane.xlu1 %1956 }
 0x662   : > { %v7415_v52 = vsub.f32 %v7319_v18, %v2019_v44  ;;  %v2020_v3 = vmul.f32 0.0078125, %v1957_v53  ;;  %v7462_v44 = vadd.f32 %v6218_v46, %v7400_v63 }
 0x663   : > { %v1959_v34 = vpop.xlane.xlu0 %1958 }
 0x664   : > { %v7418_v10 = vsub.f32 %v7322_v4, %v2020_v3  ;;  %v2021_v11 = vmul.f32 0.0078125, %v1959_v34  ;;  %v2083_v49 = vmul.f32 %v7415_v52, %v7415_v52  ;;  %v5622_v3 = vld [vmem:[#allocation8 + $0x64] ss:$16 sps:$4 sm:$0xff]   ;;  %v5625_v34 = vld [vmem:[#allocation8 + $0x6c] ss:$16 sps:$4 sm:$0xff]  }
 0x665   : > { %v1961_v17 = vpop.xlane.xlu1 %1960  ;;  %2813 = vmatprep.subr.bf16.mxu0 %v5625_v34  ;;  %v6222_v34 = vld [vmem:[%s6749_s30 + $0xe0] sm:$0xff] }
 0x666   : > { %v2022_v45 = vmul.f32 0.0078125, %v1961_v17  ;;  %2115 = vadd.xlane.f32.xlu0 %v2083_v49  ;;  %v2084_v32 = vmul.f32 %v7418_v10, %v7418_v10  ;;  %v7428_v18 = vsub.f32 %v7326_v38, %v2021_v11  ;;  %v5620_v49 = vld [vmem:[#allocation8 + $0x60] ss:$16 sps:$4 sm:$0xff]   ;;  %v5623_v17 = vld [vmem:[#allocation8 + $0x68] ss:$16 sps:$4 sm:$0xff]  }
 0x667   : > { %v1963_v4 = vpop.xlane.xlu0 %1962  ;;  %2814 = vmatpush1.bf16.msra.mxu0 %v5623_v17  ;;  %v5646_v17 = vld [vmem:[#allocation8 + $0xe4] ss:$16 sps:$4 sm:$0xff]  }
 0x668   : > { %2117 = vadd.xlane.f32.xlu1 %v2084_v32  ;;  %v7434_v31 = vsub.f32 %v7330_v9, %v2022_v45  ;;  %v2023_v61 = vmul.f32 0.0078125, %v1963_v4  ;;  %v2085_v25 = vmul.f32 %v7428_v18, %v7428_v18  ;;  %v6219_v45 = vld [vmem:[%s6749_s30 + $0xc8] sm:$0xff]  ;;  %v5628_v4 = vld [vmem:[#allocation8 + $0x84] ss:$16 sps:$4 sm:$0xff]   ;;  %2815 = vmatprep.subr.bf16.mxu0 %v5631_v37 }
 0x669   : > { %v1965_v16 = vpop.xlane.xlu1 %1964  ;;  %v7469_v32 = vadd.f32 %v6219_v45, %v7404_v20  ;;  %v5649_v45 = vld [vmem:[#allocation8 + $0xec] ss:$16 sps:$4 sm:$0xff]  }
 0x66a   : > { %1994 = vadd.xlane.f32.xlu0 %v7425_v2  ;;  %v2024_v38 = vmul.f32 0.0078125, %v1965_v16  ;;  %v2086_v29 = vmul.f32 %v7434_v31, %v7434_v31  ;;  %v7446_v9 = vsub.f32 %v7334_v5, %v2023_v61  ;;  %v5616_v5 = vld [vmem:[#allocation8 + $0x44] ss:$16 sps:$4 sm:$0xff]   ;;  %v5626_v16 = vld [vmem:[#allocation8 + $0x80] ss:$16 sps:$4 sm:$0xff]   ;;  %v6223_v37 = vld [vmem:[%s6749_s30 + $0xe8] sm:$0xff] }
 0x66b   : > { %v1967_v19 = vpop.xlane.xlu0 %1966  ;;  %2618 = vmatprep.subr.bf16.mxu1 %v5616_v5  ;;  %v5629_v61 = vld [vmem:[#allocation8 + $0x88] ss:$16 sps:$4 sm:$0xff]  }
 0x66c   : > { %1996 = vadd.xlane.f32.xlu1 %v7431_v33  ;;  %v7452_v21 = vsub.f32 %v7338_v55, %v2024_v38  ;;  %v2025_v42 = vmul.f32 0.0078125, %v1967_v19  ;;  %v2087_v13 = vmul.f32 %v7446_v9, %v7446_v9  ;;  %2619 = vmatpush1.bf16.msra.mxu1 %v5614_v47  ;;  %v6221_v5 = vld [vmem:[%s6749_s30 + $0xd8] sm:$0xff] }
 0x66d   : > { %v1969_v26 = vpop.xlane.xlu1 %1968  ;;  %2620 = vmatprep.subr.bf16.mxu1 %v5622_v3  ;;  %2816 = vmatpush1.bf16.msra.mxu0 %v5629_v61  ;;  %v7489_v15 = vadd.f32 %v6221_v5, %v7402_v59  ;;  %v5643_v59 = vld [vmem:[#allocation8 + $0xcc] ss:$16 sps:$4 sm:$0xff]  }
 0x66e   : > { %2119 = vadd.xlane.f32.xlu0 %v2085_v25  ;;  %v2026_v12 = vmul.f32 0.0078125, %v1969_v26  ;;  %v2088_v55 = vmul.f32 %v7452_v21, %v7452_v21  ;;  %v7465_v53 = vsub.f32 %v7342_v41, %v2025_v42  ;;  %v5637_v26 = vld [vmem:[#allocation8 + $0xac] ss:$16 sps:$4 sm:$0xff]   ;;  %v5632_v42 = vld [vmem:[#allocation8 + $0xa0] ss:$16 sps:$4 sm:$0xff]  }
 0x66f   : > { %v1971_v35 = vpop.xlane.xlu0 %1970  ;;  %2817 = vmatprep.subr.bf16.mxu0 %v5637_v26 }
 0x670   : > { %2121 = vadd.xlane.f32.xlu1 %v2086_v29  ;;  %v7472_v1 = vsub.f32 %v7346_v57, %v2026_v12  ;;  %2621 = vmatpush1.bf16.msra.mxu1 %v5620_v49  ;;  %v2027_v41 = vmul.f32 0.0078125, %v1971_v35  ;;  %v2089_v63 = vmul.f32 %v7465_v53, %v7465_v53  ;;  %v6220_v29 = vld [vmem:[%s6749_s30 + $0xd0] sm:$0xff] }
 0x671   : > { %v1973_v11 = vpop.xlane.xlu1 %1972  ;;  %2622 = vmatprep.subr.bf16.mxu1 %v5628_v4  ;;  %v7482_v0 = vadd.f32 %v6220_v29, %v7398_v22  ;;  %v5640_v12 = vld [vmem:[#allocation8 + $0xc4] ss:$16 sps:$4 sm:$0xff]   ;;  %v5638_v35 = vld [vmem:[#allocation8 + $0xc0] ss:$16 sps:$4 sm:$0xff]   ;;  %v5647_v4 = vld [vmem:[#allocation8 + $0xe8] ss:$16 sps:$4 sm:$0xff]  }
 0x672   : > { %1998 = vadd.xlane.f32.xlu0 %v7443_v56  ;;  %v2028_v57 = vmul.f32 0.0078125, %v1973_v11  ;;  %v2090_v25 = vmul.f32 %v7472_v1, %v7472_v1  ;;  %v7485_v19 = vsub.f32 %v7350_v24, %v2027_v41  ;;  %v7502_v11 = vadd.f32 %v6222_v34, %v7408_v62 }
 0x673   : > { %v1975_v20 = vpop.xlane.xlu0 %1974 }
 0x674   : > { %2000 = vadd.xlane.f32.xlu1 %v7449_v40  ;;  %2623 = vmatpush1.bf16.msra.mxu1 %v5626_v16  ;;  %v7492_v47 = vsub.f32 %v7354_v58, %v2028_v57  ;;  %v2029_v24 = vmul.f32 0.0078125, %v1975_v20  ;;  %v2091_v30 = vmul.f32 %v7485_v19, %v7485_v19  ;;  %v5641_v58 = vld [vmem:[#allocation8 + $0xc8] ss:$16 sps:$4 sm:$0xff]   ;;  %v7509_v20 = vadd.f32 %v6223_v37, %v7412_v6 }
 0x675   : > { %v1977_v38 = vpop.xlane.xlu1 %1976  ;;  %2624 = vmatprep.subr.bf16.mxu1 %v5634_v43 }
 0x676   : > { %2123 = vadd.xlane.f32.xlu0 %v2087_v13  ;;  %v5635_v13 = vld [vmem:[#allocation8 + $0xa8] ss:$16 sps:$4 sm:$0xff]   ;;  %v2030_v46 = vmul.f32 0.0078125, %v1977_v38  ;;  %v2092_v3 = vmul.f32 %v7492_v47, %v7492_v47  ;;  %v7505_v49 = vsub.f32 %v7358_v54, %v2029_v24 }
 0x677   : > { %v1979_v22 = vpop.xlane.xlu0 %1978  ;;  %2818 = vmatpush1.bf16.msra.mxu0 %v5635_v13 }
 0x678   : > { %2125 = vadd.xlane.f32.xlu1 %v2088_v55  ;;  %2625 = vmatpush1.bf16.msra.mxu1 %v5632_v42  ;;  %v7512_v16 = vsub.f32 %v7362_v36, %v2030_v46  ;;  %v2031_v62 = vmul.f32 0.0078125, %v1979_v22  ;;  %v2093_v61 = vmul.f32 %v7505_v49, %v7505_v49  ;;  %v6225_v42 = vld [vmem:[%s6749_s30 + $0xf8] sm:$0xff] }
 0x679   : > { %v1981_v55 = vpop.xlane.xlu1 %1980  ;;  %2626 = vmatprep.subr.bf16.mxu1 %v5640_v12  ;;  %2819 = vmatprep.subr.bf16.mxu0 %v5643_v59  ;;  %v7529_v13 = vadd.f32 %v6225_v42, %v7410_v28 }
 0x67a   : > { %2002 = vadd.xlane.f32.xlu0 %v7462_v44  ;;  %v2032_v57 = vmul.f32 0.0078125, %v1981_v55  ;;  %v2094_v36 = vmul.f32 %v7512_v16, %v7512_v16  ;;  %v7525_v29 = vsub.f32 %v7366_v7, %v2031_v62 }
 0x67b   : > { %2820 = vmatpush1.bf16.msra.mxu0 %v5641_v58  ;;  %v1983_v41 = vpop.xlane.xlu0 %1982 }
 0x67c   : > { %2004 = vadd.xlane.f32.xlu1 %v7469_v32  ;;  %2627 = vmatpush1.bf16.msra.mxu1 %v5638_v35  ;;  %v2033_v43 = vmul.f32 0.0078125, %v1983_v41  ;;  %v7532_v5 = vsub.f32 %v7370_v48, %v2032_v57  ;;  %v2095_v7 = vmul.f32 %v7525_v29, %v7525_v29 }
 0x67d   : > { %2628 = vmatprep.subr.bf16.mxu1 %v5646_v17  ;;  %v1985_v54 = vpop.xlane.xlu1 %1984  ;;  %2821 = vmatprep.subr.bf16.mxu0 %v5649_v45 }
 0x67e   : > { %2127 = vadd.xlane.f32.xlu0 %v2089_v63  ;;  %v5644_v63 = vld [vmem:[#allocation8 + $0xe0] ss:$16 sps:$4 sm:$0xff]   ;;  %v2034_v22 = vmul.f32 0.0078125, %v1985_v54  ;;  %v7536_v24 = vsub.f32 %v7374_v51, %v2033_v43  ;;  %v2096_v48 = vmul.f32 %v7532_v5, %v7532_v5 }
 0x67f   : > { %2822 = vmatpush1.bf16.msra.mxu0 %v5647_v4  ;;  %v1987_v6 = vpop.xlane.xlu0 %1986 }
 0x680   : > { %2129 = vadd.xlane.f32.xlu1 %v2090_v25  ;;  %2629 = vmatpush1.bf16.msra.mxu1 %v5644_v63  ;;  %v6224_v25 = vld [vmem:[%s6749_s30 + $0xf0] sm:$0xff]  ;;  %v7542_v12 = vsub.f32 %v7378_v8, %v2034_v22  ;;  %v2097_v35 = vmul.f32 %v7536_v24, %v7536_v24  ;;  %s9525_s30 = sld [smem:[#allocation65_spill]] }
 0x681   : > { %v7522_v38 = vadd.f32 %v6224_v25, %v7406_v39  ;;  %v1989_v26 = vpop.xlane.xlu1 %1988  ;;  %v2035_v39 = vmul.f32 0.0078125, %v1987_v6 }
 0x682   : > { %2006 = vadd.xlane.f32.xlu0 %v7482_v0  ;;  %v2036_v28 = vmul.f32 0.0078125, %v1989_v26  ;;  %v2098_v8 = vmul.f32 %v7542_v12, %v7542_v12 }
 0x683   : > { %v7547_v55 = vsub.f32 %v7382_v60, %v2035_v39 }
 0x684   : > { %2008 = vadd.xlane.f32.xlu1 %v7489_v15  ;;  %v7552_v58 = vsub.f32 %v7386_v27, %v2036_v28 }
 0x685   : > { %v1993_v59 = vpop.xlane.xlu1 %1992  ;;  %v2099_v60 = vmul.f32 %v7547_v55, %v7547_v55 }
 0x686   : > { %2131 = vadd.xlane.f32.xlu0 %v2091_v30  ;;  %v1991_v30 = vpop.xlane.xlu0 %1990  ;;  %v2038_v46 = vmul.f32 0.0078125, %v1993_v59  ;;  %v2100_v27 = vmul.f32 %v7552_v58, %v7552_v58 }
 0x687   : > { %v2037_v51 = vmul.f32 0.0078125, %v1991_v30 }
 0x688   : > { %2133 = vadd.xlane.f32.xlu1 %v2092_v3  ;;  %v7562_v34 = vsub.f32 %v7394_v14, %v2038_v46 }
 0x689   : > { %v7557_v3 = vsub.f32 %v7390_v23, %v2037_v51 }
 0x68a   : > { %2010 = vadd.xlane.f32.xlu0 %v7502_v11  ;;  %v2102_v23 = vmul.f32 %v7562_v34, %v7562_v34 }
 0x68b   : > { %v2101_v17 = vmul.f32 %v7557_v3, %v7557_v3 }
 0x68c   : > { %2012 = vadd.xlane.f32.xlu1 %v7509_v20 }
 0x68e   : > { %2135 = vadd.xlane.f32.xlu0 %v2093_v61 }
 0x690   : > { %2137 = vadd.xlane.f32.xlu1 %v2094_v36 }
 0x692   : > { %2014 = vadd.xlane.f32.xlu0 %v7522_v38 }
 0x694   : > { %2016 = vadd.xlane.f32.xlu1 %v7529_v13 }
 0x696   : > { %2139 = vadd.xlane.f32.xlu0 %v2095_v7 }
 0x698   : > { %2141 = vadd.xlane.f32.xlu1 %v2096_v48 }
 0x69a   : > { %2143 = vadd.xlane.f32.xlu0 %v2097_v35 }
 0x69c   : > { %2145 = vadd.xlane.f32.xlu1 %v2098_v8 }
 0x69e   : > { %2147 = vadd.xlane.f32.xlu0 %v2099_v60 }
 0x6a0   : > { %2149 = vadd.xlane.f32.xlu1 %v2100_v27 }
 0x6a2   : > { %2151 = vadd.xlane.f32.xlu0 %v2101_v17 }
 0x6a4   : > { %2153 = vadd.xlane.f32.xlu1 %v2102_v23 }
 0x6f3   : > { %v2116_v45 = vpop.xlane.xlu0 %2115 }
 0x6f4   : > { %v2179_v41 = vmul.f32 0.0078125, %v2116_v45 }
 0x6f5   : > { %v2118_v63 = vpop.xlane.xlu1 %2117 }
 0x6f6   : > { %v2211_v4 = vadd.f32 1e-05, %v2179_v41  ;;  %v2180_v37 = vmul.f32 0.0078125, %v2118_v63 }
 0x6f7   : > { %v1995_v14 = vpop.xlane.xlu0 %1994 }
 0x6f8   : > { %5810 = vrsqrt.f32 %v2211_v4  ;;  %v2212_v54 = vadd.f32 1e-05, %v2180_v37  ;;  %v2039_v62 = vmul.f32 0.0078125, %v1995_v14 }
 0x6f9   : > { %v1997_v61 = vpop.xlane.xlu1 %1996 }
 0x6fa   : > { %5812 = vrsqrt.f32 %v2212_v54  ;;  %v7571_v57 = vsub.f32 %v7425_v2, %v2039_v62  ;;  %v2040_v36 = vmul.f32 0.0078125, %v1997_v61 }
 0x6fb   : > { %v2120_v6 = vpop.xlane.xlu0 %2119 }
 0x6fc   : > { %v7574_v25 = vsub.f32 %v7431_v33, %v2040_v36  ;;  %v2181_v43 = vmul.f32 0.0078125, %v2120_v6  ;;  %v2103_v26 = vmul.f32 %v7571_v57, %v7571_v57  ;;  %v7583_v33 = vld [vmem:[%s9345_s5] ss:$0 sm:$0xff] }
 0x6fd   : > { %v2122_v42 = vpop.xlane.xlu1 %2121 }
 0x6fe   : > { %v2213_v22 = vadd.f32 1e-05, %v2181_v43  ;;  %v2182_v39 = vmul.f32 0.0078125, %v2122_v42  ;;  %2155 = vadd.xlane.f32.xlu0 %v2103_v26  ;;  %v2104_v7 = vmul.f32 %v7574_v25, %v7574_v25 }
 0x6ff   : > { %v1999_v30 = vpop.xlane.xlu0 %1998 }
 0x700   : > { %5814 = vrsqrt.f32 %v2213_v22  ;;  %v2214_v2 = vadd.f32 1e-05, %v2182_v39  ;;  %v2041_v28 = vmul.f32 0.0078125, %v1999_v30  ;;  %2157 = vadd.xlane.f32.xlu1 %v2104_v7 }
 0x701   : > { %v2001_v48 = vpop.xlane.xlu1 %2000 }
 0x702   : > { %v5811_v59 = vpop.eup %5810  ;;  %5816 = vrsqrt.f32 %v2214_v2  ;;  %v7586_v51 = vsub.f32 %v7443_v56, %v2041_v28  ;;  %v2042_v35 = vmul.f32 0.0078125, %v2001_v48 }
 0x703   : > { %v2275_v46 = vmul.f32 %v5811_v59, %v7415_v52  ;;  %v2124_v8 = vpop.xlane.xlu0 %2123 }
 0x704   : > { %v5813_v60 = vpop.eup %5812  ;;  %v7590_v27 = vsub.f32 %v7449_v40, %v2042_v35  ;;  %v2183_v17 = vmul.f32 0.0078125, %v2124_v8  ;;  %v2105_v23 = vmul.f32 %v7586_v51, %v7586_v51  ;;  %v7601_v40 = vld [vmem:[%s9346_s6] ss:$0 sm:$0xff] }
 0x705   : > { %v2313_v45 = vmul.f32 %v7583_v33, %v2275_v46  ;;  %v2276_v41 = vmul.f32 %v5813_v60, %v7418_v10  ;;  %v2126_v63 = vpop.xlane.xlu1 %2125 }
 0x706   : > { %v2215_v4 = vadd.f32 1e-05, %v2183_v17  ;;  %v2184_v56 = vmul.f32 0.0078125, %v2126_v63  ;;  %2159 = vadd.xlane.f32.xlu0 %v2105_v23  ;;  %v2106_v52 = vmul.f32 %v7590_v27, %v7590_v27 }
 0x707   : > { %v2314_v37 = vmul.f32 %v7583_v33, %v2276_v41  ;;  %v2003_v14 = vpop.xlane.xlu0 %2002  ;;  %v7605_v61 = vadd.f32 %v7601_v40, %v2313_v45 }
 0x708   : > { %5818 = vrsqrt.f32 %v2215_v4  ;;  %v2216_v54 = vadd.f32 1e-05, %v2184_v56  ;;  %v2043_v62 = vmul.f32 0.0078125, %v2003_v14  ;;  %2161 = vadd.xlane.f32.xlu1 %v2106_v52 }
 0x709   : > { %v2005_v10 = vpop.xlane.xlu1 %2004  ;;  %9463 = vst [vmem:[#allocation24_spill] sm:$0xff] %v7605_v61  ;;  %v7608_v36 = vadd.f32 %v7601_v40, %v2314_v37 }
 0x70a   : > { %v5815_v6 = vpop.eup %5814  ;;  %5820 = vrsqrt.f32 %v2216_v54  ;;  %v7611_v43 = vsub.f32 %v7462_v44, %v2043_v62  ;;  %v2044_v26 = vmul.f32 0.0078125, %v2005_v10 }
 0x70b   : > { %9464 = vst [vmem:[#allocation25_spill] sm:$0xff] %v7608_v36  ;;  %v2128_v42 = vpop.xlane.xlu0 %2127  ;;  %v2385_v22 = vpack.c.bf16 %v7608_v36, %v7605_v61  ;;  %v2277_v39 = vmul.f32 %v5815_v6, %v7428_v18 }
 0x70c   : > { %v5817_v7 = vpop.eup %5816  ;;  %v7617_v30 = vsub.f32 %v7469_v32, %v2044_v26  ;;  %v2185_v2 = vmul.f32 0.0078125, %v2128_v42  ;;  %v2107_v28 = vmul.f32 %v7611_v43, %v7611_v43 }
 0x70d   : > { %2647 = vmatmul.mubr.bf16.vlgmr.msra.gmra.mrb[80].mxu1 %v2385_v22  ;;  %v2130_v48 = vpop.xlane.xlu1 %2129  ;;  %2840 = vmatmul.mubr.bf16.vlgmr.msra.gmra.mrb[80].mxu0 %v2385_v22  ;;  %v2278_v44 = vmul.f32 %v5817_v7, %v7434_v31  ;;  %v2315_v59 = vmul.f32 %v7583_v33, %v2277_v39 }
 0x70e   : > { %v2217_v35 = vadd.f32 1e-05, %v2185_v2  ;;  %v2186_v46 = vmul.f32 0.0078125, %v2130_v48  ;;  %2163 = vadd.xlane.f32.xlu0 %v2107_v28  ;;  %v2108_v18 = vmul.f32 %v7617_v30, %v7617_v30  ;;  %2656 = vmatprep.mubr.bf16.mxu1 %v9462_v50 }
 0x70f   : > { %v2007_v32 = vpop.xlane.xlu0 %2006  ;;  %2849 = vmatprep.mubr.bf16.mxu0 %v9462_v50  ;;  %v2316_v8 = vmul.f32 %v7583_v33, %v2278_v44  ;;  %v7629_v23 = vadd.f32 %v7601_v40, %v2315_v59 }
 0x710   : > { %5822 = vrsqrt.f32 %v2217_v35  ;;  %v2218_v60 = vadd.f32 1e-05, %v2186_v46  ;;  %v2045_v17 = vmul.f32 0.0078125, %v2007_v32  ;;  %2165 = vadd.xlane.f32.xlu1 %v2108_v18 }
 0x711   : > { %v2009_v31 = vpop.xlane.xlu1 %2008  ;;  %9465 = vst [vmem:[#allocation26_spill] sm:$0xff] %v7629_v23  ;;  %v7632_v45 = vadd.f32 %v7601_v40, %v2316_v8 }
 0x712   : > { %v5819_v41 = vpop.eup %5818  ;;  %5824 = vrsqrt.f32 %v2218_v60  ;;  %v7635_v63 = vsub.f32 %v7482_v0, %v2045_v17  ;;  %v2046_v4 = vmul.f32 0.0078125, %v2009_v31 }
 0x713   : > { %9466 = vst [vmem:[#allocation27_spill] sm:$0xff] %v7632_v45  ;;  %v2132_v56 = vpop.xlane.xlu0 %2131  ;;  %v2386_v52 = vpack.c.bf16 %v7632_v45, %v7629_v23  ;;  %v2279_v37 = vmul.f32 %v5819_v41, %v7446_v9 }
 0x714   : > { %v5821_v14 = vpop.eup %5820  ;;  %v7641_v54 = vsub.f32 %v7489_v15, %v2046_v4  ;;  %v2187_v62 = vmul.f32 0.0078125, %v2132_v56  ;;  %v2109_v10 = vmul.f32 %v7635_v63, %v7635_v63 }
 0x715   : > { %2657 = vmatmul.mubr.bf16.gmra.mrb[84].mxu1 %v2386_v52  ;;  %v2134_v6 = vpop.xlane.xlu1 %2133  ;;  %2850 = vmatmul.mubr.bf16.gmra.mrb[84].mxu0 %v2386_v52  ;;  %v2280_v0 = vmul.f32 %v5821_v14, %v7452_v21  ;;  %v2317_v26 = vmul.f32 %v7583_v33, %v2279_v37 }
 0x716   : > { %v2219_v42 = vadd.f32 1e-05, %v2187_v62  ;;  %v2188_v22 = vmul.f32 0.0078125, %v2134_v6  ;;  %2167 = vadd.xlane.f32.xlu0 %v2109_v10  ;;  %v2110_v9 = vmul.f32 %v7641_v54, %v7641_v54  ;;  %2666 = vmatprep.mubr.bf16.mxu1 %v9462_v50 }
 0x717   : > { %v2011_v15 = vpop.xlane.xlu0 %2010  ;;  %2859 = vmatprep.mubr.bf16.mxu0 %v9462_v50  ;;  %v2318_v39 = vmul.f32 %v7583_v33, %v2280_v0  ;;  %v7653_v28 = vadd.f32 %v7601_v40, %v2317_v26 }
 0x718   : > { %5826 = vrsqrt.f32 %v2219_v42  ;;  %v2220_v7 = vadd.f32 1e-05, %v2188_v22  ;;  %v2047_v2 = vmul.f32 0.0078125, %v2011_v15  ;;  %2169 = vadd.xlane.f32.xlu1 %v2110_v9 }
 0x719   : > { %v2013_v21 = vpop.xlane.xlu1 %2012  ;;  %9467 = vst [vmem:[#allocation19_spill] sm:$0xff] %v7653_v28  ;;  %v7656_v48 = vadd.f32 %v7601_v40, %v2318_v39 }
 0x71a   : > { %v5823_v44 = vpop.eup %5822  ;;  %5828 = vrsqrt.f32 %v2220_v7  ;;  %v7659_v59 = vsub.f32 %v7502_v11, %v2047_v2  ;;  %v2048_v35 = vmul.f32 0.0078125, %v2013_v21 }
 0x71b   : > { %9468 = vst [vmem:[#allocation18_spill] sm:$0xff] %v7656_v48  ;;  %v2136_v46 = vpop.xlane.xlu0 %2135  ;;  %v2387_v18 = vpack.c.bf16 %v7656_v48, %v7653_v28  ;;  %v2281_v32 = vmul.f32 %v5823_v44, %v7465_v53 }
 0x71c   : > { %v5825_v8 = vpop.eup %5824  ;;  %v7665_v60 = vsub.f32 %v7509_v20, %v2048_v35  ;;  %v2189_v17 = vmul.f32 0.0078125, %v2136_v46  ;;  %v2111_v31 = vmul.f32 %v7659_v59, %v7659_v59 }
 0x71d   : > { %2667 = vmatmul.mubr.bf16.gmra.mrb[88].mxu1 %v2387_v18  ;;  %2860 = vmatmul.mubr.bf16.gmra.mrb[88].mxu0 %v2387_v18  ;;  %v2138_v41 = vpop.xlane.xlu1 %2137  ;;  %v2282_v11 = vmul.f32 %v5825_v8, %v7472_v1  ;;  %v2319_v4 = vmul.f32 %v7583_v33, %v2281_v32 }
 0x71e   : > { %v2221_v56 = vadd.f32 1e-05, %v2189_v17  ;;  %v2190_v52 = vmul.f32 0.0078125, %v2138_v41  ;;  %2171 = vadd.xlane.f32.xlu0 %v2111_v31  ;;  %v2112_v53 = vmul.f32 %v7665_v60, %v7665_v60  ;;  %2676 = vmatprep.mubr.bf16.mxu1 %v9462_v50 }
 0x71f   : > { %v2015_v20 = vpop.xlane.xlu0 %2014  ;;  %2869 = vmatprep.mubr.bf16.mxu0 %v9462_v50  ;;  %v2320_v37 = vmul.f32 %v7583_v33, %v2282_v11  ;;  %v7677_v10 = vadd.f32 %v7601_v40, %v2319_v4 }
 0x720   : > { %5830 = vrsqrt.f32 %v2221_v56  ;;  %v2222_v14 = vadd.f32 1e-05, %v2190_v52  ;;  %v2049_v62 = vmul.f32 0.0078125, %v2015_v20  ;;  %2173 = vadd.xlane.f32.xlu1 %v2112_v53 }
 0x721   : > { %v2017_v1 = vpop.xlane.xlu1 %2016  ;;  %9469 = vst [vmem:[#allocation21_spill] sm:$0xff] %v7677_v10  ;;  %v7680_v6 = vadd.f32 %v7601_v40, %v2320_v37 }
 0x722   : > { %v5827_v0 = vpop.eup %5826  ;;  %5832 = vrsqrt.f32 %v2222_v14  ;;  %v7683_v26 = vsub.f32 %v7522_v38, %v2049_v62  ;;  %v2050_v42 = vmul.f32 0.0078125, %v2017_v1 }
 0x723   : > { %9470 = vst [vmem:[#allocation20_spill] sm:$0xff] %v7680_v6  ;;  %v2140_v22 = vpop.xlane.xlu0 %2139  ;;  %v2388_v9 = vpack.c.bf16 %v7680_v6, %v7677_v10  ;;  %v2283_v15 = vmul.f32 %v5827_v0, %v7485_v19 }
 0x724   : > { %v5829_v39 = vpop.eup %5828  ;;  %v7689_v7 = vsub.f32 %v7529_v13, %v2050_v42  ;;  %v2191_v2 = vmul.f32 0.0078125, %v2140_v22  ;;  %v2113_v21 = vmul.f32 %v7683_v26, %v7683_v26 }
 0x725   : > { %2677 = vmatmul.mubr.bf16.gmra.mrb[92].mxu1 %v2388_v9  ;;  %2870 = vmatmul.mubr.bf16.gmra.mrb[92].mxu0 %v2388_v9  ;;  %v2142_v44 = vpop.xlane.xlu1 %2141  ;;  %v2284_v38 = vmul.f32 %v5829_v39, %v7492_v47  ;;  %v2321_v35 = vmul.f32 %v7583_v33, %v2283_v15 }
 0x726   : > { %v2223_v46 = vadd.f32 1e-05, %v2191_v2  ;;  %v2192_v18 = vmul.f32 0.0078125, %v2142_v44  ;;  %2175 = vadd.xlane.f32.xlu0 %v2113_v21  ;;  %v2114_v19 = vmul.f32 %v7689_v7, %v7689_v7  ;;  %2686 = vmatprep.mubr.bf16.mxu1 %v9462_v50 }
 0x727   : > { %v2144_v13 = vpop.xlane.xlu0 %2143  ;;  %2879 = vmatprep.mubr.bf16.mxu0 %v9462_v50  ;;  %v2322_v32 = vmul.f32 %v7583_v33, %v2284_v38  ;;  %v7701_v31 = vadd.f32 %v7601_v40, %v2321_v35 }
 0x728   : > { %5834 = vrsqrt.f32 %v2223_v46  ;;  %v2224_v8 = vadd.f32 1e-05, %v2192_v18  ;;  %v2193_v17 = vmul.f32 0.0078125, %v2144_v13  ;;  %2177 = vadd.xlane.f32.xlu1 %v2114_v19 }
 0x729   : > { %v2146_v47 = vpop.xlane.xlu1 %2145  ;;  %9471 = vst [vmem:[#allocation23_spill] sm:$0xff] %v7701_v31  ;;  %v7704_v41 = vadd.f32 %v7601_v40, %v2322_v32 }
 0x72a   : > { %v5831_v11 = vpop.eup %5830  ;;  %5836 = vrsqrt.f32 %v2224_v8  ;;  %v2225_v4 = vadd.f32 1e-05, %v2193_v17  ;;  %v2194_v56 = vmul.f32 0.0078125, %v2146_v47 }
 0x72b   : > { %9472 = vst [vmem:[#allocation22_spill] sm:$0xff] %v7704_v41  ;;  %v2148_v52 = vpop.xlane.xlu0 %2147  ;;  %v2389_v53 = vpack.c.bf16 %v7704_v41, %v7701_v31  ;;  %v2285_v20 = vmul.f32 %v5831_v11, %v7505_v49 }
 0x72c   : > { %v5833_v37 = vpop.eup %5832  ;;  %5838 = vrsqrt.f32 %v2225_v4  ;;  %v2226_v14 = vadd.f32 1e-05, %v2194_v56  ;;  %v2195_v62 = vmul.f32 0.0078125, %v2148_v52 }
 0x72d   : > { %2687 = vmatmul.mubr.bf16.gmra.mrb[96].mxu1 %v2389_v53  ;;  %2880 = vmatmul.mubr.bf16.gmra.mrb[96].mxu0 %v2389_v53  ;;  %v2150_v1 = vpop.xlane.xlu1 %2149  ;;  %v2286_v0 = vmul.f32 %v5833_v37, %v7512_v16  ;;  %v2323_v42 = vmul.f32 %v7583_v33, %v2285_v20 }
 0x72e   : > { %5840 = vrsqrt.f32 %v2226_v14  ;;  %v2196_v22 = vmul.f32 0.0078125, %v2150_v1  ;;  %2696 = vmatprep.mubr.bf16.mxu1 %v9462_v50  ;;  %2889 = vmatprep.mubr.bf16.mxu0 %v9462_v50  ;;  %v2227_v49 = vadd.f32 1e-05, %v2195_v62 }
 0x72f   : > { %v2324_v9 = vmul.f32 %v7583_v33, %v2286_v0  ;;  %v2152_v39 = vpop.xlane.xlu0 %2151  ;;  %v7715_v21 = vadd.f32 %v7601_v40, %v2323_v42 }
 0x730   : > { %v2228_v15 = vadd.f32 1e-05, %v2196_v22  ;;  %v2197_v19 = vmul.f32 0.0078125, %v2152_v39  ;;  %v5651_v39 = vld [vmem:[#allocation10] sm:$0xff]  }
 0x731   : > { %v2154_v2 = vpop.xlane.xlu1 %2153  ;;  %9473 = vst [vmem:[#allocation28_spill] sm:$0xff] %v7715_v21  ;;  %v7718_v44 = vadd.f32 %v7601_v40, %v2324_v9 }
 0x732   : > { %v5835_v16 = vpop.eup %5834  ;;  %5842 = vrsqrt.f32 %v2228_v15  ;;  %v2198_v38 = vmul.f32 0.0078125, %v2154_v2  ;;  %v2229_v4 = vadd.f32 1e-05, %v2197_v19  ;;  %v5650_v15 = vld [vmem:[#allocation10 + $0x40] sm:$0xff]  }
 0x733   : > { %9474 = vst [vmem:[#allocation29_spill] sm:$0xff] %v7718_v44  ;;  %v2390_v35 = vpack.c.bf16 %v7718_v44, %v7715_v21  ;;  %v2287_v46 = vmul.f32 %v5835_v16, %v7525_v29  ;;  %5844 = vrsqrt.f32 %v2227_v49  ;;  %v5652_v2 = vld [vmem:[#allocation10 + $0xc0] sm:$0xff]   ;;  %5138 = vmatprep.subr.bf16.mxu1 %v5650_v15  ;;  %v5672_v15 = vld [vmem:[#allocation10 + $0x28] sm:$0xff]  }
 0x734   : > { %v5837_v18 = vpop.eup %5836  ;;  %v2230_v17 = vadd.f32 1e-05, %v2198_v38  ;;  %5250 = vmatprep.subr.bf16.mxu0 %v5652_v2  ;;  %5139 = vmatpush3.bf16.msra.mxu1 %v5651_v39  ;;  %v5673_v39 = vld [vmem:[#allocation10 + $0xa8] sm:$0xff]   ;;  %v5674_v2 = vld [vmem:[#allocation10 + $0x70] sm:$0xff]  }
 0x735   : > { %2697 = vmatmul.mubr.bf16.gmra.mrb[100].mxu1 %v2390_v35  ;;  %2890 = vmatmul.mubr.bf16.gmra.mrb[100].mxu0 %v2390_v35  ;;  %v2288_v13 = vmul.f32 %v5837_v18, %v7532_v5  ;;  %v2325_v32 = vmul.f32 %v7583_v33, %v2287_v46 }
 0x736   : > { %v5839_v8 = vpop.eup %5838  ;;  %2706 = vmatprep.mubr.bf16.mxu1 %v9462_v50  ;;  %2899 = vmatprep.mubr.bf16.mxu0 %v9462_v50  ;;  %5846 = vrsqrt.f32 %v2230_v17  ;;  %v5657_v17 = vld [vmem:[#allocation10 + $0x88] sm:$0xff]  }
 0x737   : > { %v2326_v47 = vmul.f32 %v7583_v33, %v2288_v13  ;;  %v7729_v29 = vadd.f32 %v7601_v40, %v2325_v32  ;;  %v2289_v5 = vmul.f32 %v5839_v8, %v7536_v24  ;;  %5848 = vrsqrt.f32 %v2229_v4  ;;  %v5654_v32 = vld [vmem:[#allocation10 + $0x48] sm:$0xff]   ;;  %v5658_v4 = vld [vmem:[#allocation10 + $0x50] sm:$0xff]  }
 0x738   : > { %v5841_v11 = vpop.eup %5840  ;;  %v5656_v8 = vld [vmem:[#allocation10 + $0xc8] sm:$0xff]   ;;  %5140 = vmatprep.subr.bf16.mxu1 %v5654_v32 }
 0x739   : > { %9475 = vst [vmem:[#allocation30_spill] sm:$0xff] %v7729_v29  ;;  %v7732_v56 = vadd.f32 %v7601_v40, %v2326_v47  ;;  %v2290_v52 = vmul.f32 %v5841_v11, %v7542_v12  ;;  %v2327_v14 = vmul.f32 %v7583_v33, %v2289_v5  ;;  %v5659_v5 = vld [vmem:[#allocation10 + $0xd0] sm:$0xff]  }
 0x73b   : > { %9476 = vst [vmem:[#allocation31_spill] sm:$0xff] %v7732_v56  ;;  %v2391_v53 = vpack.c.bf16 %v7732_v56, %v7729_v29  ;;  %v2328_v20 = vmul.f32 %v7583_v33, %v2290_v52  ;;  %v7747_v1 = vadd.f32 %v7601_v40, %v2327_v14  ;;  %v5660_v52 = vld [vmem:[#allocation10 + $0x10] sm:$0xff]   ;;  %v5664_v14 = vld [vmem:[#allocation10 + $0x18] sm:$0xff]  }
 0x73c   : > { %v5843_v37 = vpop.eup %5842 }
 0x73d   : > { %2707 = vmatmul.mubr.bf16.gmra.mrb[104].mxu1 %v2391_v53  ;;  %2900 = vmatmul.mubr.bf16.gmra.mrb[104].mxu0 %v2391_v53  ;;  %v5845_v62 = vpop.eup %5844  ;;  %v7743_v24 = vadd.f32 %v7601_v40, %v2328_v20  ;;  %v2292_v12 = vmul.f32 %v5843_v37, %v7552_v58  ;;  %9478 = vst [vmem:[#allocation33_spill] sm:$0xff] %v7747_v1  ;;  %v5653_v58 = vld [vmem:[#allocation10 + $0x80] sm:$0xff]   ;;  %v5661_v53 = vld [vmem:[#allocation10 + $0x90] sm:$0xff]   ;;  %v5662_v20 = vld [vmem:[#allocation10 + $0x58] sm:$0xff]  }
 0x73e   : > { %2716 = vmatprep.mubr.bf16.mxu1 %v9462_v50  ;;  %2909 = vmatprep.mubr.bf16.mxu0 %v9462_v50  ;;  %v2291_v0 = vmul.f32 %v5845_v62, %v7547_v55  ;;  %v5663_v37 = vld [vmem:[#allocation10 + $0xd8] sm:$0xff]  }
 0x73f   : > { %9477 = vst [vmem:[#allocation32_spill] sm:$0xff] %v7743_v24  ;;  %v2392_v42 = vpack.c.bf16 %v7743_v24, %v7747_v1  ;;  %v2330_v22 = vmul.f32 %v7583_v33, %v2292_v12  ;;  %5251 = vmatpush3.bf16.msra.mxu0 %v5653_v58  ;;  %v5665_v62 = vld [vmem:[#allocation10 + $0x98] sm:$0xff]   ;;  %v5666_v12 = vld [vmem:[#allocation10 + $0x60] sm:$0xff]   ;;  %v5676_v58 = vld [vmem:[#allocation10 + $0x30] sm:$0xff]  }
 0x740   : > { %v5847_v9 = vpop.eup %5846  ;;  %v2329_v49 = vmul.f32 %v7583_v33, %v2291_v0  ;;  %5252 = vmatprep.subr.bf16.mxu0 %v5656_v8  ;;  %v5667_v0 = vld [vmem:[#allocation10 + $0xe0] sm:$0xff]  }
 0x741   : > { %v5849_v16 = vpop.eup %5848  ;;  %v7757_v55 = vadd.f32 %v7601_v40, %v2330_v22  ;;  %v2294_v38 = vmul.f32 %v5847_v9, %v7562_v34  ;;  %v5655_v34 = vld [vmem:[#allocation10 + $0x8] sm:$0xff]   ;;  %v5669_v22 = vld [vmem:[#allocation10 + $0xa0] sm:$0xff]  }
 0x742   : > { %v7761_v35 = vadd.f32 %v7601_v40, %v2329_v49  ;;  %v2293_v46 = vmul.f32 %v5849_v16, %v7557_v3  ;;  %5141 = vmatpush3.bf16.msra.mxu1 %v5655_v34  ;;  %v5670_v9 = vld [vmem:[#allocation10 + $0x68] sm:$0xff]   ;;  %v5675_v16 = vld [vmem:[#allocation10 + $0xf0] sm:$0xff]  }
 0x743   : > { %9479 = vst [vmem:[#allocation34_spill] sm:$0xff] %v7757_v55  ;;  %v2332_v19 = vmul.f32 %v7583_v33, %v2294_v38  ;;  %5253 = vmatpush3.bf16.msra.mxu0 %v5657_v17  ;;  %5142 = vmatprep.subr.bf16.mxu1 %v5658_v4  ;;  %v5671_v49 = vld [vmem:[#allocation10 + $0xe8] sm:$0xff]   ;;  %v5677_v38 = vld [vmem:[#allocation10 + $0xb0] sm:$0xff]  }
 0x744   : > { %9480 = vst [vmem:[#allocation35_spill] sm:$0xff] %v7761_v35  ;;  %v2393_v18 = vpack.c.bf16 %v7757_v55, %v7761_v35  ;;  %v2331_v13 = vmul.f32 %v7583_v33, %v2293_v46  ;;  %5254 = vmatprep.subr.bf16.mxu0 %v5659_v5  ;;  %v5678_v46 = vld [vmem:[#allocation10 + $0x78] sm:$0xff]  }
 0x745   : > { %2717 = vmatmul.mubr.bf16.gmra.mrb[108].mxu1 %v2392_v42  ;;  %2910 = vmatmul.mubr.bf16.gmra.mrb[108].mxu0 %v2392_v42  ;;  %v7771_v47 = vadd.f32 %v7601_v40, %v2332_v19  ;;  %v5668_v42 = vld [vmem:[#allocation10 + $0x20] sm:$0xff]   ;;  %v5680_v19 = vld [vmem:[#allocation10 + $0x38] sm:$0xff]  }
 0x746   : > { %2726 = vmatprep.mubr.bf16.mxu1 %v9462_v50  ;;  %2919 = vmatprep.mubr.bf16.mxu0 %v9462_v50  ;;  %v7774_v3 = vadd.f32 %v7601_v40, %v2331_v13  ;;  %v5681_v13 = vld [vmem:[#allocation10 + $0xb8] sm:$0xff]  }
 0x747   : > { %9481 = vst [vmem:[#allocation36_spill] sm:$0xff] %v7771_v47  ;;  %5143 = vmatpush3.bf16.msra.mxu1 %v5660_v52  ;;  %5255 = vmatpush3.bf16.msra.mxu0 %v5661_v53 }
 0x748   : > { %9482 = vst [vmem:[#allocation37_spill] sm:$0xff] %v7774_v3  ;;  %v2394_v11 = vpack.c.bf16 %v7771_v47, %v7774_v3  ;;  %5144 = vmatprep.subr.bf16.mxu1 %v5662_v20  ;;  %5256 = vmatprep.subr.bf16.mxu0 %v5663_v37 }
 0x74b   : > { %5145 = vmatpush3.bf16.msra.mxu1 %v5664_v14  ;;  %5257 = vmatpush3.bf16.msra.mxu0 %v5665_v62 }
 0x74c   : > { %5146 = vmatprep.subr.bf16.mxu1 %v5666_v12  ;;  %5258 = vmatprep.subr.bf16.mxu0 %v5667_v0 }
 0x74d   : > { %2727 = vmatmul.mubr.bf16.gmra.mrb[112].mxu1 %v2393_v18  ;;  %2920 = vmatmul.mubr.bf16.gmra.mrb[112].mxu0 %v2393_v18  ;;  %v5679_v18 = vld [vmem:[#allocation10 + $0xf8] sm:$0xff]  }
 0x74e   : > { %2736 = vmatprep.mubr.bf16.mxu1 %v9462_v50  ;;  %2929 = vmatprep.mubr.bf16.mxu0 %v9462_v50 }
 0x74f   : > { %5147 = vmatpush3.bf16.msra.mxu1 %v5668_v42  ;;  %5259 = vmatpush3.bf16.msra.mxu0 %v5669_v22 }
 0x750   : > { %5148 = vmatprep.subr.bf16.mxu1 %v5670_v9  ;;  %5260 = vmatprep.subr.bf16.mxu0 %v5671_v49 }
 0x753   : > { %5149 = vmatpush3.bf16.msra.mxu1 %v5672_v15  ;;  %5261 = vmatpush3.bf16.msra.mxu0 %v5673_v39 }
 0x754   : > { %5150 = vmatprep.subr.bf16.mxu1 %v5674_v2  ;;  %5262 = vmatprep.subr.bf16.mxu0 %v5675_v16 }
 0x755   : > { %2737 = vmatmul.mubr.bf16.gmra.mrb[116].mxu1 %v2394_v11  ;;  %2930 = vmatmul.mubr.bf16.gmra.mrb[116].mxu0 %v2394_v11 }
 0x756   : > { %2746 = vmatprep.mubr.bf16.mxu1 %v9462_v50  ;;  %2939 = vmatprep.mubr.bf16.mxu0 %v9462_v50 }
 0x757   : > { %5151 = vmatpush3.bf16.msra.mxu1 %v5676_v58  ;;  %5263 = vmatpush3.bf16.msra.mxu0 %v5677_v38 }
 0x758   : > { %5152 = vmatprep.subr.bf16.mxu1 %v5678_v46  ;;  %5264 = vmatprep.subr.bf16.mxu0 %v5679_v18 }
 0x75b   : > { %5153 = vmatpush3.bf16.msra.mxu1 %v5680_v19  ;;  %5265 = vmatpush3.bf16.msra.mxu0 %v5681_v13 }
 0x78b   : > { %v2156_v32 = vpop.xlane.xlu0 %2155 }
 0x78c   : > { %v2199_v34 = vmul.f32 0.0078125, %v2156_v32 }
 0x78d   : > { %v2158_v8 = vpop.xlane.xlu1 %2157 }
 0x78e   : > { %v2231_v17 = vadd.f32 1e-05, %v2199_v34  ;;  %v2200_v11 = vmul.f32 0.0078125, %v2158_v8 }
 0x790   : > { %5850 = vrsqrt.f32 %v2231_v17  ;;  %v2232_v4 = vadd.f32 1e-05, %v2200_v11 }
 0x792   : > { %5852 = vrsqrt.f32 %v2232_v4 }
 0x793   : > { %v2160_v5 = vpop.xlane.xlu0 %2159 }
 0x794   : > { %v2201_v52 = vmul.f32 0.0078125, %v2160_v5 }
 0x795   : > { %v2162_v53 = vpop.xlane.xlu1 %2161 }
 0x796   : > { %v2233_v20 = vadd.f32 1e-05, %v2201_v52  ;;  %v2202_v37 = vmul.f32 0.0078125, %v2162_v53 }
 0x798   : > { %5854 = vrsqrt.f32 %v2233_v20  ;;  %v2234_v14 = vadd.f32 1e-05, %v2202_v37 }
 0x79a   : > { %v5851_v62 = vpop.eup %5850  ;;  %5856 = vrsqrt.f32 %v2234_v14 }
 0x79b   : > { %v2164_v12 = vpop.xlane.xlu0 %2163  ;;  %v2295_v0 = vmul.f32 %v5851_v62, %v7571_v57 }
 0x79c   : > { %v5853_v42 = vpop.eup %5852  ;;  %v2203_v22 = vmul.f32 0.0078125, %v2164_v12 }
 0x79d   : > { %v2166_v9 = vpop.xlane.xlu1 %2165  ;;  %v2296_v49 = vmul.f32 %v5853_v42, %v7574_v25  ;;  %v2333_v15 = vmul.f32 %v7583_v33, %v2295_v0 }
 0x79e   : > { %v2235_v39 = vadd.f32 1e-05, %v2203_v22  ;;  %v2204_v2 = vmul.f32 0.0078125, %v2166_v9 }
 0x79f   : > { %v2334_v16 = vmul.f32 %v7583_v33, %v2296_v49  ;;  %v7785_v38 = vadd.f32 %v7601_v40, %v2333_v15 }
 0x7a0   : > { %5858 = vrsqrt.f32 %v2235_v39  ;;  %v2236_v58 = vadd.f32 1e-05, %v2204_v2 }
 0x7a1   : > { %9483 = vst [vmem:[#allocation38_spill] sm:$0xff] %v7785_v38  ;;  %v7788_v46 = vadd.f32 %v7601_v40, %v2334_v16 }
 0x7a2   : > { %v5855_v57 = vpop.eup %5854  ;;  %5860 = vrsqrt.f32 %v2236_v58 }
 0x7a3   : > { %9484 = vst [vmem:[#allocation39_spill] sm:$0xff] %v7788_v46  ;;  %v2168_v18 = vpop.xlane.xlu0 %2167  ;;  %v2395_v25 = vpack.c.bf16 %v7788_v46, %v7785_v38  ;;  %v2297_v19 = vmul.f32 %v5855_v57, %v7586_v51 }
 0x7a4   : > { %v5857_v13 = vpop.eup %5856  ;;  %v2205_v32 = vmul.f32 0.0078125, %v2168_v18 }
 0x7a5   : > { %2747 = vmatmul.mubr.bf16.gmra.mrb[120].mxu1 %v2395_v25  ;;  %2940 = vmatmul.mubr.bf16.gmra.mrb[120].mxu0 %v2395_v25  ;;  %v2170_v34 = vpop.xlane.xlu1 %2169  ;;  %v2298_v8 = vmul.f32 %v5857_v13, %v7590_v27  ;;  %v2335_v17 = vmul.f32 %v7583_v33, %v2297_v19 }
 0x7a6   : > { %v2237_v11 = vadd.f32 1e-05, %v2205_v32  ;;  %v2206_v4 = vmul.f32 0.0078125, %v2170_v34  ;;  %2756 = vmatprep.mubr.bf16.mxu1 %v9462_v50  ;;  %2949 = vmatprep.mubr.bf16.mxu0 %v9462_v50 }
 0x7a7   : > { %v2336_v5 = vmul.f32 %v7583_v33, %v2298_v8  ;;  %v7799_v51 = vadd.f32 %v7601_v40, %v2335_v17 }
 0x7a8   : > { %5862 = vrsqrt.f32 %v2237_v11  ;;  %v2238_v52 = vadd.f32 1e-05, %v2206_v4 }
 0x7a9   : > { %9485 = vst [vmem:[#allocation40_spill] sm:$0xff] %v7799_v51  ;;  %v7802_v53 = vadd.f32 %v7601_v40, %v2336_v5 }
 0x7aa   : > { %v5859_v20 = vpop.eup %5858  ;;  %5864 = vrsqrt.f32 %v2238_v52 }
 0x7ab   : > { %9486 = vst [vmem:[#allocation41_spill] sm:$0xff] %v7802_v53  ;;  %v2172_v27 = vpop.xlane.xlu0 %2171  ;;  %v2396_v37 = vpack.c.bf16 %v7802_v53, %v7799_v51  ;;  %v2299_v14 = vmul.f32 %v5859_v20, %v7611_v43 }
 0x7ac   : > { %v5861_v62 = vpop.eup %5860  ;;  %v2207_v12 = vmul.f32 0.0078125, %v2172_v27 }
 0x7ad   : > { %2757 = vmatmul.mubr.bf16.gmra.mrb[124].mxu1 %v2396_v37  ;;  %2950 = vmatmul.mubr.bf16.gmra.mrb[124].mxu0 %v2396_v37  ;;  %v2174_v0 = vpop.xlane.xlu1 %2173  ;;  %v2300_v42 = vmul.f32 %v5861_v62, %v7617_v30  ;;  %v2337_v22 = vmul.f32 %v7583_v33, %v2299_v14 }
 0x7ae   : > { %v2239_v9 = vadd.f32 1e-05, %v2207_v12  ;;  %v2208_v49 = vmul.f32 0.0078125, %v2174_v0  ;;  %2766 = vmatprep.mubr.bf16.mxu1 %v9462_v50  ;;  %2959 = vmatprep.mubr.bf16.mxu0 %v9462_v50 }
 0x7af   : > { %v2338_v15 = vmul.f32 %v7583_v33, %v2300_v42  ;;  %v7813_v43 = vadd.f32 %v7601_v40, %v2337_v22 }
 0x7b0   : > { %5866 = vrsqrt.f32 %v2239_v9  ;;  %v2240_v39 = vadd.f32 1e-05, %v2208_v49 }
 0x7b1   : > { %9487 = vst [vmem:[#allocation42_spill] sm:$0xff] %v7813_v43  ;;  %v7816_v2 = vadd.f32 %v7601_v40, %v2338_v15 }
 0x7b2   : > { %v5863_v16 = vpop.eup %5862  ;;  %5868 = vrsqrt.f32 %v2240_v39 }
 0x7b3   : > { %9488 = vst [vmem:[#allocation43_spill] sm:$0xff] %v7816_v2  ;;  %v2176_v30 = vpop.xlane.xlu0 %2175  ;;  %v2397_v58 = vpack.c.bf16 %v7816_v2, %v7813_v43  ;;  %v2301_v57 = vmul.f32 %v5863_v16, %v7635_v63 }
 0x7b4   : > { %v5865_v18 = vpop.eup %5864  ;;  %v2209_v25 = vmul.f32 0.0078125, %v2176_v30 }
 0x7b5   : > { %2767 = vmatmul.mubr.bf16.gmra.mrb[128].mxu1 %v2397_v58  ;;  %2960 = vmatmul.mubr.bf16.gmra.mrb[128].mxu0 %v2397_v58  ;;  %v2178_v19 = vpop.xlane.xlu1 %2177  ;;  %v2302_v13 = vmul.f32 %v5865_v18, %v7641_v54  ;;  %v2339_v32 = vmul.f32 %v7583_v33, %v2301_v57 }
 0x7b6   : > { %v2241_v34 = vadd.f32 1e-05, %v2209_v25  ;;  %v2210_v8 = vmul.f32 0.0078125, %v2178_v19  ;;  %2776 = vmatprep.mubr.bf16.mxu1 %v9462_v50  ;;  %2969 = vmatprep.mubr.bf16.mxu0 %v9462_v50 }
 0x7b7   : > { %v2340_v17 = vmul.f32 %v7583_v33, %v2302_v13  ;;  %v7827_v63 = vadd.f32 %v7601_v40, %v2339_v32 }
 0x7b8   : > { %5870 = vrsqrt.f32 %v2241_v34  ;;  %v2242_v11 = vadd.f32 1e-05, %v2210_v8 }
 0x7b9   : > { %9489 = vst [vmem:[#allocation44_spill] sm:$0xff] %v7827_v63  ;;  %v7830_v4 = vadd.f32 %v7601_v40, %v2340_v17 }
 0x7ba   : > { %v5867_v5 = vpop.eup %5866  ;;  %5872 = vrsqrt.f32 %v2242_v11 }
 0x7bb   : > { %9490 = vst [vmem:[#allocation45_spill] sm:$0xff] %v7830_v4  ;;  %v2398_v54 = vpack.c.bf16 %v7830_v4, %v7827_v63  ;;  %v2303_v52 = vmul.f32 %v5867_v5, %v7659_v59 }
 0x7bc   : > { %v5869_v20 = vpop.eup %5868 }
 0x7bd   : > { %2777 = vmatmul.mubr.bf16.gmra.mrb[132].mxu1 %v2398_v54  ;;  %2970 = vmatmul.mubr.bf16.gmra.mrb[132].mxu0 %v2398_v54  ;;  %v2304_v27 = vmul.f32 %v5869_v20, %v7665_v60  ;;  %v2341_v37 = vmul.f32 %v7583_v33, %v2303_v52 }
 0x7be   : > { %2786 = vmatprep.mubr.bf16.mxu1 %v9462_v50  ;;  %2979 = vmatprep.mubr.bf16.mxu0 %v9462_v50 }
 0x7bf   : > { %v2342_v14 = vmul.f32 %v7583_v33, %v2304_v27  ;;  %v7841_v62 = vadd.f32 %v7601_v40, %v2341_v37 }
 0x7c1   : > { %9491 = vst [vmem:[#allocation46_spill] sm:$0xff] %v7841_v62  ;;  %v7844_v12 = vadd.f32 %v7601_v40, %v2342_v14 }
 0x7c2   : > { %v5871_v59 = vpop.eup %5870 }
 0x7c3   : > { %9492 = vst [vmem:[#allocation47_spill] sm:$0xff] %v7844_v12  ;;  %v2399_v0 = vpack.c.bf16 %v7844_v12, %v7841_v62  ;;  %v2305_v60 = vmul.f32 %v5871_v59, %v7683_v26 }
 0x7c4   : > { %v5873_v42 = vpop.eup %5872 }
 0x7c5   : > { %2787 = vmatmul.mubr.bf16.gmra.mrb[136].mxu1 %v2399_v0  ;;  %2980 = vmatmul.mubr.bf16.gmra.mrb[136].mxu0 %v2399_v0  ;;  %v2306_v22 = vmul.f32 %v5873_v42, %v7689_v7  ;;  %v2343_v9 = vmul.f32 %v7583_v33, %v2305_v60  ;;  %v2434_v7 = vlaneseq }
 0x7c6   : > { %2796 = vmatprep.mubr.bf16.mxu1 %v9462_v50  ;;  %2989 = vmatprep.mubr.bf16.mxu0 %v9462_v50  ;;  %v2383_v50 = vld [vmem:[%s9348_s8] sm:$0xf] }
 0x7c7   : > { %v2344_v49 = vmul.f32 %v7583_v33, %v2306_v22  ;;  %v7855_v15 = vadd.f32 %v7601_v40, %v2343_v9  ;;  %v2435_v16 = vshrl.u32 %v2434_v7, 7 }
 0x7c9   : > { %9493 = vst [vmem:[#allocation48_spill] sm:$0xff] %v7855_v15  ;;  %v7858_v39 = vadd.f32 %v7601_v40, %v2344_v49  ;;  %v2436_v30 = vsub.s32 0, %v2435_v16  ;;  %v2444_v58 = vsub.s32 2, %v2435_v16  ;;  %v2440_v33 = vsub.s32 1, %v2435_v16 }
 0x7ca   : > { %v2448_v57 = vsub.s32 3, %v2435_v16 }
 0x7cb   : > { %9494 = vst [vmem:[#allocation49_spill] sm:$0xff] %v7858_v39  ;;  %v2400_v26 = vpack.c.bf16 %v7858_v39, %v7855_v15  ;;  %v7865_v18 = vrot.slane %v2383_v50, %v2436_v30  ;;  %v7867_v25 = vrot.slane %v2383_v50, %v2444_v58  ;;  %v7869_v40 = vrot.slane %v2383_v50, %v2440_v33 }
 0x7cc   : > { %v7871_v19 = vrot.slane %v2383_v50, %v2448_v57 }
 0x7cd   : > { %2797 = vmatmul.mubr.bf16.gmra.mrb[140].mxu1 %v2400_v26  ;;  %2990 = vmatmul.mubr.bf16.gmra.mrb[140].mxu0 %v2400_v26 }
 0x7e0   : > { %v2648_v13 = vpop.f32.mrb[80].mxu1  ;;  %v2841_v32 = vpop.f32.mrb[80].mxu0 }
 0x7e1   : > { %v2649_v34 = vadd.f32 %v2648_v13, %v7865_v18  ;;  %v2842_v8 = vadd.f32 %v2841_v32, %v7867_v25  ;;  %v2650_v17 = vpop.f32.mrb[81].mxu1  ;;  %v2843_v11 = vpop.f32.mrb[81].mxu0 }
 0x7e2   : > { %v2651_v5 = vadd.f32 %v2650_v17, %v7869_v40  ;;  %v2844_v54 = vadd.f32 %v2843_v11, %v7871_v19  ;;  %v2652_v52 = vpop.f32.mrb[82].mxu1  ;;  %v2845_v20 = vpop.f32.mrb[82].mxu0 }
 0x7e3   : > { %v3128_v27 = vmul.f32 0.70710677, %v2649_v34  ;;  %v3130_v37 = vmul.f32 0.70710677, %v2842_v8  ;;  %v2653_v0 = vadd.f32 %v2652_v52, %v7865_v18  ;;  %v2846_v60 = vadd.f32 %v2845_v20, %v7867_v25  ;;  %v2654_v42 = vpop.f32.mrb[83].mxu1  ;;  %v2847_v22 = vpop.f32.mrb[83].mxu0 }
 0x7e4   : > { %v3129_v14 = vmul.f32 0.70710677, %v2651_v5  ;;  %v3131_v59 = vmul.f32 0.70710677, %v2844_v54  ;;  %v2655_v9 = vadd.f32 %v2654_v42, %v7869_v40  ;;  %v2848_v49 = vadd.f32 %v2847_v22, %v7871_v19 }
 0x7e5   : > { %5874 = verf.f32 %v3128_v27  ;;  %v3132_v26 = vmul.f32 0.70710677, %v2653_v0  ;;  %v3134_v7 = vmul.f32 0.70710677, %v2846_v60  ;;  %v3000_v42 = vmul.f32 0.5, %v2649_v34 }
 0x7e6   : > { %5876 = verf.f32 %v3130_v37  ;;  %v3133_v16 = vmul.f32 0.70710677, %v2655_v9  ;;  %v3135_v58 = vmul.f32 0.70710677, %v2848_v49  ;;  %v3001_v39 = vmul.f32 0.5, %v2651_v5 }
 0x7e7   : > { %5878 = verf.f32 %v3129_v14  ;;  %v3004_v15 = vmul.f32 0.5, %v2653_v0  ;;  %v3006_v62 = vmul.f32 0.5, %v2846_v60  ;;  %v7890_v63 = vmul.f32 0.5, %v2655_v9 }
 0x7e8   : > { %5880 = verf.f32 %v3131_v59  ;;  %v2658_v30 = vpop.f32.mrb[84].mxu1  ;;  %v2851_v33 = vpop.f32.mrb[84].mxu0 }
 0x7e9   : > { %5882 = verf.f32 %v3132_v26  ;;  %v2659_v50 = vadd.f32 %v2658_v30, %v7865_v18  ;;  %v2660_v57 = vpop.f32.mrb[85].mxu1  ;;  %v2852_v13 = vadd.f32 %v2851_v33, %v7867_v25  ;;  %v2853_v17 = vpop.f32.mrb[85].mxu0 }
 0x7ea   : > { %5884 = verf.f32 %v3134_v7  ;;  %v2661_v32 = vadd.f32 %v2660_v57, %v7869_v40  ;;  %v2662_v11 = vpop.f32.mrb[86].mxu1  ;;  %v2854_v20 = vadd.f32 %v2853_v17, %v7871_v19  ;;  %v2855_v27 = vpop.f32.mrb[86].mxu0  ;;  %v3002_v57 = vmul.f32 0.5, %v2842_v8 }
 0x7eb   : > { %5886 = verf.f32 %v3133_v16  ;;  %v3136_v52 = vmul.f32 0.70710677, %v2659_v50  ;;  %v2664_v37 = vpop.f32.mrb[87].mxu1  ;;  %v3138_v14 = vmul.f32 0.70710677, %v2852_v13  ;;  %v2857_v59 = vpop.f32.mrb[87].mxu0  ;;  %v2663_v7 = vadd.f32 %v2662_v11, %v7865_v18 }
 0x7ec   : > { %5888 = verf.f32 %v3135_v58  ;;  %v3137_v22 = vmul.f32 0.70710677, %v2661_v32  ;;  %v3139_v26 = vmul.f32 0.70710677, %v2854_v20  ;;  %v2856_v30 = vadd.f32 %v2855_v27, %v7867_v25 }
 0x7ed   : > { %5890 = verf.f32 %v3136_v52  ;;  %v2665_v33 = vadd.f32 %v2664_v37, %v7869_v40  ;;  %v7888_v17 = vmul.f32 0.5, %v2844_v54  ;;  %v3140_v34 = vmul.f32 0.70710677, %v2663_v7 }
 0x7ee   : > { %5892 = verf.f32 %v3138_v14  ;;  %v7892_v11 = vmul.f32 0.5, %v2848_v49  ;;  %v3142_v27 = vmul.f32 0.70710677, %v2856_v30  ;;  %v2858_v37 = vadd.f32 %v2857_v59, %v7871_v19 }
 0x7ef   : > { %v5875_v16 = vpop.eup %5874  ;;  %5894 = verf.f32 %v3137_v22  ;;  %v7895_v2 = vmul.f32 0.5, %v2659_v50  ;;  %v3141_v0 = vmul.f32 0.70710677, %v2665_v33  ;;  %v7897_v43 = vmul.f32 0.5, %v2852_v13 }
 0x7f0   : > { %v5877_v58 = vpop.eup %5876  ;;  %v3384_v12 = vadd.f32 1.0, %v5875_v16  ;;  %v2668_v52 = vpop.f32.mrb[88].mxu1  ;;  %5896 = verf.f32 %v3139_v26  ;;  %v7899_v53 = vmul.f32 0.5, %v2661_v32  ;;  %v7901_v9 = vmul.f32 0.5, %v2854_v20 }
 0x7f1   : > { %v2861_v4 = vpop.f32.mrb[88].mxu0  ;;  %v5879_v14 = vpop.eup %5878  ;;  %v3386_v54 = vadd.f32 1.0, %v5877_v58  ;;  %5898 = verf.f32 %v3140_v34  ;;  %v7907_v26 = vmul.f32 0.5, %v2663_v7  ;;  %v3143_v32 = vmul.f32 0.70710677, %v2858_v37 }
 0x7f2   : > { %v2670_v8 = vpop.f32.mrb[89].mxu1  ;;  %v5881_v5 = vpop.eup %5880  ;;  %v7905_v46 = vmul.f32 %v3384_v12, %v3000_v42  ;;  %v3385_v50 = vadd.f32 1.0, %v5879_v14  ;;  %5900 = verf.f32 %v3142_v27  ;;  %v2669_v20 = vadd.f32 %v2668_v52, %v7865_v18 }
 0x7f3   : > { %v2863_v60 = vpop.f32.mrb[89].mxu0  ;;  %v2672_v22 = vpop.f32.mrb[90].mxu1  ;;  %v7912_v34 = vmul.f32 %v3386_v54, %v3002_v57  ;;  %5902 = verf.f32 %v3141_v0  ;;  %v2862_v12 = vadd.f32 %v2861_v4, %v7867_v25  ;;  %v3387_v14 = vadd.f32 1.0, %v5881_v5 }
 0x7f4   : > { %v5883_v16 = vpop.eup %5882  ;;  %v2865_v49 = vpop.f32.mrb[90].mxu0  ;;  %v2671_v35 = vadd.f32 %v2670_v8, %v7869_v40  ;;  %v7922_v52 = vmul.f32 0.5, %v2856_v30  ;;  %v7924_v57 = vmul.f32 0.5, %v2665_v33  ;;  %v7930_v4 = vmul.f32 %v3385_v50, %v3001_v39 }
 0x7f5   : > { %v7903_v51 = vpop.f32.mrb[91].mxu1  ;;  %v5885_v59 = vpop.eup %5884  ;;  %v3388_v58 = vadd.f32 1.0, %v5883_v16  ;;  %v3144_v16 = vmul.f32 0.70710677, %v2669_v20  ;;  %5904 = verf.f32 %v3143_v32  ;;  %v7943_v39 = vmul.f32 %v3387_v14, %v7888_v17 }
 0x7f6   : > { %v7909_v38 = vpop.f32.mrb[91].mxu0  ;;  %v5887_v47 = vpop.eup %5886  ;;  %v3390_v13 = vadd.f32 1.0, %v5885_v59 }
 0x7f7   : > { %v5889_v3 = vpop.eup %5888  ;;  %v7914_v55 = vmul.f32 %v3388_v58, %v3004_v15  ;;  %v7926_v15 = vmul.f32 0.5, %v2858_v37  ;;  %v3389_v5 = vadd.f32 1.0, %v5887_v47  ;;  %5906 = verf.f32 %v3144_v16 }
 0x7f8   : > { %v5891_v42 = vpop.eup %5890  ;;  %v7917_v7 = vmul.f32 %v3390_v13, %v3006_v62  ;;  %v2678_v54 = vpop.f32.mrb[92].mxu1  ;;  %v3391_v13 = vadd.f32 1.0, %v5889_v3  ;;  %v3146_v37 = vmul.f32 0.70710677, %v2862_v12  ;;  %v3145_v62 = vmul.f32 0.70710677, %v2671_v35 }
 0x7f9   : > { %v5893_v59 = vpop.eup %5892  ;;  %v7928_v0 = vpop.f32.mrb[92].mxu0  ;;  %v3392_v33 = vadd.f32 1.0, %v5891_v42  ;;  %v2864_v47 = vadd.f32 %v2863_v60, %v7871_v19  ;;  %v7950_v3 = vmul.f32 0.5, %v2669_v20  ;;  %v2673_v42 = vadd.f32 %v2672_v22, %v7865_v18 }
 0x7fa   : > { %v7934_v8 = vpop.f32.mrb[93].mxu1  ;;  %v7936_v58 = vpop.f32.mrb[93].mxu0  ;;  %v3394_v50 = vadd.f32 1.0, %v5893_v59  ;;  %5908 = verf.f32 %v3146_v37  ;;  %v2866_v16 = vadd.f32 %v2865_v49, %v7867_v25  ;;  %v3517_v17 = vmul.f32 %v3389_v5, %v7890_v63 }
 0x7fb   : > { %v5895_v30 = vpop.eup %5894  ;;  %v7938_v27 = vpop.f32.mrb[94].mxu1  ;;  %v7955_v59 = vmul.f32 0.5, %v2862_v12  ;;  %5910 = verf.f32 %v3145_v62  ;;  %v3519_v60 = vmul.f32 %v3391_v13, %v7892_v11  ;;  %v7959_v44 = vmul.f32 %v3392_v33, %v7895_v2 }
 0x7fc   : > { %v7940_v24 = vpop.f32.mrb[94].mxu0  ;;  %v7946_v32 = vpop.f32.mrb[95].mxu1  ;;  %v3393_v14 = vadd.f32 1.0, %v5895_v30  ;;  %v3147_v21 = vmul.f32 0.70710677, %v2864_v47  ;;  %v7962_v37 = vmul.f32 %v3394_v50, %v7897_v43  ;;  %v7964_v49 = vmul.f32 0.5, %v2671_v35 }
 0x7fd   : > { %v7948_v1 = vpop.f32.mrb[95].mxu0  ;;  %v5897_v56 = vpop.eup %5896  ;;  %v3148_v20 = vmul.f32 0.70710677, %v2673_v42  ;;  %v3150_v31 = vmul.f32 0.70710677, %v2866_v16  ;;  %v2675_v12 = vadd.f32 %v7903_v51, %v7869_v40  ;;  %v2868_v2 = vadd.f32 %v7909_v38, %v7871_v19 }
 0x7fe   : > { %v5899_v29 = vpop.eup %5898  ;;  %v3395_v22 = vadd.f32 1.0, %v5897_v56  ;;  %5912 = verf.f32 %v3147_v21  ;;  %v7975_v43 = vmul.f32 %v3393_v14, %v7899_v53  ;;  %v7977_v56 = vmul.f32 0.5, %v2864_v47 }
 0x7ff   : > { %v5901_v41 = vpop.eup %5900  ;;  %v3396_v5 = vadd.f32 1.0, %v5899_v29  ;;  %5914 = verf.f32 %v3148_v20  ;;  %v2679_v35 = vadd.f32 %v2678_v54, %v7865_v18  ;;  %v7984_v30 = vmul.f32 0.5, %v2673_v42 }
 0x800   : > { %v5903_v63 = vpop.eup %5902  ;;  %v7970_v11 = vpop.f32.mrb[96].mxu1  ;;  %v3398_v51 = vadd.f32 1.0, %v5901_v41  ;;  %5916 = verf.f32 %v3150_v31  ;;  %v3149_v38 = vmul.f32 0.70710677, %v2675_v12  ;;  %v7991_v50 = vmul.f32 %v3395_v22, %v7901_v9 }
 0x801   : > { %v7972_v62 = vpop.f32.mrb[96].mxu0  ;;  %v7980_v29 = vpop.f32.mrb[97].mxu1  ;;  %v3397_v47 = vadd.f32 1.0, %v5903_v63  ;;  %v3151_v14 = vmul.f32 0.70710677, %v2868_v2  ;;  %v7996_v41 = vmul.f32 %v3396_v5, %v7907_v26  ;;  %v2872_v31 = vadd.f32 %v7928_v0, %v7867_v25 }
 0x802   : > { %v7982_v21 = vpop.f32.mrb[97].mxu0  ;;  %v7986_v13 = vpop.f32.mrb[98].mxu1  ;;  %v3152_v54 = vmul.f32 0.70710677, %v2679_v35  ;;  %5918 = verf.f32 %v3149_v38  ;;  %v2681_v42 = vadd.f32 %v7934_v8, %v7869_v40  ;;  %v2874_v9 = vadd.f32 %v7936_v58, %v7871_v19 }
 0x803   : > { %v7988_v33 = vpop.f32.mrb[98].mxu0  ;;  %v5905_v53 = vpop.eup %5904  ;;  %5920 = verf.f32 %v3151_v14  ;;  %v3641_v22 = vpack.c.bf16 %v3517_v17, %v7930_v4  ;;  %v3643_v63 = vpack.c.bf16 %v3519_v60, %v7943_v39  ;;  %v8009_v26 = vmul.f32 %v3398_v51, %v7922_v52 }
 0x804   : > { %v7993_v20 = vpop.f32.mrb[99].mxu1  ;;  %v5907_v6 = vpop.eup %5906  ;;  %v3399_v5 = vadd.f32 1.0, %v5905_v53  ;;  %v8011_v38 = vmul.f32 0.5, %v2866_v16  ;;  %v3154_v0 = vmul.f32 0.70710677, %v2872_v31  ;;  %v8014_v8 = vmul.f32 %v3397_v47, %v7924_v57 }
 0x805   : > { %v8002_v10 = vpop.f32.mrb[99].mxu0  ;;  %v5909_v48 = vpop.eup %5908  ;;  %v3400_v14 = vadd.f32 1.0, %v5907_v6  ;;  %5922 = verf.f32 %v3152_v54  ;;  %v3153_v45 = vmul.f32 0.70710677, %v2681_v42  ;;  %3998 = vmatprep.mubr.bf16.mxu1 %v3641_v22  ;;  %4159 = vmatprep.mubr.bf16.mxu0 %v3643_v63  ;;  %v8016_v4 = vmul.f32 0.5, %v2675_v12 }
 0x806   : > { %v5911_v28 = vpop.eup %5910  ;;  %v8018_v58 = vmul.f32 0.5, %v2868_v2  ;;  %v3155_v39 = vmul.f32 0.70710677, %v2874_v9  ;;  %v2683_v52 = vadd.f32 %v7938_v27, %v7865_v18  ;;  %v9495_v16 = vpack.c.bf16 %v7914_v55, %v7905_v46 }
 0x807   : > { %v9496_v57 = vpack.c.bf16 %v7917_v7, %v7912_v34  ;;  %v3402_v60 = vadd.f32 1.0, %v5909_v48  ;;  %5924 = verf.f32 %v3154_v0  ;;  %v2876_v12 = vadd.f32 %v7940_v24, %v7867_v25 }
 0x808   : > { %3999 = vmatmul.mubr.bf16.vlgmr.msra.gmra.mrb[144].mxu1 %v9495_v16  ;;  %v8028_v6 = vpop.f32.mrb[100].mxu1  ;;  %v8030_v17 = vpop.f32.mrb[100].mxu0  ;;  %v2685_v27 = vadd.f32 %v7946_v32, %v7869_v40  ;;  %v8041_v34 = vmul.f32 %v3399_v5, %v7926_v15  ;;  %v3401_v7 = vadd.f32 1.0, %v5911_v28  ;;  %5926 = verf.f32 %v3153_v45 }
 0x809   : > { %4160 = vmatmul.mubr.bf16.vlgmr.msra.gmra.mrb[144].mxu0 %v9496_v57  ;;  %v8036_v2 = vpop.f32.mrb[101].mxu1  ;;  %v8038_v55 = vpop.f32.mrb[101].mxu0  ;;  %v3156_v51 = vmul.f32 0.70710677, %v2683_v52  ;;  %v8048_v24 = vmul.f32 %v3400_v14, %v7950_v3  ;;  %v8050_v32 = vmul.f32 0.5, %v2679_v35  ;;  %5928 = verf.f32 %v3155_v39 }
 0x80a   : > { %v5913_v46 = vpop.eup %5912  ;;  %v8043_v53 = vpop.f32.mrb[102].mxu1  ;;  %v3158_v54 = vmul.f32 0.70710677, %v2876_v12  ;;  %v8054_v15 = vmul.f32 0.5, %v2872_v31  ;;  %v8056_v28 = vmul.f32 0.5, %v2681_v42  ;;  %v2878_v5 = vadd.f32 %v7948_v1, %v7871_v19 }
 0x80b   : > { %v8045_v48 = vpop.f32.mrb[102].mxu0  ;;  %v5915_v47 = vpop.eup %5914  ;;  %v3157_v45 = vmul.f32 0.70710677, %v2685_v27  ;;  %v8063_v3 = vmul.f32 %v3402_v60, %v7955_v59  ;;  %v8065_v35 = vmul.f32 0.5, %v2874_v9  ;;  %5930 = verf.f32 %v3156_v51 }
 0x80c   : > { %v8052_v22 = vpop.f32.mrb[103].mxu1  ;;  %v5917_v63 = vpop.eup %5916  ;;  %v2689_v14 = vadd.f32 %v7970_v11, %v7865_v18  ;;  %v8070_v31 = vmul.f32 %v3401_v7, %v7964_v49  ;;  %v3403_v42 = vadd.f32 1.0, %v5913_v46  ;;  %5932 = verf.f32 %v3158_v54 }
 0x80d   : > { %v8060_v0 = vpop.f32.mrb[103].mxu0  ;;  %v5919_v39 = vpop.eup %5918  ;;  %v3159_v16 = vmul.f32 0.70710677, %v2878_v5  ;;  %v3404_v1 = vadd.f32 1.0, %v5915_v47  ;;  %v3406_v23 = vadd.f32 1.0, %v5917_v63  ;;  %5934 = verf.f32 %v3157_v45 }
 0x80e   : > { %v5921_v57 = vpop.eup %5920  ;;  %v3160_v36 = vmul.f32 0.70710677, %v2689_v14  ;;  %v3405_v59 = vadd.f32 1.0, %v5919_v39  ;;  %v2882_v9 = vadd.f32 %v7972_v62, %v7867_v25  ;;  %v2691_v11 = vadd.f32 %v7980_v29, %v7869_v40 }
 0x80f   : > { %5936 = verf.f32 %v3159_v16  ;;  %v5923_v46 = vpop.eup %5922  ;;  %v3407_v7 = vadd.f32 1.0, %v5921_v57  ;;  %v8080_v51 = vmul.f32 0.5, %v2683_v52  ;;  %v2884_v47 = vadd.f32 %v7982_v21, %v7871_v19 }
 0x810   : > { %v8076_v60 = vpop.f32.mrb[104].mxu1  ;;  %v8078_v49 = vpop.f32.mrb[104].mxu0  ;;  %5938 = verf.f32 %v3160_v36  ;;  %v8089_v62 = vmul.f32 %v3403_v42, %v7977_v56  ;;  %v8091_v29 = vmul.f32 0.5, %v2876_v12  ;;  %v8093_v45 = vmul.f32 0.5, %v2685_v27 }
 0x811   : > { %v8084_v54 = vpop.f32.mrb[105].mxu1  ;;  %v8086_v63 = vpop.f32.mrb[105].mxu0  ;;  %v3162_v39 = vmul.f32 0.70710677, %v2882_v9  ;;  %v8100_v57 = vmul.f32 %v3404_v1, %v7984_v30  ;;  %v8103_v21 = vmul.f32 %v3406_v23, %v8011_v38  ;;  %v8105_v61 = vmul.f32 0.5, %v2878_v5 }
 0x812   : > { %9497 = vst [vmem:[#allocation50_spill] sm:$0xff] %v8086_v63  ;;  %v8095_v16 = vpop.f32.mrb[106].mxu1  ;;  %v8097_v52 = vpop.f32.mrb[106].mxu0  ;;  %v8107_v56 = vmul.f32 0.5, %v2689_v14  ;;  %v3161_v63 = vmul.f32 0.70710677, %v2691_v11  ;;  %v3645_v30 = vpack.c.bf16 %v8014_v8, %v7975_v43  ;;  %v8119_v23 = vmul.f32 %v3407_v7, %v8018_v58 }
 0x813   : > { %9498 = vst [vmem:[#allocation51_spill] sm:$0xff] %v8095_v16  ;;  %9499 = vst [vmem:[#allocation52_spill] sm:$0xff] %v8097_v52  ;;  %v5925_v36 = vpop.eup %5924  ;;  %v8109_v12 = vpop.f32.mrb[107].mxu1  ;;  %v8114_v16 = vmul.f32 %v3405_v59, %v8016_v4  ;;  %v3408_v52 = vadd.f32 1.0, %v5923_v46  ;;  %5940 = verf.f32 %v3162_v39  ;;  %v3163_v38 = vmul.f32 0.70710677, %v2884_v47 }
 0x814   : > { %v8111_v27 = vpop.f32.mrb[107].mxu0  ;;  %v5927_v42 = vpop.eup %5926  ;;  %v3647_v5 = vpack.c.bf16 %v8041_v34, %v7991_v50  ;;  %v3410_v14 = vadd.f32 1.0, %v5925_v36  ;;  %4006 = vmatprep.mubr.bf16.mxu1 %v3645_v30  ;;  %v2693_v4 = vadd.f32 %v7986_v13, %v7865_v18  ;;  %v2886_v59 = vadd.f32 %v7988_v33, %v7867_v25 }
 0x815   : > { %9500 = vst [vmem:[#allocation53_spill] sm:$0xff] %v8111_v27  ;;  %v5929_v1 = vpop.eup %5928  ;;  %v8123_v27 = vmul.f32 0.5, %v2882_v9  ;;  %v3409_v8 = vadd.f32 1.0, %v5927_v42  ;;  %v8129_v46 = vmul.f32 0.5, %v2691_v11  ;;  %v3644_v58 = vpack.c.bf16 %v7996_v41, %v7959_v44 }
 0x816   : > { %v5931_v43 = vpop.eup %5930  ;;  %4167 = vmatprep.mubr.bf16.mxu0 %v3647_v5  ;;  %v3646_v50 = vpack.c.bf16 %v8009_v26, %v7962_v37  ;;  %v8136_v9 = vmul.f32 %v3408_v52, %v8050_v32  ;;  %v3411_v7 = vadd.f32 1.0, %v5929_v1  ;;  %5942 = verf.f32 %v3161_v63 }
 0x817   : > { %v5933_v34 = vpop.eup %5932  ;;  %v3164_v13 = vmul.f32 0.70710677, %v2693_v4  ;;  %v8140_v36 = vmul.f32 0.5, %v2884_v47  ;;  %5944 = verf.f32 %v3163_v38  ;;  %v3166_v11 = vmul.f32 0.70710677, %v2886_v59  ;;  %4007 = vmatmul.mubr.bf16.gmra.mrb[148].mxu1 %v3644_v58 }
 0x818   : > { %v8138_v39 = vpop.f32.mrb[108].mxu1  ;;  %v5935_v33 = vpop.eup %5934  ;;  %4168 = vmatmul.mubr.bf16.gmra.mrb[148].mxu0 %v3646_v50  ;;  %v2695_v44 = vadd.f32 %v7993_v20, %v7869_v40  ;;  %v8149_v32 = vmul.f32 %v3410_v14, %v8054_v15  ;;  %v2888_v47 = vadd.f32 %v8002_v10, %v7871_v19  ;;  %v2699_v63 = vadd.f32 %v8028_v6, %v7865_v18 }
 0x819   : > { %v8144_v37 = vpop.f32.mrb[108].mxu0  ;;  %v8146_v41 = vpop.f32.mrb[109].mxu1  ;;  %5946 = verf.f32 %v3164_v13  ;;  %v8160_v30 = vmul.f32 %v3409_v8, %v8056_v28  ;;  %v3412_v1 = vadd.f32 1.0, %v5931_v43  ;;  %v3414_v38 = vadd.f32 1.0, %v5933_v34 }
 0x81a   : > { %v5937_v26 = vpop.eup %5936  ;;  %v8155_v52 = vpop.f32.mrb[109].mxu0  ;;  %5948 = verf.f32 %v3166_v11  ;;  %v8167_v10 = vmul.f32 %v3411_v7, %v8065_v35  ;;  %v3413_v14 = vadd.f32 1.0, %v5935_v33  ;;  %v3165_v6 = vmul.f32 0.70710677, %v2695_v44 }
 0x81b   : > { %v8157_v42 = vpop.f32.mrb[110].mxu1  ;;  %v5939_v20 = vpop.eup %5938  ;;  %v3167_v58 = vmul.f32 0.70710677, %v2888_v47  ;;  %v3415_v50 = vadd.f32 1.0, %v5937_v26  ;;  %v2892_v28 = vadd.f32 %v8030_v17, %v7867_v25  ;;  %v3168_v8 = vmul.f32 0.70710677, %v2699_v63 }
 0x81c   : > { %9501 = vst [vmem:[#allocation54_spill] sm:$0xff] %v8157_v42  ;;  %v8162_v15 = vpop.f32.mrb[110].mxu0  ;;  %v8164_v5 = vpop.f32.mrb[111].mxu1  ;;  %v3416_v13 = vadd.f32 1.0, %v5939_v20  ;;  %v8169_v42 = vmul.f32 0.5, %v2693_v4  ;;  %5950 = verf.f32 %v3165_v6  ;;  %v2701_v34 = vadd.f32 %v8036_v2, %v7869_v40 }
 0x81d   : > { %v8173_v43 = vpop.f32.mrb[111].mxu0  ;;  %v2894_v35 = vadd.f32 %v8038_v55, %v7871_v19  ;;  %v5941_v7 = vpop.eup %5940  ;;  %v8180_v33 = vmul.f32 %v3412_v1, %v8080_v51  ;;  %v8183_v4 = vmul.f32 %v3414_v38, %v8091_v29  ;;  %v8185_v11 = vmul.f32 0.5, %v2886_v59 }
 0x81e   : > { %v3170_v17 = vmul.f32 0.70710677, %v2892_v28  ;;  %v8188_v26 = vmul.f32 %v3413_v14, %v8093_v45  ;;  %v8190_v20 = vmul.f32 0.5, %v2695_v44  ;;  %5952 = verf.f32 %v3167_v58 }
 0x81f   : > { %v3169_v2 = vmul.f32 0.70710677, %v2701_v34  ;;  %v8197_v51 = vmul.f32 %v3415_v50, %v8105_v61  ;;  %v8200_v29 = vmul.f32 %v3416_v13, %v8107_v56  ;;  %v8202_v59 = vmul.f32 0.5, %v2888_v47 }
 0x820   : > { %v8192_v6 = vpop.f32.mrb[112].mxu1  ;;  %v8194_v55 = vpop.f32.mrb[112].mxu0  ;;  %v8204_v1 = vmul.f32 0.5, %v2699_v63  ;;  %v3418_v14 = vadd.f32 1.0, %v5941_v7  ;;  %5954 = verf.f32 %v3168_v8  ;;  %v3171_v58 = vmul.f32 0.70710677, %v2894_v35 }
 0x821   : > { %9502 = vst [vmem:[#allocation55_spill] sm:$0xff] %v8194_v55  ;;  %v8206_v45 = vpop.f32.mrb[113].mxu1  ;;  %v8208_v44 = vpop.f32.mrb[113].mxu0  ;;  %v3649_v55 = vpack.c.bf16 %v8114_v16, %v8070_v31  ;;  %5956 = verf.f32 %v3170_v17  ;;  %v3651_v47 = vpack.c.bf16 %v8119_v23, %v8089_v62  ;;  %v2703_v63 = vadd.f32 %v8043_v53, %v7865_v18 }
 0x822   : > { %v5943_v38 = vpop.eup %5942  ;;  %v8212_v61 = vpop.f32.mrb[114].mxu1  ;;  %v2896_v13 = vadd.f32 %v8045_v48, %v7867_v25  ;;  %5958 = verf.f32 %v3169_v2  ;;  %v3648_v16 = vpack.c.bf16 %v8100_v57, %v8048_v24  ;;  %v3650_v17 = vpack.c.bf16 %v8103_v21, %v8063_v3 }
 0x823   : > { %v8214_v50 = vpop.f32.mrb[114].mxu0  ;;  %v5945_v56 = vpop.eup %5944  ;;  %4014 = vmatprep.mubr.bf16.mxu1 %v3649_v55  ;;  %v2705_v62 = vadd.f32 %v8052_v22, %v7869_v40  ;;  %v3417_v23 = vadd.f32 1.0, %v5943_v38  ;;  %5960 = verf.f32 %v3171_v58  ;;  %4175 = vmatprep.mubr.bf16.mxu0 %v3651_v47  ;;  %v3172_v48 = vmul.f32 0.70710677, %v2703_v63 }
 0x824   : > { %9503 = vst [vmem:[#allocation56_spill] sm:$0xff] %v8214_v50  ;;  %v8222_v8 = vpop.f32.mrb[115].mxu1  ;;  %v8224_v7 = vpop.f32.mrb[115].mxu0  ;;  %v8232_v50 = vmul.f32 0.5, %v2892_v28  ;;  %v3174_v2 = vmul.f32 0.70710677, %v2896_v13  ;;  %4015 = vmatmul.mubr.bf16.gmra.mrb[152].mxu1 %v3648_v16  ;;  %4176 = vmatmul.mubr.bf16.gmra.mrb[152].mxu0 %v3650_v17  ;;  %v8237_v57 = vmul.f32 %v3418_v14, %v8123_v27  ;;  %v2898_v22 = vadd.f32 %v8060_v0, %v7871_v19 }
 0x825   : > { %9504 = vst [vmem:[#allocation57_spill] sm:$0xff] %v8222_v8  ;;  %9505 = vst [vmem:[#allocation58_spill] sm:$0xff] %v8224_v7  ;;  %v5947_v31 = vpop.eup %5946  ;;  %v3419_v7 = vadd.f32 1.0, %v5945_v56  ;;  %v8234_v8 = vmul.f32 0.5, %v2701_v34  ;;  %v3173_v24 = vmul.f32 0.70710677, %v2705_v62  ;;  %5962 = verf.f32 %v3172_v48 }
 0x826   : > { %v5949_v53 = vpop.eup %5948  ;;  %v2709_v3 = vadd.f32 %v8076_v60, %v7865_v18  ;;  %v3420_v28 = vadd.f32 1.0, %v5947_v31  ;;  %5964 = verf.f32 %v3174_v2  ;;  %v2902_v34 = vadd.f32 %v8078_v49, %v7867_v25 }
 0x827   : > { %v5951_v21 = vpop.eup %5950  ;;  %v3422_v55 = vadd.f32 1.0, %v5949_v53  ;;  %v8250_v27 = vmul.f32 %v3417_v23, %v8129_v46  ;;  %v8252_v14 = vmul.f32 0.5, %v2894_v35  ;;  %v3175_v0 = vmul.f32 0.70710677, %v2898_v22 }
 0x828   : > { %v8245_v38 = vpop.f32.mrb[116].mxu1  ;;  %v8247_v58 = vpop.f32.mrb[116].mxu0  ;;  %v2711_v60 = vadd.f32 %v8084_v54, %v7869_v40  ;;  %v8261_v49 = vmul.f32 %v3419_v7, %v8140_v36  ;;  %v8263_v16 = vmul.f32 0.5, %v2703_v63  ;;  %5966 = verf.f32 %v3173_v24 }
 0x829   : > { %v8256_v56 = vpop.f32.mrb[117].mxu1  ;;  %v8258_v47 = vpop.f32.mrb[117].mxu0  ;;  %v3176_v17 = vmul.f32 0.70710677, %v2709_v3  ;;  %v3421_v35 = vadd.f32 1.0, %v5951_v21  ;;  %v8267_v53 = vmul.f32 0.5, %v2896_v13  ;;  %5968 = verf.f32 %v3175_v0 }
 0x82a   : > { %9506 = vst [vmem:[#allocation59_spill] sm:$0xff] %v8258_v47  ;;  %v5953_v31 = vpop.eup %5952  ;;  %v8265_v46 = vpop.f32.mrb[118].mxu1  ;;  %v3178_v23 = vmul.f32 0.70710677, %v2902_v34  ;;  %v8274_v47 = vmul.f32 %v3420_v28, %v8169_v42  ;;  %v8277_v36 = vmul.f32 %v3422_v55, %v8185_v11  ;;  %v8279_v63 = vmul.f32 0.5, %v2705_v62  ;;  %v9511_v42 = vld [vmem:[#allocation50_spill] sm:$0xff] }
 0x82b   : > { %9507 = vst [vmem:[#allocation60_spill] sm:$0xff] %v8265_v46  ;;  %v8269_v54 = vpop.f32.mrb[118].mxu0  ;;  %v8271_v48 = vpop.f32.mrb[119].mxu1  ;;  %5970 = verf.f32 %v3176_v17  ;;  %v3423_v24 = vadd.f32 1.0, %v5953_v31  ;;  %v8283_v21 = vmul.f32 0.5, %v2898_v22  ;;  %v2904_v28 = vadd.f32 %v9511_v42, %v7871_v19  ;;  %v9513_v42 = vld [vmem:[#allocation52_spill] sm:$0xff] }
 0x82c   : > { %9508 = vst [vmem:[#allocation61_spill] sm:$0xff] %v8269_v54  ;;  %9509 = vst [vmem:[#allocation62_spill] sm:$0xff] %v8271_v48  ;;  %v5955_v2 = vpop.eup %5954  ;;  %v8281_v7 = vpop.f32.mrb[119].mxu0  ;;  %5972 = verf.f32 %v3178_v23  ;;  %v3177_v0 = vmul.f32 0.70710677, %v2711_v60  ;;  %v8285_v48 = vmul.f32 0.5, %v2709_v3  ;;  %v3653_v11 = vpack.c.bf16 %v8188_v26, %v8160_v30 }
 0x82d   : > { %9510 = vst [vmem:[#allocation63_spill] sm:$0xff] %v8281_v7  ;;  %v5957_v13 = vpop.eup %5956  ;;  %v3655_v62 = vpack.c.bf16 %v8197_v51, %v8167_v10  ;;  %v8294_v17 = vmul.f32 %v3421_v35, %v8190_v20  ;;  %v3424_v22 = vadd.f32 1.0, %v5955_v2  ;;  %v8296_v31 = vmul.f32 0.5, %v2902_v34  ;;  %v9512_v23 = vld [vmem:[#allocation51_spill] sm:$0xff] }
 0x82e   : > { %v5959_v54 = vpop.eup %5958  ;;  %v2713_v3 = vadd.f32 %v9512_v23, %v7865_v18  ;;  %v3426_v7 = vadd.f32 1.0, %v5957_v13  ;;  %v3179_v46 = vmul.f32 0.70710677, %v2904_v28  ;;  %4022 = vmatprep.mubr.bf16.mxu1 %v3653_v11  ;;  %v2906_v30 = vadd.f32 %v9513_v42, %v7867_v25 }
 0x82f   : > { %v5961_v55 = vpop.eup %5960  ;;  %4183 = vmatprep.mubr.bf16.mxu0 %v3655_v62  ;;  %v3652_v10 = vpack.c.bf16 %v8180_v33, %v8136_v9  ;;  %v3425_v51 = vadd.f32 1.0, %v5959_v54  ;;  %5974 = verf.f32 %v3177_v0  ;;  %v3654_v34 = vpack.c.bf16 %v8183_v4, %v8149_v32  ;;  %v9514_v33 = vld [vmem:[#allocation53_spill] sm:$0xff] }
 0x830   : > { %v5963_v26 = vpop.eup %5962  ;;  %v3180_v20 = vmul.f32 0.70710677, %v2713_v3  ;;  %v3551_v2 = vmul.f32 %v3423_v24, %v8202_v59  ;;  %v3427_v13 = vadd.f32 1.0, %v5961_v55  ;;  %5976 = verf.f32 %v3179_v46 }
 0x831   : > { %v5965_v35 = vpop.eup %5964  ;;  %v3182_v11 = vmul.f32 0.70710677, %v2906_v30  ;;  %4023 = vmatmul.mubr.bf16.gmra.mrb[156].mxu1 %v3652_v10  ;;  %v3428_v62 = vadd.f32 1.0, %v5963_v26  ;;  %4184 = vmatmul.mubr.bf16.gmra.mrb[156].mxu0 %v3654_v34  ;;  %v2715_v9 = vadd.f32 %v8109_v12, %v7869_v40  ;;  %v2908_v54 = vadd.f32 %v9514_v33, %v7871_v19  ;;  %v9515_v33 = vld [vmem:[#allocation54_spill] sm:$0xff] }
 0x832   : > { %5978 = verf.f32 %v3180_v20  ;;  %v5967_v0 = vpop.eup %5966  ;;  %v3430_v23 = vadd.f32 1.0, %v5965_v35  ;;  %v8311_v42 = vmul.f32 0.5, %v2711_v60  ;;  %v2719_v32 = vadd.f32 %v8138_v39, %v7865_v18 }
 0x833   : > { %5980 = verf.f32 %v3182_v11  ;;  %v5969_v4 = vpop.eup %5968  ;;  %v8316_v59 = vmul.f32 %v3424_v22, %v8204_v1  ;;  %v8319_v46 = vmul.f32 %v3426_v7, %v8232_v50  ;;  %v8322_v12 = vmul.f32 %v3425_v51, %v8234_v8 }
 0x834   : > { %v3181_v24 = vmul.f32 0.70710677, %v2715_v9  ;;  %v8325_v10 = vmul.f32 %v3427_v13, %v8252_v14  ;;  %v8327_v60 = vmul.f32 0.5, %v2904_v28  ;;  %v8329_v26 = vmul.f32 0.5, %v2713_v3 }
 0x835   : > { %v5971_v55 = vpop.eup %5970  ;;  %v3183_v39 = vmul.f32 0.70710677, %v2908_v54  ;;  %v8332_v1 = vmul.f32 %v3428_v62, %v8263_v16  ;;  %v8334_v22 = vmul.f32 0.5, %v2906_v30  ;;  %v3184_v50 = vmul.f32 0.70710677, %v2719_v32 }
 0x836   : > { %v5973_v20 = vpop.eup %5972  ;;  %v2912_v8 = vadd.f32 %v8144_v37, %v7867_v25  ;;  %v8339_v7 = vmul.f32 %v3430_v23, %v8267_v53  ;;  %v3429_v14 = vadd.f32 1.0, %v5967_v0  ;;  %5982 = verf.f32 %v3181_v24 }
 0x837   : > { %v2721_v28 = vadd.f32 %v8146_v41, %v7869_v40  ;;  %v3431_v3 = vadd.f32 1.0, %v5969_v4  ;;  %v8343_v51 = vmul.f32 0.5, %v2715_v9  ;;  %5984 = verf.f32 %v3183_v39 }
 0x838   : > { %v3186_v16 = vmul.f32 0.70710677, %v2912_v8  ;;  %v3432_v34 = vadd.f32 1.0, %v5971_v55  ;;  %v3434_v30 = vadd.f32 1.0, %v5973_v20  ;;  %5986 = verf.f32 %v3184_v50 }
 0x839   : > { %v3185_v35 = vmul.f32 0.70710677, %v2721_v28  ;;  %v5975_v13 = vpop.eup %5974  ;;  %v2914_v37 = vadd.f32 %v8155_v52, %v7871_v19  ;;  %v3657_v53 = vpack.c.bf16 %v8294_v17, %v8250_v27  ;;  %v3659_v11 = vpack.c.bf16 %v3551_v2, %v8261_v49 }
 0x83a   : > { %5988 = verf.f32 %v3186_v16  ;;  %v5977_v41 = vpop.eup %5976  ;;  %v8351_v62 = vmul.f32 %v3429_v14, %v8279_v63  ;;  %v8353_v9 = vmul.f32 0.5, %v2908_v54  ;;  %v2723_v0 = vadd.f32 %v9515_v33, %v7865_v18 }
 0x83b   : > { %v2916_v23 = vadd.f32 %v8162_v15, %v7867_v25  ;;  %v8360_v52 = vmul.f32 %v3431_v3, %v8283_v21  ;;  %v8362_v24 = vmul.f32 0.5, %v2719_v32  ;;  %v3187_v27 = vmul.f32 0.70710677, %v2914_v37  ;;  %4030 = vmatprep.mubr.bf16.mxu1 %v3657_v53  ;;  %4191 = vmatprep.mubr.bf16.mxu0 %v3659_v11  ;;  %v9516_v3 = vld [vmem:[#allocation55_spill] sm:$0xff] }
 0x83c   : > { %v5979_v4 = vpop.eup %5978  ;;  %v3656_v49 = vpack.c.bf16 %v8274_v47, %v8200_v29  ;;  %v8367_v17 = vmul.f32 %v3432_v34, %v8285_v48  ;;  %v8370_v2 = vmul.f32 %v3434_v30, %v8296_v31  ;;  %v8372_v15 = vmul.f32 0.5, %v2912_v8 }
 0x83d   : > { %v5981_v63 = vpop.eup %5980  ;;  %v3188_v54 = vmul.f32 0.70710677, %v2723_v0  ;;  %v3433_v21 = vadd.f32 1.0, %v5975_v13  ;;  %v3435_v55 = vadd.f32 1.0, %v5977_v41  ;;  %5990 = verf.f32 %v3185_v35 }
 0x83e   : > { %v3190_v32 = vmul.f32 0.70710677, %v2916_v23  ;;  %4031 = vmatmul.mubr.bf16.gmra.mrb[160].mxu1 %v3656_v49  ;;  %v3436_v39 = vadd.f32 1.0, %v5979_v4  ;;  %5992 = verf.f32 %v3187_v27  ;;  %v3658_v29 = vpack.c.bf16 %v8277_v36, %v8237_v57 }
 0x83f   : > { %v2725_v47 = vadd.f32 %v8164_v5, %v7869_v40  ;;  %v3438_v48 = vadd.f32 1.0, %v5981_v63  ;;  %5994 = verf.f32 %v3188_v54  ;;  %v2918_v31 = vadd.f32 %v8173_v43, %v7871_v19 }
 0x840   : > { %v2729_v20 = vadd.f32 %v8192_v6, %v7865_v18  ;;  %v5983_v50 = vpop.eup %5982  ;;  %v8382_v8 = vmul.f32 0.5, %v2721_v28  ;;  %5996 = verf.f32 %v3190_v32  ;;  %4192 = vmatmul.mubr.bf16.gmra.mrb[160].mxu0 %v3658_v29  ;;  %v2922_v57 = vadd.f32 %v9516_v3, %v7867_v25 }
 0x841   : > { %v3189_v14 = vmul.f32 0.70710677, %v2725_v47  ;;  %v5985_v36 = vpop.eup %5984  ;;  %v8387_v5 = vmul.f32 %v3433_v21, %v8311_v42  ;;  %v8389_v16 = vmul.f32 0.5, %v2914_v37  ;;  %v8391_v34 = vmul.f32 0.5, %v2723_v0 }
 0x842   : > { %v3191_v43 = vmul.f32 0.70710677, %v2918_v31  ;;  %v5987_v30 = vpop.eup %5986  ;;  %v8394_v6 = vmul.f32 %v3435_v55, %v8327_v60  ;;  %v8396_v28 = vmul.f32 0.5, %v2916_v23  ;;  %v3192_v35 = vmul.f32 0.70710677, %v2729_v20 }
 0x843   : > { %5998 = verf.f32 %v3189_v14  ;;  %v8399_v53 = vmul.f32 %v3436_v39, %v8329_v26  ;;  %v8402_v42 = vmul.f32 %v3438_v48, %v8334_v22  ;;  %v3194_v37 = vmul.f32 0.70710677, %v2922_v57 }
 0x844   : > { %v5989_v13 = vpop.eup %5988  ;;  %6000 = verf.f32 %v3191_v43  ;;  %v3437_v11 = vadd.f32 1.0, %v5983_v50  ;;  %v8404_v41 = vmul.f32 0.5, %v2725_v47  ;;  %v2731_v60 = vadd.f32 %v8206_v45, %v7869_v40 }
 0x845   : > { %6002 = verf.f32 %v3192_v35  ;;  %v3439_v33 = vadd.f32 1.0, %v5985_v36  ;;  %v8408_v0 = vmul.f32 0.5, %v2918_v31  ;;  %v2924_v23 = vadd.f32 %v8208_v44, %v7871_v19 }
 0x846   : > { %v3661_v26 = vpack.c.bf16 %v8351_v62, %v8322_v12  ;;  %v3440_v22 = vadd.f32 1.0, %v5987_v30  ;;  %v3442_v4 = vadd.f32 1.0, %v5989_v13  ;;  %v3193_v27 = vmul.f32 0.70710677, %v2731_v60  ;;  %v9517_v12 = vld [vmem:[#allocation56_spill] sm:$0xff] }
 0x847   : > { %v3663_v49 = vpack.c.bf16 %v8360_v52, %v8325_v10  ;;  %v5991_v63 = vpop.eup %5990  ;;  %v8416_v54 = vmul.f32 0.5, %v2729_v20  ;;  %6004 = verf.f32 %v3194_v37  ;;  %v3195_v45 = vmul.f32 0.70710677, %v2924_v23 }
 0x848   : > { %4038 = vmatprep.mubr.bf16.mxu1 %v3661_v26  ;;  %v2733_v21 = vadd.f32 %v8212_v61, %v7865_v18  ;;  %v5993_v55 = vpop.eup %5992  ;;  %v3565_v44 = vmul.f32 %v3437_v11, %v8343_v51  ;;  %6006 = verf.f32 %v3193_v27  ;;  %v2926_v62 = vadd.f32 %v9517_v12, %v7867_v25 }
 0x849   : > { %4199 = vmatprep.mubr.bf16.mxu0 %v3663_v49  ;;  %v3660_v10 = vpack.c.bf16 %v8332_v1, %v8316_v59  ;;  %v5995_v52 = vpop.eup %5994  ;;  %v3567_v32 = vmul.f32 %v3439_v33, %v8353_v9  ;;  %v8426_v39 = vmul.f32 0.5, %v2922_v57  ;;  %6008 = verf.f32 %v3195_v45  ;;  %v9518_v1 = vld [vmem:[#allocation57_spill] sm:$0xff] }
 0x84a   : > { %v3196_v29 = vmul.f32 0.70710677, %v2733_v21  ;;  %v5997_v47 = vpop.eup %5996  ;;  %v8429_v61 = vmul.f32 %v3440_v22, %v8362_v24  ;;  %v8432_v51 = vmul.f32 %v3442_v4, %v8372_v15  ;;  %v3441_v48 = vadd.f32 1.0, %v5991_v63  ;;  %v9519_v24 = vld [vmem:[#allocation58_spill] sm:$0xff] }
 0x84b   : > { %v3198_v31 = vmul.f32 0.70710677, %v2926_v62  ;;  %4039 = vmatmul.mubr.bf16.gmra.mrb[164].mxu1 %v3660_v10  ;;  %v3443_v20 = vadd.f32 1.0, %v5993_v55  ;;  %v3662_v59 = vpack.c.bf16 %v8339_v7, %v8319_v46  ;;  %v2735_v9 = vadd.f32 %v9518_v1, %v7869_v40 }
 0x84c   : > { %6010 = verf.f32 %v3196_v29  ;;  %v3444_v14 = vadd.f32 1.0, %v5995_v52  ;;  %v2928_v3 = vadd.f32 %v9519_v24, %v7871_v19  ;;  %v8442_v15 = vadd.f32 %v8245_v38, %v7865_v18  ;;  %v9523_v24 = vld [vmem:[#allocation62_spill] sm:$0xff] }
 0x84d   : > { %v5999_v50 = vpop.eup %5998  ;;  %6012 = verf.f32 %v3198_v31  ;;  %v3446_v36 = vadd.f32 1.0, %v5997_v47  ;;  %v8444_v43 = vmul.f32 0.5, %v2731_v60  ;;  %4200 = vmatmul.mubr.bf16.gmra.mrb[164].mxu0 %v3662_v59  ;;  %v3197_v30 = vmul.f32 0.70710677, %v2735_v9  ;;  %v9521_v47 = vld [vmem:[#allocation60_spill] sm:$0xff] }
 0x84e   : > { %v6001_v57 = vpop.eup %6000  ;;  %v8448_v46 = vadd.f32 %v8247_v58, %v7867_v25  ;;  %v8451_v35 = vmul.f32 %v3441_v48, %v8382_v8  ;;  %v8453_v13 = vmul.f32 0.5, %v2924_v23  ;;  %v3068_v37 = vmul.f32 0.5, %v2733_v21 }
 0x84f   : > { %v6003_v7 = vpop.eup %6002  ;;  %v3199_v11 = vmul.f32 0.70710677, %v2928_v3  ;;  %v8456_v38 = vmul.f32 %v3443_v20, %v8389_v16  ;;  %v3445_v33 = vadd.f32 1.0, %v5999_v50  ;;  %v3447_v60 = vadd.f32 1.0, %v6001_v57  ;;  %v9524_v57 = vld [vmem:[#allocation63_spill] sm:$0xff] }
 0x850   : > { %6014 = verf.f32 %v3197_v30  ;;  %v8459_v26 = vmul.f32 %v3444_v14, %v8391_v34  ;;  %v3070_v22 = vmul.f32 0.5, %v2926_v62  ;;  %v3200_v58 = vmul.f32 0.70710677, %v8442_v15  ;;  %v9520_v34 = vld [vmem:[#allocation59_spill] sm:$0xff] }
 0x851   : > { %6016 = verf.f32 %v3199_v11  ;;  %v6005_v4 = vpop.eup %6004  ;;  %v8463_v8 = vmul.f32 %v3446_v36, %v8396_v28  ;;  %v3448_v23 = vadd.f32 1.0, %v6003_v7  ;;  %v3202_v27 = vmul.f32 0.70710677, %v8448_v46 }
 0x852   : > { %v8468_v16 = vadd.f32 %v8256_v56, %v7869_v40  ;;  %v6007_v49 = vpop.eup %6006  ;;  %v3069_v63 = vmul.f32 0.5, %v2735_v9  ;;  %v8472_v45 = vadd.f32 %v9520_v34, %v7871_v19  ;;  %v3665_v21 = vpack.c.bf16 %v3565_v44, %v8387_v5 }
 0x853   : > { %v3667_v55 = vpack.c.bf16 %v3567_v32, %v8394_v6  ;;  %v6009_v12 = vpop.eup %6008  ;;  %v3573_v28 = vmul.f32 %v3445_v33, %v8404_v41  ;;  %v3575_v62 = vmul.f32 %v3447_v60, %v8408_v0  ;;  %v3071_v10 = vmul.f32 0.5, %v2928_v3  ;;  %v9522_v41 = vld [vmem:[#allocation61_spill] sm:$0xff] }
 0x854   : > { %v3201_v52 = vmul.f32 0.70710677, %v8468_v16  ;;  %v3450_v56 = vadd.f32 1.0, %v6005_v4  ;;  %6018 = verf.f32 %v3200_v58  ;;  %v3203_v29 = vmul.f32 0.70710677, %v8472_v45  ;;  %4046 = vmatprep.mubr.bf16.mxu1 %v3665_v21 }
 0x855   : > { %4207 = vmatprep.mubr.bf16.mxu0 %v3667_v55  ;;  %v2743_v48 = vadd.f32 %v9521_v47, %v7865_v18  ;;  %v8483_v6 = vmul.f32 %v3448_v23, %v8416_v54  ;;  %6020 = verf.f32 %v3202_v27  ;;  %v2936_v0 = vadd.f32 %v9522_v41, %v7867_v25 }
 0x856   : > { %v6011_v5 = vpop.eup %6010  ;;  %v3664_v44 = vpack.c.bf16 %v8399_v53, %v8367_v17  ;;  %v3449_v31 = vadd.f32 1.0, %v6007_v49  ;;  %v3451_v20 = vadd.f32 1.0, %v6009_v12  ;;  %6022 = verf.f32 %v3201_v52 }
 0x857   : > { %v6013_v32 = vpop.eup %6012  ;;  %v3452_v59 = vadd.f32 1.0, %v6011_v5  ;;  %6024 = verf.f32 %v3203_v29  ;;  %v3204_v9 = vmul.f32 0.70710677, %v2743_v48  ;;  %v3206_v50 = vmul.f32 0.70710677, %v2936_v0 }
 0x858   : > { %v3454_v1 = vadd.f32 1.0, %v6013_v32  ;;  %4047 = vmatmul.mubr.bf16.gmra.mrb[168].mxu1 %v3664_v44  ;;  %v3666_v54 = vpack.c.bf16 %v8402_v42, %v8370_v2  ;;  %v2745_v3 = vadd.f32 %v9523_v24, %v7869_v40  ;;  %v2938_v17 = vadd.f32 %v9524_v57, %v7871_v19 }
 0x859   : > { %v3580_v14 = vmul.f32 %v3452_v59, %v3068_v37  ;;  %6026 = verf.f32 %v3204_v9  ;;  %v3669_v30 = vpack.c.bf16 %v3573_v28, %v8451_v35  ;;  %v3671_v7 = vpack.c.bf16 %v3575_v62, %v8456_v38 }
 0x85a   : > { %v6015_v53 = vpop.eup %6014  ;;  %v8495_v36 = vmul.f32 %v3454_v1, %v3070_v22  ;;  %v3578_v37 = vmul.f32 %v3450_v56, %v8426_v39  ;;  %6028 = verf.f32 %v3206_v50  ;;  %4208 = vmatmul.mubr.bf16.gmra.mrb[168].mxu0 %v3666_v54  ;;  %v3205_v2 = vmul.f32 0.70710677, %v2745_v3 }
 0x85b   : > { %v6017_v11 = vpop.eup %6016  ;;  %v3453_v33 = vadd.f32 1.0, %v6015_v53  ;;  %v3577_v42 = vmul.f32 %v3449_v31, %v8444_v43  ;;  %v3207_v58 = vmul.f32 0.70710677, %v2938_v17  ;;  %4054 = vmatprep.mubr.bf16.mxu1 %v3669_v30  ;;  %4215 = vmatprep.mubr.bf16.mxu0 %v3671_v7  ;;  %v3668_v22 = vpack.c.bf16 %v8459_v26, %v8429_v61 }
 0x85c   : > { %v3455_v60 = vadd.f32 1.0, %v6017_v11  ;;  %v3579_v35 = vmul.f32 %v3451_v20, %v8453_v13  ;;  %6030 = verf.f32 %v3205_v2  ;;  %v3670_v39 = vpack.c.bf16 %v8463_v8, %v8432_v51 }
 0x85d   : > { %v3581_v4 = vmul.f32 %v3453_v33, %v3069_v63  ;;  %6032 = verf.f32 %v3207_v58  ;;  %v3672_v23 = vpack.c.bf16 %v3580_v14, %v8483_v6  ;;  %v3674_v43 = vpack.c.bf16 %v8495_v36, %v3578_v37 }
 0x85e   : > { %v3583_v38 = vmul.f32 %v3455_v60, %v3071_v10  ;;  %v6019_v27 = vpop.eup %6018  ;;  %v3072_v8 = vmul.f32 0.5, %v8442_v15  ;;  %v3076_v12 = vmul.f32 0.5, %v2743_v48  ;;  %v3074_v62 = vmul.f32 0.5, %v8448_v46 }
 0x85f   : > { %v3673_v49 = vpack.c.bf16 %v3581_v4, %v3577_v42  ;;  %v6021_v34 = vpop.eup %6020  ;;  %v3456_v13 = vadd.f32 1.0, %v6019_v27  ;;  %v3078_v52 = vmul.f32 0.5, %v2936_v0  ;;  %v3073_v5 = vmul.f32 0.5, %v8468_v16 }
 0x860   : > { %4055 = vmatmul.mubr.bf16.gmra.mrb[172].mxu1 %v3668_v22  ;;  %v3675_v21 = vpack.c.bf16 %v3583_v38, %v3579_v35  ;;  %v6023_v55 = vpop.eup %6022  ;;  %v3458_v63 = vadd.f32 1.0, %v6021_v34  ;;  %v3077_v20 = vmul.f32 0.5, %v2745_v3  ;;  %v3075_v15 = vmul.f32 0.5, %v8472_v45 }
 0x861   : > { %4062 = vmatprep.mubr.bf16.mxu1 %v3673_v49  ;;  %v6025_v61 = vpop.eup %6024  ;;  %v3457_v10 = vadd.f32 1.0, %v6023_v55  ;;  %v3584_v47 = vmul.f32 %v3456_v13, %v3072_v8  ;;  %v3079_v48 = vmul.f32 0.5, %v2938_v17 }
 0x862   : > { %4216 = vmatmul.mubr.bf16.gmra.mrb[172].mxu0 %v3670_v39  ;;  %v3459_v6 = vadd.f32 1.0, %v6025_v61  ;;  %v3586_v32 = vmul.f32 %v3458_v63, %v3074_v62 }
 0x863   : > { %v6027_v26 = vpop.eup %6026  ;;  %4223 = vmatprep.mubr.bf16.mxu0 %v3675_v21  ;;  %v3585_v9 = vmul.f32 %v3457_v10, %v3073_v5 }
 0x864   : > { %v6029_v51 = vpop.eup %6028  ;;  %v3460_v28 = vadd.f32 1.0, %v6027_v26  ;;  %v3587_v14 = vmul.f32 %v3459_v6, %v3075_v15 }
 0x865   : > { %v3462_v56 = vadd.f32 1.0, %v6029_v51 }
 0x866   : > { %v6031_v29 = vpop.eup %6030  ;;  %v3588_v41 = vmul.f32 %v3460_v28, %v3076_v12 }
 0x867   : > { %v6033_v44 = vpop.eup %6032  ;;  %v3590_v31 = vmul.f32 %v3462_v56, %v3078_v52  ;;  %v3461_v59 = vadd.f32 1.0, %v6031_v29 }
 0x868   : > { %4063 = vmatmul.mubr.bf16.gmra.mrb[176].mxu1 %v3672_v23  ;;  %v3463_v1 = vadd.f32 1.0, %v6033_v44  ;;  %v3676_v46 = vpack.c.bf16 %v3588_v41, %v3584_v47 }
 0x869   : > { %v3589_v0 = vmul.f32 %v3461_v59, %v3077_v20  ;;  %v3678_v50 = vpack.c.bf16 %v3590_v31, %v3586_v32 }
 0x86a   : > { %v3591_v54 = vmul.f32 %v3463_v1, %v3079_v48  ;;  %4224 = vmatmul.mubr.bf16.gmra.mrb[176].mxu0 %v3674_v43 }
 0x86b   : > { %v3677_v16 = vpack.c.bf16 %v3589_v0, %v3585_v9 }
 0x86c   : > { %v3679_v24 = vpack.c.bf16 %v3591_v54, %v3587_v14 }
 0x86d   : > { %4070 = vmatprep.mubr.bf16.mxu1 %v3677_v16 }
 0x86e   : > { %4231 = vmatprep.mubr.bf16.mxu0 %v3679_v24 }
 0x870   : > { %4071 = vmatmul.mubr.bf16.gmra.mrb[180].mxu1 %v3676_v46 }
 0x872   : > { %4232 = vmatmul.mubr.bf16.gmra.mrb[180].mxu0 %v3678_v50 }
 0x878   : > { %v2748_v3 = vpop.f32.mrb[120].mxu1  ;;  %v2941_v57 = vpop.f32.mrb[120].mxu0 }
 0x879   : > { %v2749_v53 = vadd.f32 %v2748_v3, %v7865_v18  ;;  %v2942_v45 = vadd.f32 %v2941_v57, %v7867_v25  ;;  %v2750_v17 = vpop.f32.mrb[121].mxu1  ;;  %v2943_v36 = vpop.f32.mrb[121].mxu0 }
 0x87a   : > { %v2751_v30 = vadd.f32 %v2750_v17, %v7869_v40  ;;  %v2944_v7 = vadd.f32 %v2943_v36, %v7871_v19  ;;  %v2752_v11 = vpop.f32.mrb[122].mxu1  ;;  %v2945_v37 = vpop.f32.mrb[122].mxu0 }
 0x87b   : > { %v3208_v33 = vmul.f32 0.70710677, %v2749_v53  ;;  %v3210_v2 = vmul.f32 0.70710677, %v2942_v45  ;;  %v2753_v58 = vadd.f32 %v2752_v11, %v7865_v18  ;;  %v2946_v22 = vadd.f32 %v2945_v37, %v7867_v25  ;;  %v2754_v35 = vpop.f32.mrb[123].mxu1  ;;  %v2947_v4 = vpop.f32.mrb[123].mxu0 }
 0x87c   : > { %v3209_v42 = vmul.f32 0.70710677, %v2751_v30  ;;  %v3211_v60 = vmul.f32 0.70710677, %v2944_v7  ;;  %v2755_v39 = vadd.f32 %v2754_v35, %v7869_v40  ;;  %v2948_v38 = vadd.f32 %v2947_v4, %v7871_v19 }
 0x87d   : > { %6034 = verf.f32 %v3208_v33  ;;  %v3212_v23 = vmul.f32 0.70710677, %v2753_v58  ;;  %v3214_v43 = vmul.f32 0.70710677, %v2946_v22  ;;  %v3080_v44 = vmul.f32 0.5, %v2749_v53 }
 0x87e   : > { %6036 = verf.f32 %v3210_v2  ;;  %v3213_v27 = vmul.f32 0.70710677, %v2755_v39  ;;  %v3215_v34 = vmul.f32 0.70710677, %v2948_v38  ;;  %v3082_v32 = vmul.f32 0.5, %v2942_v45 }
 0x87f   : > { %6038 = verf.f32 %v3209_v42  ;;  %v3081_v31 = vmul.f32 0.5, %v2751_v30  ;;  %v3083_v59 = vmul.f32 0.5, %v2944_v7  ;;  %v3084_v15 = vmul.f32 0.5, %v2753_v58 }
 0x880   : > { %6040 = verf.f32 %v3211_v60  ;;  %v2758_v49 = vpop.f32.mrb[124].mxu1  ;;  %v2951_v55 = vpop.f32.mrb[124].mxu0  ;;  %v8528_v50 = vmul.f32 0.5, %v2946_v22  ;;  %v8530_v14 = vmul.f32 0.5, %v2755_v39  ;;  %v8532_v3 = vmul.f32 0.5, %v2948_v38 }
 0x881   : > { %6042 = verf.f32 %v3212_v23  ;;  %v2759_v21 = vadd.f32 %v2758_v49, %v7865_v18  ;;  %v2760_v61 = vpop.f32.mrb[125].mxu1  ;;  %v2952_v13 = vadd.f32 %v2951_v55, %v7867_v25  ;;  %v2953_v63 = vpop.f32.mrb[125].mxu0 }
 0x882   : > { %6044 = verf.f32 %v3214_v43  ;;  %v2761_v26 = vadd.f32 %v2760_v61, %v7869_v40  ;;  %v2762_v51 = vpop.f32.mrb[126].mxu1  ;;  %v2954_v12 = vadd.f32 %v2953_v63, %v7871_v19  ;;  %v2955_v28 = vpop.f32.mrb[126].mxu0 }
 0x883   : > { %6046 = verf.f32 %v3213_v27  ;;  %v3216_v8 = vmul.f32 0.70710677, %v2759_v21  ;;  %v2764_v62 = vpop.f32.mrb[127].mxu1  ;;  %v3218_v10 = vmul.f32 0.70710677, %v2952_v13  ;;  %v2957_v52 = vpop.f32.mrb[127].mxu0  ;;  %v2763_v47 = vadd.f32 %v2762_v51, %v7865_v18 }
 0x884   : > { %6048 = verf.f32 %v3215_v34  ;;  %v3217_v56 = vmul.f32 0.70710677, %v2761_v26  ;;  %v3219_v29 = vmul.f32 0.70710677, %v2954_v12  ;;  %v2956_v5 = vadd.f32 %v2955_v28, %v7867_v25 }
 0x885   : > { %6050 = verf.f32 %v3216_v8  ;;  %v2765_v6 = vadd.f32 %v2764_v62, %v7869_v40  ;;  %v3220_v48 = vmul.f32 0.70710677, %v2763_v47  ;;  %v2958_v1 = vadd.f32 %v2957_v52, %v7871_v19 }
 0x886   : > { %6052 = verf.f32 %v3218_v10  ;;  %v3222_v54 = vmul.f32 0.70710677, %v2956_v5  ;;  %v8534_v57 = vmul.f32 0.5, %v2759_v21  ;;  %v8536_v7 = vmul.f32 0.5, %v2952_v13 }
 0x887   : > { %v6035_v41 = vpop.eup %6034  ;;  %6054 = verf.f32 %v3217_v56  ;;  %v3221_v53 = vmul.f32 0.70710677, %v2765_v6  ;;  %v8538_v11 = vmul.f32 0.5, %v2761_v26  ;;  %v3223_v58 = vmul.f32 0.70710677, %v2958_v1 }
 0x888   : > { %v6037_v20 = vpop.eup %6036  ;;  %v2768_v46 = vpop.f32.mrb[128].mxu1  ;;  %6056 = verf.f32 %v3219_v29  ;;  %v3464_v30 = vadd.f32 1.0, %v6035_v41  ;;  %v8542_v39 = vmul.f32 0.5, %v2954_v12  ;;  %v8546_v49 = vmul.f32 0.5, %v2763_v47 }
 0x889   : > { %v2961_v9 = vpop.f32.mrb[128].mxu0  ;;  %v6039_v0 = vpop.eup %6038  ;;  %6058 = verf.f32 %v3220_v48  ;;  %v3466_v42 = vadd.f32 1.0, %v6037_v20  ;;  %v2769_v38 = vadd.f32 %v2768_v46, %v7865_v18  ;;  %v8551_v61 = vmul.f32 0.5, %v2956_v5 }
 0x88a   : > { %v2770_v16 = vpop.f32.mrb[129].mxu1  ;;  %v6041_v24 = vpop.eup %6040  ;;  %6060 = verf.f32 %v3222_v54  ;;  %v3465_v60 = vadd.f32 1.0, %v6039_v0  ;;  %v2962_v23 = vadd.f32 %v2961_v9, %v7867_v25  ;;  %v8549_v55 = vmul.f32 %v3464_v30, %v3080_v44 }
 0x88b   : > { %v2963_v45 = vpop.f32.mrb[129].mxu0  ;;  %v2772_v17 = vpop.f32.mrb[130].mxu1  ;;  %6062 = verf.f32 %v3221_v53  ;;  %v3467_v4 = vadd.f32 1.0, %v6041_v24  ;;  %v2771_v34 = vadd.f32 %v2770_v16, %v7869_v40  ;;  %v8553_v13 = vmul.f32 0.5, %v2765_v6 }
 0x88c   : > { %v6043_v36 = vpop.eup %6042  ;;  %v2965_v37 = vpop.f32.mrb[130].mxu0  ;;  %6064 = verf.f32 %v3223_v58  ;;  %v3224_v26 = vmul.f32 0.70710677, %v2769_v38  ;;  %v8555_v51 = vmul.f32 %v3466_v42, %v3082_v32  ;;  %v8557_v8 = vmul.f32 %v3465_v60, %v3081_v31 }
 0x88d   : > { %v2774_v33 = vpop.f32.mrb[131].mxu1  ;;  %v6045_v2 = vpop.eup %6044  ;;  %v3468_v27 = vadd.f32 1.0, %v6043_v36  ;;  %v8559_v12 = vmul.f32 0.5, %v2958_v1  ;;  %v3226_v28 = vmul.f32 0.70710677, %v2962_v23  ;;  %v8561_v56 = vmul.f32 %v3467_v4, %v3083_v59 }
 0x88e   : > { %v8540_v22 = vpop.f32.mrb[131].mxu0  ;;  %v6047_v35 = vpop.eup %6046  ;;  %v3470_v29 = vadd.f32 1.0, %v6045_v2  ;;  %6066 = verf.f32 %v3224_v26  ;;  %v3225_v32 = vmul.f32 0.70710677, %v2771_v34  ;;  %v2964_v59 = vadd.f32 %v2963_v45, %v7871_v19 }
 0x88f   : > { %v6049_v43 = vpop.eup %6048  ;;  %v3469_v47 = vadd.f32 1.0, %v6047_v35  ;;  %v8565_v41 = vmul.f32 %v3468_v27, %v3084_v15  ;;  %6068 = verf.f32 %v3226_v28  ;;  %v2773_v9 = vadd.f32 %v2772_v17, %v7865_v18 }
 0x890   : > { %v6051_v21 = vpop.eup %6050  ;;  %v2778_v62 = vpop.f32.mrb[132].mxu1  ;;  %v3471_v44 = vadd.f32 1.0, %v6049_v43  ;;  %6070 = verf.f32 %v3225_v32  ;;  %v2966_v24 = vadd.f32 %v2965_v37, %v7867_v25  ;;  %v2775_v53 = vadd.f32 %v2774_v33, %v7869_v40 }
 0x891   : > { %v6053_v63 = vpop.eup %6052  ;;  %v2971_v10 = vpop.f32.mrb[132].mxu0  ;;  %v3472_v1 = vadd.f32 1.0, %v6051_v21  ;;  %v8580_v30 = vmul.f32 %v3470_v29, %v8528_v50  ;;  %v8583_v2 = vmul.f32 %v3469_v47, %v8530_v14  ;;  %v8585_v45 = vmul.f32 0.5, %v2769_v38 }
 0x892   : > { %v6055_v52 = vpop.eup %6054  ;;  %v2780_v5 = vpop.f32.mrb[133].mxu1  ;;  %v3474_v46 = vadd.f32 1.0, %v6053_v63  ;;  %v3227_v17 = vmul.f32 0.70710677, %v2964_v59  ;;  %v8588_v60 = vmul.f32 %v3471_v44, %v8532_v3  ;;  %v8590_v58 = vmul.f32 0.5, %v2962_v23 }
 0x893   : > { %v8563_v6 = vpop.f32.mrb[133].mxu0  ;;  %v8567_v31 = vpop.f32.mrb[134].mxu1  ;;  %v3473_v16 = vadd.f32 1.0, %v6055_v52  ;;  %v8592_v35 = vmul.f32 0.5, %v2771_v34  ;;  %v3228_v37 = vmul.f32 0.70710677, %v2773_v9  ;;  %v8595_v33 = vmul.f32 %v3472_v1, %v8534_v57 }
 0x894   : > { %v8569_v20 = vpop.f32.mrb[134].mxu0  ;;  %v6057_v48 = vpop.eup %6056  ;;  %v8598_v50 = vmul.f32 %v3474_v46, %v8536_v7  ;;  %v3230_v4 = vmul.f32 0.70710677, %v2966_v24  ;;  %6072 = verf.f32 %v3227_v17  ;;  %v3229_v3 = vmul.f32 0.70710677, %v2775_v53 }
 0x895   : > { %v8573_v0 = vpop.f32.mrb[135].mxu1  ;;  %v8575_v54 = vpop.f32.mrb[135].mxu0  ;;  %v3475_v14 = vadd.f32 1.0, %v6057_v48  ;;  %v8601_v43 = vmul.f32 %v3473_v16, %v8538_v11  ;;  %6074 = verf.f32 %v3228_v37  ;;  %v2968_v57 = vadd.f32 %v8540_v22, %v7871_v19 }
 0x896   : > { %v6059_v15 = vpop.eup %6058  ;;  %6076 = verf.f32 %v3230_v4  ;;  %v2779_v11 = vadd.f32 %v2778_v62, %v7865_v18  ;;  %v2972_v52 = vadd.f32 %v2971_v10, %v7867_v25  ;;  %v2781_v48 = vadd.f32 %v2780_v5, %v7869_v40 }
 0x897   : > { %v6061_v36 = vpop.eup %6060  ;;  %v3476_v27 = vadd.f32 1.0, %v6059_v15  ;;  %v8620_v32 = vmul.f32 %v3475_v14, %v8542_v39  ;;  %6078 = verf.f32 %v3229_v3  ;;  %v3231_v22 = vmul.f32 0.70710677, %v2968_v57 }
 0x898   : > { %v6063_v42 = vpop.eup %6062  ;;  %v8603_v23 = vpop.f32.mrb[136].mxu1  ;;  %v3478_v21 = vadd.f32 1.0, %v6061_v36  ;;  %v8627_v62 = vmul.f32 0.5, %v2964_v59  ;;  %v8629_v10 = vmul.f32 0.5, %v2773_v9  ;;  %v3232_v16 = vmul.f32 0.70710677, %v2779_v11 }
 0x899   : > { %v6065_v38 = vpop.eup %6064  ;;  %v8605_v34 = vpop.f32.mrb[136].mxu0  ;;  %v3477_v26 = vadd.f32 1.0, %v6063_v42  ;;  %v2974_v36 = vadd.f32 %v8563_v6, %v7871_v19  ;;  %v8634_v39 = vmul.f32 %v3476_v27, %v8546_v49  ;;  %v8639_v5 = vmul.f32 0.5, %v2966_v24 }
 0x89a   : > { %v8609_v7 = vpop.f32.mrb[137].mxu1  ;;  %v8611_v63 = vpop.f32.mrb[137].mxu0  ;;  %v3479_v28 = vadd.f32 1.0, %v6065_v38  ;;  %v8637_v17 = vmul.f32 %v3478_v21, %v8551_v61  ;;  %v3234_v42 = vmul.f32 0.70710677, %v2972_v52  ;;  %v8647_v9 = vmul.f32 0.5, %v2775_v53 }
 0x89b   : > { %v8615_v29 = vpop.f32.mrb[138].mxu1  ;;  %v8617_v47 = vpop.f32.mrb[138].mxu0  ;;  %v8642_v14 = vmul.f32 %v3477_v26, %v8553_v13  ;;  %6080 = verf.f32 %v3231_v22  ;;  %v3233_v49 = vmul.f32 0.70710677, %v2781_v48  ;;  %v3235_v38 = vmul.f32 0.70710677, %v2974_v36 }
 0x89c   : > { %v6067_v44 = vpop.eup %6066  ;;  %v8623_v1 = vpop.f32.mrb[139].mxu1  ;;  %v8645_v59 = vmul.f32 %v3479_v28, %v8559_v12  ;;  %6082 = verf.f32 %v3232_v16  ;;  %v3681_v61 = vpack.c.bf16 %v8583_v2, %v8557_v8  ;;  %v3683_v24 = vpack.c.bf16 %v8588_v60, %v8561_v56 }
 0x89d   : > { %v8625_v46 = vpop.f32.mrb[139].mxu0  ;;  %v6069_v15 = vpop.eup %6068  ;;  %v3480_v6 = vadd.f32 1.0, %v6067_v44  ;;  %v2783_v13 = vadd.f32 %v8567_v31, %v7865_v18  ;;  %6084 = verf.f32 %v3234_v42  ;;  %v2976_v3 = vadd.f32 %v8569_v20, %v7867_v25 }
 0x89e   : > { %v6071_v37 = vpop.eup %6070  ;;  %v3482_v4 = vadd.f32 1.0, %v6069_v15  ;;  %v3680_v21 = vpack.c.bf16 %v8565_v41, %v8549_v55  ;;  %v8667_v2 = vmul.f32 0.5, %v2968_v57  ;;  %v8669_v31 = vmul.f32 0.5, %v2779_v11  ;;  %4078 = vmatprep.mubr.bf16.mxu1 %v3681_v61  ;;  %4239 = vmatprep.mubr.bf16.mxu0 %v3683_v24 }
 0x89f   : > { %v3481_v53 = vadd.f32 1.0, %v6071_v37  ;;  %v6073_v56 = vpop.eup %6072  ;;  %v3236_v60 = vmul.f32 0.70710677, %v2783_v13  ;;  %v3682_v28 = vpack.c.bf16 %v8580_v30, %v8555_v51  ;;  %v8677_v41 = vmul.f32 0.5, %v2972_v52 }
 0x8a0   : > { %v8655_v27 = vpop.f32.mrb[140].mxu1  ;;  %v8657_v12 = vpop.f32.mrb[140].mxu0  ;;  %6086 = verf.f32 %v3233_v49  ;;  %v3238_v22 = vmul.f32 0.70710677, %v2976_v3  ;;  %4079 = vmatmul.mubr.bf16.gmra.mrb[184].mxu1 %v3680_v21  ;;  %v2785_v57 = vadd.f32 %v8573_v0, %v7869_v40  ;;  %v8686_v51 = vmul.f32 %v3480_v6, %v8585_v45 }
 0x8a1   : > { %v8663_v26 = vpop.f32.mrb[141].mxu1  ;;  %v8665_v8 = vpop.f32.mrb[141].mxu0  ;;  %v8688_v30 = vmul.f32 0.5, %v2781_v48  ;;  %6088 = verf.f32 %v3235_v38  ;;  %4240 = vmatmul.mubr.bf16.gmra.mrb[184].mxu0 %v3682_v28  ;;  %v2978_v52 = vadd.f32 %v8575_v54, %v7871_v19  ;;  %v8693_v37 = vmul.f32 %v3482_v4, %v8590_v58 }
 0x8a2   : > { %v8673_v44 = vpop.f32.mrb[142].mxu1  ;;  %v8675_v20 = vpop.f32.mrb[142].mxu0  ;;  %v8696_v0 = vmul.f32 %v3481_v53, %v8592_v35  ;;  %v3483_v49 = vadd.f32 1.0, %v6073_v56  ;;  %v8698_v61 = vmul.f32 0.5, %v2974_v36  ;;  %6090 = verf.f32 %v3236_v60 }
 0x8a3   : > { %v6075_v55 = vpop.eup %6074  ;;  %v8681_v11 = vpop.f32.mrb[143].mxu1  ;;  %v3237_v45 = vmul.f32 0.70710677, %v2785_v57  ;;  %v3239_v48 = vmul.f32 0.70710677, %v2978_v52  ;;  %6092 = verf.f32 %v3238_v22  ;;  %v2789_v38 = vadd.f32 %v8603_v23, %v7865_v18 }
 0x8a4   : > { %v8683_v15 = vpop.f32.mrb[143].mxu0  ;;  %v6077_v16 = vpop.eup %6076  ;;  %v3484_v24 = vadd.f32 1.0, %v6075_v55  ;;  %v2982_v54 = vadd.f32 %v8605_v34, %v7867_v25  ;;  %v2791_v35 = vadd.f32 %v8609_v7, %v7869_v40  ;;  %v3685_v36 = vpack.c.bf16 %v8642_v14, %v8601_v43 }
 0x8a5   : > { %v6079_v42 = vpop.eup %6078  ;;  %v3486_v6 = vadd.f32 1.0, %v6077_v16  ;;  %6094 = verf.f32 %v3237_v45  ;;  %v8708_v21 = vmul.f32 0.5, %v2783_v13  ;;  %v3240_v56 = vmul.f32 0.70710677, %v2789_v38 }
 0x8a6   : > { %v6081_v58 = vpop.eup %6080  ;;  %v3485_v4 = vadd.f32 1.0, %v6079_v42  ;;  %6096 = verf.f32 %v3239_v48  ;;  %v2984_v23 = vadd.f32 %v8611_v63, %v7871_v19  ;;  %v8713_v60 = vmul.f32 %v3483_v49, %v8627_v62  ;;  %4086 = vmatprep.mubr.bf16.mxu1 %v3685_v36 }
 0x8a7   : > { %v6083_v53 = vpop.eup %6082  ;;  %v8716_v34 = vmul.f32 %v3484_v24, %v8629_v10  ;;  %v8718_v28 = vmul.f32 0.5, %v2976_v3  ;;  %v3242_v7 = vmul.f32 0.70710677, %v2982_v54  ;;  %v8721_v43 = vmul.f32 %v3486_v6, %v8639_v5 }
 0x8a8   : > { %v6085_v55 = vpop.eup %6084  ;;  %v3487_v14 = vadd.f32 1.0, %v6081_v58  ;;  %v8723_v13 = vmul.f32 0.5, %v2785_v57  ;;  %v8725_v22 = vmul.f32 0.5, %v2978_v52  ;;  %v8728_v63 = vmul.f32 %v3485_v4, %v8647_v9 }
 0x8a9   : > { %v3488_v62 = vadd.f32 1.0, %v6083_v53  ;;  %6098 = verf.f32 %v3240_v56  ;;  %v3241_v10 = vmul.f32 0.70710677, %v2791_v35  ;;  %v8730_v3 = vmul.f32 0.5, %v2789_v38 }
 0x8aa   : > { %v6087_v16 = vpop.eup %6086  ;;  %6100 = verf.f32 %v3242_v7  ;;  %v3243_v42 = vmul.f32 0.70710677, %v2984_v23  ;;  %v3687_v5 = vpack.c.bf16 %v8645_v59, %v8620_v32  ;;  %v3490_v24 = vadd.f32 1.0, %v6085_v55 }
 0x8ab   : > { %v6089_v49 = vpop.eup %6088  ;;  %6102 = verf.f32 %v3241_v10  ;;  %v2793_v57 = vadd.f32 %v8615_v29, %v7865_v18  ;;  %v2986_v9 = vadd.f32 %v8617_v47, %v7867_v25  ;;  %v3615_v52 = vmul.f32 %v3487_v14, %v8667_v2 }
 0x8ac   : > { %6104 = verf.f32 %v3243_v42  ;;  %4247 = vmatprep.mubr.bf16.mxu0 %v3687_v5  ;;  %v3684_v45 = vpack.c.bf16 %v8634_v39, %v8595_v33  ;;  %v3686_v48 = vpack.c.bf16 %v8637_v17, %v8598_v50  ;;  %v6091_v32 = vpop.eup %6090  ;;  %v8744_v59 = vmul.f32 %v3488_v62, %v8669_v31 }
 0x8ad   : > { %v3489_v6 = vadd.f32 1.0, %v6087_v16  ;;  %v8746_v38 = vmul.f32 0.5, %v2982_v54  ;;  %v3244_v29 = vmul.f32 0.70710677, %v2793_v57  ;;  %v6093_v58 = vpop.eup %6092  ;;  %v3491_v47 = vadd.f32 1.0, %v6089_v49 }
 0x8ae   : > { %v3246_v4 = vmul.f32 0.70710677, %v2986_v9  ;;  %4087 = vmatmul.mubr.bf16.gmra.mrb[188].mxu1 %v3684_v45  ;;  %4248 = vmatmul.mubr.bf16.gmra.mrb[188].mxu0 %v3686_v48  ;;  %v2795_v2 = vadd.f32 %v8623_v1, %v7869_v40  ;;  %v2988_v33 = vadd.f32 %v8625_v46, %v7871_v19  ;;  %v8753_v39 = vmul.f32 %v3490_v24, %v8677_v41 }
 0x8af   : > { %v6095_v50 = vpop.eup %6094  ;;  %v8755_v17 = vmul.f32 0.5, %v2791_v35  ;;  %6106 = verf.f32 %v3244_v29  ;;  %v8759_v31 = vadd.f32 %v8655_v27, %v7865_v18  ;;  %v3492_v36 = vadd.f32 1.0, %v6091_v32 }
 0x8b0   : > { %v6097_v54 = vpop.eup %6096  ;;  %6108 = verf.f32 %v3246_v4  ;;  %v3245_v53 = vmul.f32 0.70710677, %v2795_v2  ;;  %v8763_v1 = vadd.f32 %v8657_v12, %v7867_v25  ;;  %v8766_v46 = vmul.f32 %v3489_v6, %v8688_v30 }
 0x8b1   : > { %v3494_v41 = vadd.f32 1.0, %v6093_v58  ;;  %v8768_v56 = vmul.f32 0.5, %v2984_v23  ;;  %v3247_v35 = vmul.f32 0.70710677, %v2988_v33  ;;  %v8771_v7 = vmul.f32 %v3491_v47, %v8698_v61 }
 0x8b2   : > { %v3493_v27 = vadd.f32 1.0, %v6095_v50  ;;  %v3495_v55 = vadd.f32 1.0, %v6097_v54  ;;  %6110 = verf.f32 %v3245_v53  ;;  %v3116_v62 = vmul.f32 0.5, %v2793_v57 }
 0x8b3   : > { %v6099_v14 = vpop.eup %6098  ;;  %v3118_v10 = vmul.f32 0.5, %v2986_v9  ;;  %6112 = verf.f32 %v3247_v35  ;;  %v3248_v12 = vmul.f32 0.70710677, %v8759_v31  ;;  %v8775_v30 = vmul.f32 %v3492_v36, %v8708_v21 }
 0x8b4   : > { %v6101_v16 = vpop.eup %6100  ;;  %v3250_v23 = vmul.f32 0.70710677, %v8763_v1  ;;  %v8780_v42 = vadd.f32 %v8663_v26, %v7869_v40  ;;  %v8784_v61 = vadd.f32 %v8665_v8, %v7871_v19  ;;  %v8787_v49 = vmul.f32 %v3494_v41, %v8718_v28 }
 0x8b5   : > { %v6103_v5 = vpop.eup %6102  ;;  %v3117_v24 = vmul.f32 0.5, %v2795_v2  ;;  %v3689_v57 = vpack.c.bf16 %v8728_v63, %v8696_v0  ;;  %v3691_v21 = vpack.c.bf16 %v3615_v52, %v8713_v60  ;;  %v3621_v45 = vmul.f32 %v3493_v27, %v8723_v13 }
 0x8b6   : > { %v6105_v9 = vpop.eup %6104  ;;  %v3623_v26 = vmul.f32 %v3495_v55, %v8725_v22  ;;  %v3119_v48 = vmul.f32 0.5, %v2988_v33  ;;  %v3249_v32 = vmul.f32 0.70710677, %v8780_v42  ;;  %v3496_v8 = vadd.f32 1.0, %v6099_v14 }
 0x8b7   : > { %6114 = verf.f32 %v3248_v12  ;;  %v3251_v6 = vmul.f32 0.70710677, %v8784_v61  ;;  %4094 = vmatprep.mubr.bf16.mxu1 %v3689_v57  ;;  %4255 = vmatprep.mubr.bf16.mxu0 %v3691_v21  ;;  %v2803_v28 = vadd.f32 %v8673_v44, %v7865_v18  ;;  %v3498_v0 = vadd.f32 1.0, %v6101_v16 }
 0x8b8   : > { %6116 = verf.f32 %v3250_v23  ;;  %v2996_v60 = vadd.f32 %v8675_v20, %v7867_v25  ;;  %v3688_v13 = vpack.c.bf16 %v8716_v34, %v8686_v51  ;;  %v3497_v63 = vadd.f32 1.0, %v6103_v5 }
 0x8b9   : > { %v6107_v22 = vpop.eup %6106  ;;  %v3499_v52 = vadd.f32 1.0, %v6105_v9  ;;  %6118 = verf.f32 %v3249_v32  ;;  %v3252_v29 = vmul.f32 0.70710677, %v2803_v28  ;;  %v3690_v18 = vpack.c.bf16 %v8721_v43, %v8693_v37 }
 0x8ba   : > { %v6109_v58 = vpop.eup %6108  ;;  %v3500_v47 = vadd.f32 1.0, %v6107_v22  ;;  %6120 = verf.f32 %v3251_v6  ;;  %v3254_v4 = vmul.f32 0.70710677, %v2996_v60  ;;  %4095 = vmatmul.mubr.bf16.gmra.mrb[192].mxu1 %v3688_v13  ;;  %v2805_v25 = vadd.f32 %v8681_v11, %v7869_v40 }
 0x8bb   : > { %v3502_v44 = vadd.f32 1.0, %v6109_v58  ;;  %6122 = verf.f32 %v3252_v29  ;;  %v2998_v20 = vadd.f32 %v8683_v15, %v7871_v19  ;;  %4256 = vmatmul.mubr.bf16.gmra.mrb[192].mxu0 %v3690_v18  ;;  %v3693_v2 = vpack.c.bf16 %v3621_v45, %v8766_v46 }
 0x8bc   : > { %v6111_v51 = vpop.eup %6110  ;;  %v3628_v34 = vmul.f32 %v3500_v47, %v3116_v62  ;;  %6124 = verf.f32 %v3254_v4  ;;  %v3695_v33 = vpack.c.bf16 %v3623_v26, %v8771_v7  ;;  %v3624_v54 = vmul.f32 %v3496_v8, %v8730_v3 }
 0x8bd   : > { %v6113_v50 = vpop.eup %6112  ;;  %v3630_v37 = vmul.f32 %v3502_v44, %v3118_v10  ;;  %v3501_v43 = vadd.f32 1.0, %v6111_v51  ;;  %v3253_v36 = vmul.f32 0.70710677, %v2805_v25  ;;  %v3626_v53 = vmul.f32 %v3498_v0, %v8746_v38  ;;  %4102 = vmatprep.mubr.bf16.mxu1 %v3693_v2 }
 0x8be   : > { %v3503_v40 = vadd.f32 1.0, %v6113_v50  ;;  %v3255_v11 = vmul.f32 0.70710677, %v2998_v20  ;;  %4263 = vmatprep.mubr.bf16.mxu0 %v3695_v33  ;;  %v3692_v19 = vpack.c.bf16 %v8775_v30, %v8744_v59  ;;  %v3625_v15 = vmul.f32 %v3497_v63, %v8755_v17 }
 0x8bf   : > { %v3629_v46 = vmul.f32 %v3501_v43, %v3117_v24  ;;  %6126 = verf.f32 %v3253_v36  ;;  %v3694_v41 = vpack.c.bf16 %v8787_v49, %v8753_v39  ;;  %v3627_v3 = vmul.f32 %v3499_v52, %v8768_v56 }
 0x8c0   : > { %v3631_v35 = vmul.f32 %v3503_v40, %v3119_v48  ;;  %6128 = verf.f32 %v3255_v11  ;;  %v3696_v7 = vpack.c.bf16 %v3628_v34, %v3624_v54  ;;  %v3698_v55 = vpack.c.bf16 %v3630_v37, %v3626_v53  ;;  %v9526_v11 = vld [vmem:[#allocation24_spill] sm:$0xff] }
 0x8c1   : > { %v6115_v38 = vpop.eup %6114  ;;  %v3697_v27 = vpack.c.bf16 %v3629_v46, %v3625_v15  ;;  %v3120_v56 = vmul.f32 0.5, %v8759_v31  ;;  %v3124_v30 = vmul.f32 0.5, %v2803_v28  ;;  %v3122_v5 = vmul.f32 0.5, %v8763_v1  ;;  %v9527_v15 = vld [vmem:[#allocation25_spill] sm:$0xff] }
 0x8c2   : > { %v6117_v14 = vpop.eup %6116  ;;  %4103 = vmatmul.mubr.bf16.gmra.mrb[196].mxu1 %v3692_v19  ;;  %v3699_v62 = vpack.c.bf16 %v3631_v35, %v3627_v3  ;;  %v3504_v17 = vadd.f32 1.0, %v6115_v38  ;;  %v3126_v49 = vmul.f32 0.5, %v2996_v60  ;;  %v3121_v6 = vmul.f32 0.5, %v8780_v42 }
 0x8c3   : > { %v6119_v10 = vpop.eup %6118  ;;  %4110 = vmatprep.mubr.bf16.mxu1 %v3697_v27  ;;  %4264 = vmatmul.mubr.bf16.gmra.mrb[196].mxu0 %v3694_v41  ;;  %v3506_v16 = vadd.f32 1.0, %v6117_v14  ;;  %v3125_v0 = vmul.f32 0.5, %v2805_v25  ;;  %v3123_v28 = vmul.f32 0.5, %v8784_v61  ;;  %v3127_v22 = vmul.f32 0.5, %v2998_v20  ;;  %v8825_v61 = vld [vmem:[%s9525_s30] ss:$0 sm:$0xff] }
 0x8c4   : > { %v6121_v59 = vpop.eup %6120  ;;  %4271 = vmatprep.mubr.bf16.mxu0 %v3699_v62  ;;  %v3632_v57 = vmul.f32 %v3504_v17, %v3120_v56  ;;  %v3505_v21 = vadd.f32 1.0, %v6119_v10  ;;  %s4783_s30 = scalar_lea.sflag [#allocation4], %s6743_s20 }
 0x8c5   : > { %v6123_v12 = vpop.eup %6122  ;;  %v3634_v26 = vmul.f32 %v3506_v16, %v3122_v5  ;;  %v3507_v48 = vadd.f32 1.0, %v6121_v59  ;;  %v9529_v5 = vld [vmem:[#allocation27_spill] sm:$0xff] }
 0x8c6   : > { %v6125_v39 = vpop.eup %6124  ;;  %v3508_v23 = vadd.f32 1.0, %v6123_v12  ;;  %v3633_v63 = vmul.f32 %v3505_v21, %v3121_v6 }
 0x8c7   : > { %v3510_v24 = vadd.f32 1.0, %v6125_v39  ;;  %v3635_v29 = vmul.f32 %v3507_v48, %v3123_v28 }
 0x8c8   : > { %v3636_v9 = vmul.f32 %v3508_v23, %v3124_v30  ;;  %v9528_v30 = vld [vmem:[#allocation26_spill] sm:$0xff] }
 0x8c9   : > { %v6127_v45 = vpop.eup %6126  ;;  %v3638_v32 = vmul.f32 %v3510_v24, %v3126_v49 }
 0x8ca   : > { %v6129_v8 = vpop.eup %6128  ;;  %v3509_v13 = vadd.f32 1.0, %v6127_v45  ;;  %4111 = vmatmul.mubr.bf16.gmra.mrb[200].mxu1 %v3696_v7  ;;  %v3700_v31 = vpack.c.bf16 %v3636_v9, %v3632_v57 }
 0x8cb   : > { %v3511_v1 = vadd.f32 1.0, %v6129_v8  ;;  %v3702_v60 = vpack.c.bf16 %v3638_v32, %v3634_v26  ;;  %4272 = vmatmul.mubr.bf16.gmra.mrb[200].mxu0 %v3698_v55 }
 0x8cc   : > { %v3637_v52 = vmul.f32 %v3509_v13, %v3125_v0 }
 0x8cd   : > { %v3639_v58 = vmul.f32 %v3511_v1, %v3127_v22 }
 0x8ce   : > { %v3701_v47 = vpack.c.bf16 %v3637_v52, %v3633_v63  ;;  %v9531_v52 = vld [vmem:[#allocation18_spill] sm:$0xff] }
 0x8cf   : > { %v3703_v4 = vpack.c.bf16 %v3639_v58, %v3635_v29 }
 0x8d0   : > { %4118 = vmatprep.mubr.bf16.mxu1 %v3701_v47 }
 0x8d1   : > { %4279 = vmatprep.mubr.bf16.mxu0 %v3703_v4 }
 0x8d2   : > { %4119 = vmatmul.mubr.bf16.gmra.mrb[204].mxu1 %v3700_v31 }
 0x8d3   : > { %4280 = vmatmul.mubr.bf16.gmra.mrb[204].mxu0 %v3702_v60  ;;  %v9530_v60 = vld [vmem:[#allocation19_spill] sm:$0xff] }
 0x8db   : > { %v5154_v42 = vpop.f32.mrb[144].mxu1 }
 0x8dc   : > { %v5266_v18 = vpop.f32.mrb[144].mxu0  ;;  %v5155_v44 = vpop.f32.mrb[145].mxu1 }
 0x8dd   : > { %v5267_v25 = vpop.f32.mrb[145].mxu0  ;;  %v5156_v20 = vadd.f32 %v5155_v44, %v5154_v42  ;;  %v5157_v34 = vpop.f32.mrb[146].mxu1 }
 0x8de   : > { %v5268_v51 = vadd.f32 %v5267_v25, %v5266_v18  ;;  %v5269_v2 = vpop.f32.mrb[146].mxu0  ;;  %v5158_v33 = vpop.f32.mrb[147].mxu1 }
 0x8df   : > { %v5270_v50 = vpop.f32.mrb[147].mxu0  ;;  %v4001_v54 = vadd.f32 %v5156_v20, %v8825_v61  ;;  %v5159_v37 = vadd.f32 %v5158_v33, %v5157_v34 }
 0x8e0   : > { %v5271_v43 = vadd.f32 %v5270_v50, %v5269_v2 }
 0x8e1   : > { %v4162_v36 = vadd.f32 %v5268_v51, %v4001_v54  ;;  %v4004_v53 = vadd.f32 %v5159_v37, %v8825_v61 }
 0x8e3   : > { %v4165_v40 = vadd.f32 %v5271_v43, %v4004_v53  ;;  %v8830_v19 = vadd.f32 %v4162_v36, %v9526_v11  ;;  %v9532_v36 = vld [vmem:[#allocation21_spill] sm:$0xff] }
 0x8e5   : > { %4322 = vadd.xlane.f32.xlu0 %v8830_v19  ;;  %v8834_v46 = vadd.f32 %v4165_v40, %v9527_v15  ;;  %v9533_v40 = vld [vmem:[#allocation20_spill] sm:$0xff] }
 0x8e7   : > { %4324 = vadd.xlane.f32.xlu1 %v8834_v46 }
 0x8ea   : > { %v5160_v41 = vpop.f32.mrb[148].mxu1 }
 0x8eb   : > { %v5272_v3 = vpop.f32.mrb[148].mxu0  ;;  %v5161_v35 = vpop.f32.mrb[149].mxu1 }
 0x8ec   : > { %v5273_v7 = vpop.f32.mrb[149].mxu0  ;;  %v5162_v38 = vadd.f32 %v5161_v35, %v5160_v41  ;;  %v5163_v55 = vpop.f32.mrb[150].mxu1 }
 0x8ed   : > { %v5274_v27 = vadd.f32 %v5273_v7, %v5272_v3  ;;  %v5275_v14 = vpop.f32.mrb[150].mxu0  ;;  %v5164_v62 = vpop.f32.mrb[151].mxu1 }
 0x8ee   : > { %v5276_v10 = vpop.f32.mrb[151].mxu0  ;;  %v4009_v59 = vadd.f32 %v5162_v38, %v8825_v61  ;;  %v5165_v17 = vadd.f32 %v5164_v62, %v5163_v55 }
 0x8ef   : > { %v5277_v12 = vadd.f32 %v5276_v10, %v5275_v14 }
 0x8f0   : > { %v4170_v16 = vadd.f32 %v5274_v27, %v4009_v59  ;;  %v4012_v39 = vadd.f32 %v5165_v17, %v8825_v61 }
 0x8f2   : > { %v4173_v56 = vadd.f32 %v5277_v12, %v4012_v39  ;;  %v8840_v23 = vadd.f32 %v4170_v16, %v9528_v30 }
 0x8f4   : > { %4326 = vadd.xlane.f32.xlu0 %v8840_v23  ;;  %v8844_v49 = vadd.f32 %v4173_v56, %v9529_v5  ;;  %v9534_v56 = vld [vmem:[#allocation23_spill] sm:$0xff]  ;;  %v9535_v5 = vld [vmem:[#allocation22_spill] sm:$0xff] }
 0x8f6   : > { %4328 = vadd.xlane.f32.xlu1 %v8844_v49 }
 0x8f7   : > { %v5166_v24 = vpop.f32.mrb[152].mxu1  ;;  %v5278_v57 = vpop.f32.mrb[152].mxu0 }
 0x8f8   : > { %v5167_v21 = vpop.f32.mrb[153].mxu1  ;;  %v5279_v9 = vpop.f32.mrb[153].mxu0 }
 0x8f9   : > { %v5168_v45 = vadd.f32 %v5167_v21, %v5166_v24  ;;  %v5280_v26 = vadd.f32 %v5279_v9, %v5278_v57  ;;  %v5169_v48 = vpop.f32.mrb[154].mxu1  ;;  %v5281_v32 = vpop.f32.mrb[154].mxu0 }
 0x8fa   : > { %v5170_v8 = vpop.f32.mrb[155].mxu1  ;;  %v5282_v6 = vpop.f32.mrb[155].mxu0 }
 0x8fb   : > { %v4017_v0 = vadd.f32 %v5168_v45, %v8825_v61  ;;  %v5171_v13 = vadd.f32 %v5170_v8, %v5169_v48  ;;  %v5283_v31 = vadd.f32 %v5282_v6, %v5281_v32 }
 0x8fd   : > { %v4178_v28 = vadd.f32 %v5280_v26, %v4017_v0  ;;  %v4020_v22 = vadd.f32 %v5171_v13, %v8825_v61 }
 0x8ff   : > { %v4181_v1 = vadd.f32 %v5283_v31, %v4020_v22  ;;  %v8850_v63 = vadd.f32 %v4178_v28, %v9530_v60 }
 0x901   : > { %4330 = vadd.xlane.f32.xlu0 %v8850_v63  ;;  %v8854_v29 = vadd.f32 %v4181_v1, %v9531_v52  ;;  %v9536_v52 = vld [vmem:[#allocation28_spill] sm:$0xff] }
 0x903   : > { %4332 = vadd.xlane.f32.xlu1 %v8854_v29 }
 0x904   : > { %v5172_v58 = vpop.f32.mrb[156].mxu1  ;;  %v5284_v47 = vpop.f32.mrb[156].mxu0 }
 0x905   : > { %v5173_v4 = vpop.f32.mrb[157].mxu1  ;;  %v5285_v18 = vpop.f32.mrb[157].mxu0 }
 0x906   : > { %v5174_v42 = vadd.f32 %v5173_v4, %v5172_v58  ;;  %v5175_v44 = vpop.f32.mrb[158].mxu1  ;;  %v5286_v25 = vadd.f32 %v5285_v18, %v5284_v47  ;;  %v5287_v20 = vpop.f32.mrb[158].mxu0  ;;  %v9537_v47 = vld [vmem:[#allocation29_spill] sm:$0xff] }
 0x907   : > { %v5176_v51 = vpop.f32.mrb[159].mxu1  ;;  %v5288_v33 = vpop.f32.mrb[159].mxu0 }
 0x908   : > { %v4025_v34 = vadd.f32 %v5174_v42, %v8825_v61  ;;  %v5177_v2 = vadd.f32 %v5176_v51, %v5175_v44  ;;  %v5289_v50 = vadd.f32 %v5288_v33, %v5287_v20 }
 0x90a   : > { %v4186_v54 = vadd.f32 %v5286_v25, %v4025_v34  ;;  %v4028_v37 = vadd.f32 %v5177_v2, %v8825_v61 }
 0x90c   : > { %v4189_v43 = vadd.f32 %v5289_v50, %v4028_v37  ;;  %v8860_v53 = vadd.f32 %v4186_v54, %v9532_v36 }
 0x90e   : > { %4334 = vadd.xlane.f32.xlu0 %v8860_v53  ;;  %v8864_v11 = vadd.f32 %v4189_v43, %v9533_v40 }
 0x910   : > { %4336 = vadd.xlane.f32.xlu1 %v8864_v11 }
 0x911   : > { %v5178_v15 = vpop.f32.mrb[160].mxu1 }
 0x912   : > { %v5179_v41 = vpop.f32.mrb[161].mxu1 }
 0x913   : > { %v5180_v3 = vadd.f32 %v5179_v41, %v5178_v15  ;;  %v5181_v35 = vpop.f32.mrb[162].mxu1  ;;  %v5290_v7 = vpop.f32.mrb[160].mxu0 }
 0x914   : > { %v5182_v38 = vpop.f32.mrb[163].mxu1  ;;  %v5291_v55 = vpop.f32.mrb[161].mxu0 }
 0x915   : > { %v4033_v27 = vadd.f32 %v5180_v3, %v8825_v61  ;;  %v5183_v14 = vadd.f32 %v5182_v38, %v5181_v35  ;;  %v5292_v62 = vadd.f32 %v5291_v55, %v5290_v7  ;;  %v5293_v10 = vpop.f32.mrb[162].mxu0  ;;  %v9538_v35 = vld [vmem:[#allocation30_spill] sm:$0xff] }
 0x916   : > { %v5294_v17 = vpop.f32.mrb[163].mxu0 }
 0x917   : > { %v4036_v59 = vadd.f32 %v5183_v14, %v8825_v61  ;;  %v4194_v12 = vadd.f32 %v5292_v62, %v4033_v27  ;;  %v5295_v16 = vadd.f32 %v5294_v17, %v5293_v10  ;;  %v9539_v62 = vld [vmem:[#allocation31_spill] sm:$0xff] }
 0x919   : > { %v4197_v39 = vadd.f32 %v5295_v16, %v4036_v59  ;;  %v8870_v30 = vadd.f32 %v4194_v12, %v9534_v56 }
 0x91b   : > { %4338 = vadd.xlane.f32.xlu0 %v8870_v30  ;;  %v8874_v24 = vadd.f32 %v4197_v39, %v9535_v5 }
 0x91d   : > { %4340 = vadd.xlane.f32.xlu1 %v8874_v24 }
 0x91e   : > { %v5184_v57 = vpop.f32.mrb[164].mxu1 }
 0x91f   : > { %v5185_v21 = vpop.f32.mrb[165].mxu1 }
 0x920   : > { %v5186_v9 = vadd.f32 %v5185_v21, %v5184_v57  ;;  %v5187_v45 = vpop.f32.mrb[166].mxu1  ;;  %v5296_v26 = vpop.f32.mrb[164].mxu0 }
 0x921   : > { %v5188_v48 = vpop.f32.mrb[167].mxu1  ;;  %v5297_v8 = vpop.f32.mrb[165].mxu0 }
 0x922   : > { %v4041_v32 = vadd.f32 %v5186_v9, %v8825_v61  ;;  %v5189_v6 = vadd.f32 %v5188_v48, %v5187_v45  ;;  %v5298_v0 = vadd.f32 %v5297_v8, %v5296_v26  ;;  %v5299_v13 = vpop.f32.mrb[166].mxu0  ;;  %v9540_v48 = vld [vmem:[#allocation33_spill] sm:$0xff] }
 0x923   : > { %v5300_v28 = vpop.f32.mrb[167].mxu0 }
 0x924   : > { %v4044_v31 = vadd.f32 %v5189_v6, %v8825_v61  ;;  %v4202_v22 = vadd.f32 %v5298_v0, %v4041_v32  ;;  %v5301_v1 = vadd.f32 %v5300_v28, %v5299_v13 }
 0x926   : > { %v4205_v60 = vadd.f32 %v5301_v1, %v4044_v31  ;;  %v8880_v58 = vadd.f32 %v4202_v22, %v9536_v52  ;;  %v9541_v31 = vld [vmem:[#allocation32_spill] sm:$0xff] }
 0x928   : > { %4342 = vadd.xlane.f32.xlu0 %v8880_v58  ;;  %v8884_v4 = vadd.f32 %v4205_v60, %v9537_v47 }
 0x92a   : > { %4344 = vadd.xlane.f32.xlu1 %v8884_v4 }
 0x92b   : > { %v5190_v42 = vpop.f32.mrb[168].mxu1 }
 0x92c   : > { %v5191_v18 = vpop.f32.mrb[169].mxu1 }
 0x92d   : > { %v5192_v44 = vadd.f32 %v5191_v18, %v5190_v42  ;;  %v5193_v25 = vpop.f32.mrb[170].mxu1  ;;  %v5302_v20 = vpop.f32.mrb[168].mxu0 }
 0x92e   : > { %v5194_v51 = vpop.f32.mrb[171].mxu1  ;;  %v5303_v2 = vpop.f32.mrb[169].mxu0 }
 0x92f   : > { %v4049_v34 = vadd.f32 %v5192_v44, %v8825_v61  ;;  %v5195_v33 = vadd.f32 %v5194_v51, %v5193_v25  ;;  %v5304_v50 = vadd.f32 %v5303_v2, %v5302_v20  ;;  %v5305_v54 = vpop.f32.mrb[170].mxu0  ;;  %v9542_v2 = vld [vmem:[#allocation35_spill] sm:$0xff] }
 0x930   : > { %v5306_v43 = vpop.f32.mrb[171].mxu0 }
 0x931   : > { %v4052_v37 = vadd.f32 %v5195_v33, %v8825_v61  ;;  %v4210_v36 = vadd.f32 %v5304_v50, %v4049_v34  ;;  %v5307_v40 = vadd.f32 %v5306_v43, %v5305_v54 }
 0x933   : > { %v5196_v15 = vpop.f32.mrb[172].mxu1  ;;  %v4213_v41 = vadd.f32 %v5307_v40, %v4052_v37  ;;  %v8890_v7 = vadd.f32 %v4210_v36, %v9538_v35  ;;  %v9543_v36 = vld [vmem:[#allocation34_spill] sm:$0xff] }
 0x934   : > { %v5197_v3 = vpop.f32.mrb[173].mxu1 }
 0x935   : > { %v5198_v38 = vadd.f32 %v5197_v3, %v5196_v15  ;;  %v5199_v27 = vpop.f32.mrb[174].mxu1  ;;  %v5308_v55 = vpop.f32.mrb[172].mxu0  ;;  %4346 = vadd.xlane.f32.xlu0 %v8890_v7  ;;  %v8894_v10 = vadd.f32 %v4213_v41, %v9539_v62 }
 0x936   : > { %v5200_v14 = vpop.f32.mrb[175].mxu1  ;;  %v5309_v17 = vpop.f32.mrb[173].mxu0 }
 0x937   : > { %v4057_v59 = vadd.f32 %v5198_v38, %v8825_v61  ;;  %v5201_v12 = vadd.f32 %v5200_v14, %v5199_v27  ;;  %v5310_v16 = vadd.f32 %v5309_v17, %v5308_v55  ;;  %v5311_v39 = vpop.f32.mrb[174].mxu0  ;;  %4348 = vadd.xlane.f32.xlu1 %v8894_v10  ;;  %v9544_v17 = vld [vmem:[#allocation37_spill] sm:$0xff] }
 0x938   : > { %v5312_v5 = vpop.f32.mrb[175].mxu0 }
 0x939   : > { %v4060_v56 = vadd.f32 %v5201_v12, %v8825_v61  ;;  %v4218_v57 = vadd.f32 %v5310_v16, %v4057_v59  ;;  %v5313_v21 = vadd.f32 %v5312_v5, %v5311_v39  ;;  %v9545_v16 = vld [vmem:[#allocation36_spill] sm:$0xff] }
 0x93b   : > { %v5202_v9 = vpop.f32.mrb[176].mxu1  ;;  %v4221_v45 = vadd.f32 %v5313_v21, %v4060_v56  ;;  %v8900_v32 = vadd.f32 %v4218_v57, %v9540_v48 }
 0x93c   : > { %v5203_v26 = vpop.f32.mrb[177].mxu1 }
 0x93d   : > { %v5204_v8 = vadd.f32 %v5203_v26, %v5202_v9  ;;  %v5205_v6 = vpop.f32.mrb[178].mxu1  ;;  %v5314_v0 = vpop.f32.mrb[176].mxu0  ;;  %4350 = vadd.xlane.f32.xlu0 %v8900_v32  ;;  %v8904_v28 = vadd.f32 %v4221_v45, %v9541_v31 }
 0x93e   : > { %v5206_v13 = vpop.f32.mrb[179].mxu1  ;;  %v5315_v1 = vpop.f32.mrb[177].mxu0 }
 0x93f   : > { %v4065_v22 = vadd.f32 %v5204_v8, %v8825_v61  ;;  %v5207_v60 = vadd.f32 %v5206_v13, %v5205_v6  ;;  %v5316_v52 = vadd.f32 %v5315_v1, %v5314_v0  ;;  %v5317_v47 = vpop.f32.mrb[178].mxu0  ;;  %4352 = vadd.xlane.f32.xlu1 %v8904_v28 }
 0x940   : > { %v5318_v18 = vpop.f32.mrb[179].mxu0 }
 0x941   : > { %v4068_v42 = vadd.f32 %v5207_v60, %v8825_v61  ;;  %v4226_v44 = vadd.f32 %v5316_v52, %v4065_v22  ;;  %v5319_v25 = vadd.f32 %v5318_v18, %v5317_v47  ;;  %v9546_v52 = vld [vmem:[#allocation38_spill] sm:$0xff] }
 0x943   : > { %v5208_v20 = vpop.f32.mrb[180].mxu1  ;;  %v4229_v51 = vadd.f32 %v5319_v25, %v4068_v42  ;;  %v8910_v33 = vadd.f32 %v4226_v44, %v9542_v2  ;;  %v9547_v42 = vld [vmem:[#allocation39_spill] sm:$0xff] }
 0x944   : > { %v5209_v34 = vpop.f32.mrb[181].mxu1 }
 0x945   : > { %v5210_v50 = vadd.f32 %v5209_v34, %v5208_v20  ;;  %v5211_v54 = vpop.f32.mrb[182].mxu1  ;;  %v5320_v37 = vpop.f32.mrb[180].mxu0  ;;  %4354 = vadd.xlane.f32.xlu0 %v8910_v33  ;;  %v8914_v40 = vadd.f32 %v4229_v51, %v9543_v36 }
 0x946   : > { %v5212_v43 = vpop.f32.mrb[183].mxu1  ;;  %v5321_v41 = vpop.f32.mrb[181].mxu0 }
 0x947   : > { %v4073_v15 = vadd.f32 %v5210_v50, %v8825_v61  ;;  %v5213_v3 = vadd.f32 %v5212_v43, %v5211_v54  ;;  %v5322_v35 = vadd.f32 %v5321_v41, %v5320_v37  ;;  %v5323_v38 = vpop.f32.mrb[182].mxu0  ;;  %4356 = vadd.xlane.f32.xlu1 %v8914_v40 }
 0x948   : > { %v5324_v55 = vpop.f32.mrb[183].mxu0 }
 0x949   : > { %v4076_v27 = vadd.f32 %v5213_v3, %v8825_v61  ;;  %v4234_v14 = vadd.f32 %v5322_v35, %v4073_v15  ;;  %v5325_v62 = vadd.f32 %v5324_v55, %v5323_v38 }
 0x94b   : > { %v4237_v59 = vadd.f32 %v5325_v62, %v4076_v27  ;;  %v8920_v12 = vadd.f32 %v4234_v14, %v9544_v17  ;;  %v9548_v27 = vld [vmem:[#allocation40_spill] sm:$0xff]  ;;  %v9549_v14 = vld [vmem:[#allocation41_spill] sm:$0xff] }
 0x94d   : > { %4358 = vadd.xlane.f32.xlu0 %v8920_v12  ;;  %v8924_v39 = vadd.f32 %v4237_v59, %v9545_v16 }
 0x94f   : > { %4360 = vadd.xlane.f32.xlu1 %v8924_v39 }
 0x973   : > { %v5214_v56 = vpop.f32.mrb[184].mxu1 }
 0x974   : > { %v5326_v5 = vpop.f32.mrb[184].mxu0  ;;  %v5215_v57 = vpop.f32.mrb[185].mxu1 }
 0x975   : > { %v5216_v21 = vadd.f32 %v5215_v57, %v5214_v56  ;;  %v5327_v9 = vpop.f32.mrb[185].mxu0  ;;  %v5217_v45 = vpop.f32.mrb[186].mxu1 }
 0x976   : > { %v5328_v26 = vadd.f32 %v5327_v9, %v5326_v5  ;;  %v5329_v48 = vpop.f32.mrb[186].mxu0  ;;  %v5218_v8 = vpop.f32.mrb[187].mxu1 }
 0x977   : > { %v4081_v6 = vadd.f32 %v5216_v21, %v8825_v61  ;;  %v5219_v0 = vadd.f32 %v5218_v8, %v5217_v45  ;;  %v5330_v13 = vpop.f32.mrb[187].mxu0 }
 0x978   : > { %v5331_v31 = vadd.f32 %v5330_v13, %v5329_v48 }
 0x979   : > { %v4242_v22 = vadd.f32 %v5328_v26, %v4081_v6  ;;  %v4084_v1 = vadd.f32 %v5219_v0, %v8825_v61 }
 0x97b   : > { %v4245_v60 = vadd.f32 %v5331_v31, %v4084_v1  ;;  %v8930_v47 = vadd.f32 %v4242_v22, %v9546_v52  ;;  %v9550_v22 = vld [vmem:[#allocation42_spill] sm:$0xff] }
 0x97d   : > { %4362 = vadd.xlane.f32.xlu0 %v8930_v47  ;;  %v8934_v18 = vadd.f32 %v4245_v60, %v9547_v42 }
 0x97f   : > { %4364 = vadd.xlane.f32.xlu1 %v8934_v18 }
 0x981   : > { %v5220_v44 = vpop.f32.mrb[188].mxu1  ;;  %v5332_v25 = vpop.f32.mrb[188].mxu0 }
 0x982   : > { %v5221_v20 = vpop.f32.mrb[189].mxu1  ;;  %v5333_v51 = vpop.f32.mrb[189].mxu0 }
 0x983   : > { %v5222_v34 = vadd.f32 %v5221_v20, %v5220_v44  ;;  %v5334_v2 = vadd.f32 %v5333_v51, %v5332_v25  ;;  %v5223_v50 = vpop.f32.mrb[190].mxu1  ;;  %v5335_v54 = vpop.f32.mrb[190].mxu0 }
 0x984   : > { %v5224_v37 = vpop.f32.mrb[191].mxu1  ;;  %v5336_v15 = vpop.f32.mrb[191].mxu0 }
 0x985   : > { %v4089_v43 = vadd.f32 %v5222_v34, %v8825_v61  ;;  %v5225_v36 = vadd.f32 %v5224_v37, %v5223_v50  ;;  %v5337_v41 = vadd.f32 %v5336_v15, %v5335_v54  ;;  %v9551_v34 = vld [vmem:[#allocation43_spill] sm:$0xff] }
 0x987   : > { %v4250_v3 = vadd.f32 %v5334_v2, %v4089_v43  ;;  %v4092_v35 = vadd.f32 %v5225_v36, %v8825_v61 }
 0x989   : > { %v4253_v38 = vadd.f32 %v5337_v41, %v4092_v35  ;;  %v8940_v55 = vadd.f32 %v4250_v3, %v9548_v27  ;;  %v9552_v27 = vld [vmem:[#allocation44_spill] sm:$0xff] }
 0x98b   : > { %4366 = vadd.xlane.f32.xlu0 %v8940_v55  ;;  %v8944_v62 = vadd.f32 %v4253_v38, %v9549_v14 }
 0x98d   : > { %v5226_v59 = vpop.f32.mrb[192].mxu1  ;;  %4368 = vadd.xlane.f32.xlu1 %v8944_v62 }
 0x98e   : > { %v5227_v17 = vpop.f32.mrb[193].mxu1  ;;  %v5338_v16 = vpop.f32.mrb[192].mxu0 }
 0x98f   : > { %v5228_v56 = vadd.f32 %v5227_v17, %v5226_v59  ;;  %v5339_v5 = vpop.f32.mrb[193].mxu0  ;;  %v5229_v57 = vpop.f32.mrb[194].mxu1 }
 0x990   : > { %v5340_v9 = vadd.f32 %v5339_v5, %v5338_v16  ;;  %v5341_v45 = vpop.f32.mrb[194].mxu0  ;;  %v5230_v26 = vpop.f32.mrb[195].mxu1  ;;  %v9553_v5 = vld [vmem:[#allocation45_spill] sm:$0xff] }
 0x991   : > { %v4097_v21 = vadd.f32 %v5228_v56, %v8825_v61  ;;  %v5231_v48 = vadd.f32 %v5230_v26, %v5229_v57  ;;  %v5342_v8 = vpop.f32.mrb[195].mxu0 }
 0x992   : > { %v5343_v0 = vadd.f32 %v5342_v8, %v5341_v45 }
 0x993   : > { %v4258_v6 = vadd.f32 %v5340_v9, %v4097_v21  ;;  %v4100_v13 = vadd.f32 %v5231_v48, %v8825_v61 }
 0x995   : > { %v5232_v31 = vpop.f32.mrb[196].mxu1  ;;  %v8950_v1 = vadd.f32 %v4258_v6, %v9550_v22  ;;  %v4261_v60 = vadd.f32 %v5343_v0, %v4100_v13  ;;  %v4323_v22 = vpop.xlane.xlu0 %4322 }
 0x996   : > { %v5233_v52 = vpop.f32.mrb[197].mxu1  ;;  %v5344_v42 = vpop.f32.mrb[196].mxu0 }
 0x997   : > { %v5234_v44 = vadd.f32 %v5233_v52, %v5232_v31  ;;  %v5235_v25 = vpop.f32.mrb[198].mxu1  ;;  %4370 = vadd.xlane.f32.xlu0 %v8950_v1  ;;  %v5345_v20 = vpop.f32.mrb[197].mxu0  ;;  %v8954_v2 = vadd.f32 %v4261_v60, %v9551_v34 }
 0x998   : > { %v5236_v51 = vpop.f32.mrb[199].mxu1  ;;  %v5346_v54 = vadd.f32 %v5345_v20, %v5344_v42  ;;  %v5347_v37 = vpop.f32.mrb[198].mxu0  ;;  %v9554_v42 = vld [vmem:[#allocation46_spill] sm:$0xff] }
 0x999   : > { %v4105_v50 = vadd.f32 %v5234_v44, %v8825_v61  ;;  %v5237_v43 = vadd.f32 %v5236_v51, %v5235_v25  ;;  %v5348_v36 = vpop.f32.mrb[199].mxu0  ;;  %4372 = vadd.xlane.f32.xlu1 %v8954_v2  ;;  %v4325_v20 = vpop.xlane.xlu1 %4324 }
 0x99a   : > { %v5349_v3 = vadd.f32 %v5348_v36, %v5347_v37  ;;  %v4386_v36 = vmul.f32 0.0078125, %v4323_v22 }
 0x99b   : > { %v4266_v15 = vadd.f32 %v5346_v54, %v4105_v50  ;;  %v4108_v41 = vadd.f32 %v5237_v43, %v8825_v61  ;;  %v9555_v50 = vld [vmem:[#allocation47_spill] sm:$0xff] }
 0x99d   : > { %v4269_v35 = vadd.f32 %v5349_v3, %v4108_v41  ;;  %v5238_v38 = vpop.f32.mrb[200].mxu1  ;;  %v8960_v14 = vadd.f32 %v4266_v15, %v9552_v27  ;;  %v4327_v15 = vpop.xlane.xlu0 %4326 }
 0x99e   : > { %v5239_v59 = vpop.f32.mrb[201].mxu1  ;;  %v5350_v17 = vpop.f32.mrb[200].mxu0 }
 0x99f   : > { %v5240_v16 = vadd.f32 %v5239_v59, %v5238_v38  ;;  %v5241_v56 = vpop.f32.mrb[202].mxu1  ;;  %4374 = vadd.xlane.f32.xlu0 %v8960_v14  ;;  %v8964_v57 = vadd.f32 %v4269_v35, %v9553_v5  ;;  %v5351_v21 = vpop.f32.mrb[201].mxu0  ;;  %v8979_v5 = vsub.f32 %v8830_v19, %v4386_v36 }
 0x9a0   : > { %v5242_v9 = vpop.f32.mrb[203].mxu1  ;;  %v5352_v26 = vadd.f32 %v5351_v21, %v5350_v17  ;;  %v5353_v48 = vpop.f32.mrb[202].mxu0  ;;  %v4388_v21 = vmul.f32 0.0078125, %v4327_v15 }
 0x9a1   : > { %v4113_v45 = vadd.f32 %v5240_v16, %v8825_v61  ;;  %v5243_v8 = vadd.f32 %v5242_v9, %v5241_v56  ;;  %4376 = vadd.xlane.f32.xlu1 %v8964_v57  ;;  %v5354_v6 = vpop.f32.mrb[203].mxu0  ;;  %v4387_v56 = vmul.f32 0.0078125, %v4325_v20  ;;  %v4329_v9 = vpop.xlane.xlu1 %4328 }
 0x9a2   : > { %v5355_v31 = vadd.f32 %v5354_v6, %v5353_v48 }
 0x9a3   : > { %v4274_v0 = vadd.f32 %v5352_v26, %v4113_v45  ;;  %v4116_v13 = vadd.f32 %v5243_v8, %v8825_v61  ;;  %v9556_v26 = vld [vmem:[#allocation48_spill] sm:$0xff]  ;;  %v4331_v8 = vpop.xlane.xlu0 %4330 }
 0x9a4   : > { %v4390_v19 = vmul.f32 0.0078125, %v4331_v8 }
 0x9a5   : > { %v4277_v60 = vadd.f32 %v5355_v31, %v4116_v13  ;;  %v5244_v52 = vpop.f32.mrb[204].mxu1  ;;  %v8970_v44 = vadd.f32 %v4274_v0, %v9554_v42  ;;  %v8987_v0 = vsub.f32 %v8834_v46, %v4387_v56  ;;  %v4389_v13 = vmul.f32 0.0078125, %v4329_v9  ;;  %v4333_v22 = vpop.xlane.xlu1 %4332 }
 0x9a6   : > { %v5245_v25 = vpop.f32.mrb[205].mxu1  ;;  %v5356_v51 = vpop.f32.mrb[204].mxu0  ;;  %v8990_v31 = vsub.f32 %v8840_v23, %v4388_v21  ;;  %v4391_v46 = vmul.f32 0.0078125, %v4333_v22  ;;  %v9002_v20 = vsub.f32 %v8850_v63, %v4390_v19 }
 0x9a7   : > { %v5246_v34 = vadd.f32 %v5245_v25, %v5244_v52  ;;  %4378 = vadd.xlane.f32.xlu0 %v8970_v44  ;;  %v8974_v54 = vadd.f32 %v4277_v60, %v9555_v50  ;;  %v5357_v37 = vpop.f32.mrb[205].mxu0  ;;  %v5247_v43 = vpop.f32.mrb[206].mxu1  ;;  %v9557_v60 = vld [vmem:[#allocation49_spill] sm:$0xff]  ;;  %v8999_v25 = vsub.f32 %v8844_v49, %v4389_v13 }
 0x9a8   : > { %v5358_v41 = vadd.f32 %v5357_v37, %v5356_v51  ;;  %v5359_v35 = vpop.f32.mrb[206].mxu0  ;;  %v5248_v38 = vpop.f32.mrb[207].mxu1  ;;  %v4452_v50 = vmul.f32 %v8990_v31, %v8990_v31 }
 0x9a9   : > { %v4121_v3 = vadd.f32 %v5246_v34, %v8825_v61  ;;  %4380 = vadd.xlane.f32.xlu1 %v8974_v54  ;;  %v5360_v27 = vpop.f32.mrb[207].mxu0  ;;  %v5249_v17 = vadd.f32 %v5248_v38, %v5247_v43  ;;  %v4335_v42 = vpop.xlane.xlu0 %4334  ;;  %v4451_v34 = vmul.f32 %v8987_v0, %v8987_v0  ;;  %v9009_v43 = vsub.f32 %v8854_v29, %v4391_v46 }
 0x9aa   : > { %v5361_v16 = vadd.f32 %v5360_v27, %v5359_v35  ;;  %v4392_v23 = vmul.f32 0.0078125, %v4335_v42  ;;  %v4337_v51 = vpop.xlane.xlu1 %4336  ;;  %v4453_v49 = vmul.f32 %v8999_v25, %v8999_v25 }
 0x9ab   : > { %v4282_v59 = vadd.f32 %v5358_v41, %v4121_v3  ;;  %v4124_v45 = vadd.f32 %v5249_v17, %v8825_v61  ;;  %v4450_v61 = vmul.f32 %v8979_v5, %v8979_v5  ;;  %v4393_v36 = vmul.f32 0.0078125, %v4337_v51 }
 0x9ac   : > { %v9014_v63 = vsub.f32 %v8860_v53, %v4392_v23  ;;  %v4454_v3 = vmul.f32 %v9002_v20, %v9002_v20  ;;  %v4455_v29 = vmul.f32 %v9009_v43, %v9009_v43 }
 0x9ad   : > { %v8983_v48 = vadd.f32 %v4282_v59, %v9556_v26  ;;  %v4285_v6 = vadd.f32 %v5361_v16, %v4124_v45  ;;  %v4339_v37 = vpop.xlane.xlu0 %4338  ;;  %v9021_v27 = vsub.f32 %v8864_v11, %v4393_v36 }
 0x9ae   : > { %v4394_v15 = vmul.f32 0.0078125, %v4339_v37  ;;  %v4341_v41 = vpop.xlane.xlu1 %4340  ;;  %v4456_v17 = vmul.f32 %v9014_v63, %v9014_v63 }
 0x9af   : > { %4382 = vadd.xlane.f32.xlu0 %v8983_v48  ;;  %v8993_v52 = vadd.f32 %v4285_v6, %v9557_v60  ;;  %v4395_v38 = vmul.f32 0.0078125, %v4341_v41  ;;  %v4457_v11 = vmul.f32 %v9021_v27, %v9021_v27 }
 0x9b0   : > { %v9024_v59 = vsub.f32 %v8870_v30, %v4394_v15 }
 0x9b1   : > { %4384 = vadd.xlane.f32.xlu1 %v8993_v52  ;;  %v9029_v56 = vsub.f32 %v8874_v24, %v4395_v38 }
 0x9b2   : > { %v4458_v30 = vmul.f32 %v9024_v59, %v9024_v59 }
 0x9b3   : > { %4482 = vadd.xlane.f32.xlu0 %v4450_v61  ;;  %v4459_v6 = vmul.f32 %v9029_v56, %v9029_v56 }
 0x9b5   : > { %4484 = vadd.xlane.f32.xlu1 %v4451_v34  ;;  %v4343_v35 = vpop.xlane.xlu0 %4342 }
 0x9b6   : > { %v4396_v53 = vmul.f32 0.0078125, %v4343_v35 }
 0x9b7   : > { %4486 = vadd.xlane.f32.xlu0 %v4452_v50  ;;  %v4345_v16 = vpop.xlane.xlu1 %4344 }
 0x9b8   : > { %v9032_v21 = vsub.f32 %v8880_v58, %v4396_v53  ;;  %v4397_v9 = vmul.f32 0.0078125, %v4345_v16 }
 0x9b9   : > { %4488 = vadd.xlane.f32.xlu1 %v4453_v49 }
 0x9ba   : > { %v9041_v24 = vsub.f32 %v8884_v4, %v4397_v9  ;;  %v4460_v19 = vmul.f32 %v9032_v21, %v9032_v21 }
 0x9bb   : > { %4490 = vadd.xlane.f32.xlu0 %v4454_v3 }
 0x9bc   : > { %v4461_v61 = vmul.f32 %v9041_v24, %v9041_v24 }
 0x9bd   : > { %4492 = vadd.xlane.f32.xlu1 %v4455_v29 }
 0x9bf   : > { %4494 = vadd.xlane.f32.xlu0 %v4456_v17 }
 0x9c1   : > { %4496 = vadd.xlane.f32.xlu1 %v4457_v11 }
 0x9c2   : > { %v4347_v45 = vpop.xlane.xlu0 %4346 }
 0x9c3   : > { %v4398_v26 = vmul.f32 0.0078125, %v4347_v45  ;;  %4498 = vadd.xlane.f32.xlu0 %v4458_v30 }
 0x9c4   : > { %v4349_v8 = vpop.xlane.xlu1 %4348 }
 0x9c5   : > { %v9044_v58 = vsub.f32 %v8890_v7, %v4398_v26  ;;  %v4399_v13 = vmul.f32 0.0078125, %v4349_v8  ;;  %4500 = vadd.xlane.f32.xlu1 %v4459_v6 }
 0x9c7   : > { %4502 = vadd.xlane.f32.xlu0 %v4460_v19  ;;  %v9049_v22 = vsub.f32 %v8894_v10, %v4399_v13  ;;  %v4462_v4 = vmul.f32 %v9044_v58, %v9044_v58 }
 0x9c9   : > { %4504 = vadd.xlane.f32.xlu1 %v4461_v61  ;;  %v4463_v51 = vmul.f32 %v9049_v22, %v9049_v22 }
 0x9ca   : > { %v4351_v60 = vpop.xlane.xlu0 %4350 }
 0x9cb   : > { %v4400_v42 = vmul.f32 0.0078125, %v4351_v60  ;;  %4506 = vadd.xlane.f32.xlu0 %v4462_v4 }
 0x9cc   : > { %v4353_v46 = vpop.xlane.xlu1 %4352 }
 0x9cd   : > { %v9056_v7 = vsub.f32 %v8900_v32, %v4400_v42  ;;  %v4401_v23 = vmul.f32 0.0078125, %v4353_v46  ;;  %4508 = vadd.xlane.f32.xlu1 %v4463_v51 }
 0x9cf   : > { %v9061_v10 = vsub.f32 %v8904_v28, %v4401_v23  ;;  %v4464_v34 = vmul.f32 %v9056_v7, %v9056_v7 }
 0x9d1   : > { %4510 = vadd.xlane.f32.xlu0 %v4464_v34  ;;  %v4465_v37 = vmul.f32 %v9061_v10, %v9061_v10 }
 0x9d2   : > { %v4355_v50 = vpop.xlane.xlu0 %4354 }
 0x9d3   : > { %v4402_v49 = vmul.f32 0.0078125, %v4355_v50  ;;  %4512 = vadd.xlane.f32.xlu1 %v4465_v37 }
 0x9d4   : > { %v4357_v36 = vpop.xlane.xlu1 %4356 }
 0x9d5   : > { %v9068_v32 = vsub.f32 %v8910_v33, %v4402_v49  ;;  %v4403_v15 = vmul.f32 0.0078125, %v4357_v36 }
 0x9d7   : > { %v9071_v41 = vsub.f32 %v8914_v40, %v4403_v15  ;;  %v4466_v28 = vmul.f32 %v9068_v32, %v9068_v32 }
 0x9d9   : > { %4514 = vadd.xlane.f32.xlu0 %v4466_v28  ;;  %v4467_v3 = vmul.f32 %v9071_v41, %v9071_v41 }
 0x9da   : > { %v4359_v35 = vpop.xlane.xlu0 %4358 }
 0x9db   : > { %v4404_v38 = vmul.f32 0.0078125, %v4359_v35  ;;  %4516 = vadd.xlane.f32.xlu1 %v4467_v3 }
 0x9dc   : > { %v4361_v29 = vpop.xlane.xlu1 %4360 }
 0x9dd   : > { %v9078_v53 = vsub.f32 %v8920_v12, %v4404_v38  ;;  %v4405_v33 = vmul.f32 0.0078125, %v4361_v29 }
 0x9df   : > { %v9081_v17 = vsub.f32 %v8924_v39, %v4405_v33  ;;  %v4468_v40 = vmul.f32 %v9078_v53, %v9078_v53 }
 0x9e1   : > { %4518 = vadd.xlane.f32.xlu0 %v4468_v40  ;;  %v4469_v16 = vmul.f32 %v9081_v17, %v9081_v17 }
 0x9e3   : > { %4520 = vadd.xlane.f32.xlu1 %v4469_v16 }
 0xa0a   : > { %v4363_v9 = vpop.xlane.xlu0 %4362 }
 0xa0b   : > { %v4406_v45 = vmul.f32 0.0078125, %v4363_v9 }
 0xa0c   : > { %v4365_v11 = vpop.xlane.xlu1 %4364 }
 0xa0d   : > { %v9088_v30 = vsub.f32 %v8930_v47, %v4406_v45  ;;  %v4407_v12 = vmul.f32 0.0078125, %v4365_v11 }
 0xa0f   : > { %v9091_v26 = vsub.f32 %v8934_v18, %v4407_v12  ;;  %v4470_v39 = vmul.f32 %v9088_v30, %v9088_v30 }
 0xa11   : > { %4522 = vadd.xlane.f32.xlu0 %v4470_v39  ;;  %v4471_v8 = vmul.f32 %v9091_v26, %v9091_v26 }
 0xa13   : > { %4524 = vadd.xlane.f32.xlu1 %v4471_v8 }
 0xa18   : > { %v4367_v6 = vpop.xlane.xlu0 %4366 }
 0xa19   : > { %v4408_v13 = vmul.f32 0.0078125, %v4367_v6 }
 0xa1a   : > { %v4369_v19 = vpop.xlane.xlu1 %4368 }
 0xa1b   : > { %v9098_v60 = vsub.f32 %v8940_v55, %v4408_v13  ;;  %v4409_v47 = vmul.f32 0.0078125, %v4369_v19 }
 0xa1d   : > { %v9101_v61 = vsub.f32 %v8944_v62, %v4409_v47  ;;  %v4472_v18 = vmul.f32 %v9098_v60, %v9098_v60 }
 0xa1f   : > { %4526 = vadd.xlane.f32.xlu0 %v4472_v18  ;;  %v4473_v4 = vmul.f32 %v9101_v61, %v9101_v61 }
 0xa21   : > { %4528 = vadd.xlane.f32.xlu1 %v4473_v4 }
 0xa24   : > { %v4371_v42 = vpop.xlane.xlu0 %4370 }
 0xa25   : > { %v4410_v46 = vmul.f32 0.0078125, %v4371_v42 }
 0xa26   : > { %v4373_v51 = vpop.xlane.xlu1 %4372 }
 0xa27   : > { %v9108_v23 = vsub.f32 %v8950_v1, %v4410_v46  ;;  %v4411_v55 = vmul.f32 0.0078125, %v4373_v51 }
 0xa29   : > { %v4474_v34 = vmul.f32 %v9108_v23, %v9108_v23  ;;  %v9113_v62 = vsub.f32 %v8954_v2, %v4411_v55 }
 0xa2b   : > { %4530 = vadd.xlane.f32.xlu0 %v4474_v34  ;;  %v4475_v37 = vmul.f32 %v9113_v62, %v9113_v62 }
 0xa2c   : > { %v4375_v50 = vpop.xlane.xlu0 %4374 }
 0xa2d   : > { %v4412_v49 = vmul.f32 0.0078125, %v4375_v50  ;;  %4532 = vadd.xlane.f32.xlu1 %v4475_v37 }
 0xa2e   : > { %v4377_v36 = vpop.xlane.xlu1 %4376 }
 0xa2f   : > { %v9118_v15 = vsub.f32 %v8960_v14, %v4412_v49  ;;  %v4413_v1 = vmul.f32 0.0078125, %v4377_v36 }
 0xa31   : > { %v9121_v28 = vsub.f32 %v8964_v57, %v4413_v1  ;;  %v4476_v3 = vmul.f32 %v9118_v15, %v9118_v15 }
 0xa33   : > { %4534 = vadd.xlane.f32.xlu0 %v4476_v3  ;;  %v4477_v2 = vmul.f32 %v9121_v28, %v9121_v28 }
 0xa34   : > { %v4379_v35 = vpop.xlane.xlu0 %4378 }
 0xa35   : > { %v4414_v38 = vmul.f32 0.0078125, %v4379_v35  ;;  %4536 = vadd.xlane.f32.xlu1 %v4477_v2  ;;  %v9150_v35 = vld [vmem:[%s9558_s22] ss:$0 sm:$0xff]  ;;  %s6374_s22 = scalar_lea.vmem %s6373_s16, 8192 }
 0xa36   : > { %v4381_v29 = vpop.xlane.xlu1 %4380  ;;  %p6376_p1 = scmp.lt.s32.totalorder %s6374_s22, %s6368_s14 }
 0xa37   : > { %v9128_v33 = vsub.f32 %v8970_v44, %v4414_v38  ;;  %v4415_v14 = vmul.f32 0.0078125, %v4381_v29 }
 0xa38   : > { %p6377_p2 = por %p6376_p1, %p6375_p12 }
 0xa39   : > { %v9131_v40 = vsub.f32 %v8974_v54, %v4415_v14  ;;  %v4478_v57 = vmul.f32 %v9128_v33, %v9128_v33 }
 0xa3a   : > { %p6378_p13 = pnand %p6377_p2, %p6371_p7 }
 0xa3b   : > { %4538 = vadd.xlane.f32.xlu0 %v4478_v57  ;;  %v4479_v16 = vmul.f32 %v9131_v40, %v9131_v40 }
 0xa3c   : > { %v4383_v9 = vpop.xlane.xlu0 %4382 }
 0xa3d   : > { %v4416_v45 = vmul.f32 0.0078125, %v4383_v9  ;;  %4540 = vadd.xlane.f32.xlu1 %v4479_v16  ;;  %v9156_v9 = vld [vmem:[%s9559_s17] ss:$0 sm:$0xff] }
 0xa3e   : > { %v4385_v12 = vpop.xlane.xlu1 %4384 }
 0xa3f   : > { %v9138_v11 = vsub.f32 %v8983_v48, %v4416_v45  ;;  %v4417_v39 = vmul.f32 0.0078125, %v4385_v12 }
 0xa40   : > { %v4483_v44 = vpop.xlane.xlu0 %4482 }
 0xa41   : > { %v4546_v8 = vmul.f32 0.0078125, %v4483_v44  ;;  %v4480_v54 = vmul.f32 %v9138_v11, %v9138_v11  ;;  %v9143_v6 = vsub.f32 %v8993_v52, %v4417_v39 }
 0xa42   : > { %v4485_v19 = vpop.xlane.xlu1 %4484 }
 0xa43   : > { %v4578_v13 = vadd.f32 1e-05, %v4546_v8  ;;  %4542 = vadd.xlane.f32.xlu0 %v4480_v54  ;;  %v4547_v18 = vmul.f32 0.0078125, %v4485_v19  ;;  %v4481_v48 = vmul.f32 %v9143_v6, %v9143_v6 }
 0xa44   : > { %v4487_v47 = vpop.xlane.xlu0 %4486 }
 0xa45   : > { %6130 = vrsqrt.f32 %v4578_v13  ;;  %v4548_v4 = vmul.f32 0.0078125, %v4487_v47  ;;  %v4579_v42 = vadd.f32 1e-05, %v4547_v18  ;;  %4544 = vadd.xlane.f32.xlu1 %v4481_v48 }
 0xa46   : > { %v4489_v51 = vpop.xlane.xlu1 %4488 }
 0xa47   : > { %v4580_v46 = vadd.f32 1e-05, %v4548_v4  ;;  %6132 = vrsqrt.f32 %v4579_v42  ;;  %v4549_v34 = vmul.f32 0.0078125, %v4489_v51 }
 0xa48   : > { %v4491_v55 = vpop.xlane.xlu0 %4490 }
 0xa49   : > { %v4550_v50 = vmul.f32 0.0078125, %v4491_v55  ;;  %6134 = vrsqrt.f32 %v4580_v46  ;;  %v4581_v52 = vadd.f32 1e-05, %v4549_v34 }
 0xa4a   : > { %v4493_v49 = vpop.xlane.xlu1 %4492 }
 0xa4b   : > { %v4582_v37 = vadd.f32 1e-05, %v4550_v50  ;;  %6136 = vrsqrt.f32 %v4581_v52  ;;  %v4551_v1 = vmul.f32 0.0078125, %v4493_v49 }
 0xa4c   : > { %v4495_v36 = vpop.xlane.xlu0 %4494 }
 0xa4d   : > { %v4552_v3 = vmul.f32 0.0078125, %v4495_v36  ;;  %6138 = vrsqrt.f32 %v4582_v37  ;;  %v4583_v38 = vadd.f32 1e-05, %v4551_v1 }
 0xa4e   : > { %v4497_v57 = vpop.xlane.xlu1 %4496 }
 0xa4f   : > { %v6131_v2 = vpop.eup %6130  ;;  %v4584_v29 = vadd.f32 1e-05, %v4552_v3  ;;  %6140 = vrsqrt.f32 %v4583_v38  ;;  %v4553_v45 = vmul.f32 0.0078125, %v4497_v57 }
 0xa50   : > { %v4642_v14 = vmul.f32 %v6131_v2, %v8979_v5  ;;  %v4499_v16 = vpop.xlane.xlu0 %4498 }
 0xa51   : > { %v4554_v12 = vmul.f32 0.0078125, %v4499_v16  ;;  %6142 = vrsqrt.f32 %v4584_v29  ;;  %v6133_v39 = vpop.eup %6132  ;;  %v4585_v8 = vadd.f32 1e-05, %v4553_v45 }
 0xa52   : > { %v4680_v44 = vmul.f32 %v9150_v35, %v4642_v14  ;;  %v4643_v19 = vmul.f32 %v6133_v39, %v8987_v0  ;;  %v4501_v47 = vpop.xlane.xlu1 %4500 }
 0xa53   : > { %v4586_v54 = vadd.f32 1e-05, %v4554_v12  ;;  %v6135_v13 = vpop.eup %6134  ;;  %6144 = vrsqrt.f32 %v4585_v8  ;;  %v4555_v48 = vmul.f32 0.0078125, %v4501_v47 }
 0xa54   : > { %v4718_v5 = vadd.f32 %v9156_v9, %v4680_v44  ;;  %v4503_v18 = vpop.xlane.xlu0 %4502  ;;  %v4644_v4 = vmul.f32 %v6135_v13, %v8990_v31  ;;  %v4681_v46 = vmul.f32 %v9150_v35, %v4643_v19 }
 0xa55   : > { %v4556_v42 = vmul.f32 0.0078125, %v4503_v18  ;;  %6146 = vrsqrt.f32 %v4586_v54  ;;  %v6137_v51 = vpop.eup %6136  ;;  %v4587_v0 = vadd.f32 1e-05, %v4555_v48 }
 0xa56   : > { %4750 = vst [vmem:[%s9164_s11] sm:$0xff] %v4718_v5  ;;  %v4682_v55 = vmul.f32 %v9150_v35, %v4644_v4  ;;  %v4719_v31 = vadd.f32 %v9156_v9, %v4681_v46  ;;  %v4645_v52 = vmul.f32 %v6137_v51, %v8999_v25  ;;  %v4505_v37 = vpop.xlane.xlu1 %4504 }
 0xa57   : > { %v4588_v34 = vadd.f32 1e-05, %v4556_v42  ;;  %v6139_v50 = vpop.eup %6138  ;;  %6148 = vrsqrt.f32 %v4587_v0  ;;  %v4557_v3 = vmul.f32 0.0078125, %v4505_v37 }
 0xa58   : > { %v4507_v49 = vpop.xlane.xlu0 %4506  ;;  %v4720_v36 = vadd.f32 %v9156_v9, %v4682_v55  ;;  %v4646_v1 = vmul.f32 %v6139_v50, %v9002_v20  ;;  %4751 = vst [vmem:[%s9164_s11 + $0x8] sm:$0xff] %v4719_v31  ;;  %v4683_v2 = vmul.f32 %v9150_v35, %v4645_v52 }
 0xa59   : > { %6150 = vrsqrt.f32 %v4588_v34  ;;  %v4558_v38 = vmul.f32 0.0078125, %v4507_v49  ;;  %v6141_v29 = vpop.eup %6140  ;;  %v4589_v57 = vadd.f32 1e-05, %v4557_v3 }
 0xa5a   : > { %4752 = vst [vmem:[%s9164_s11 + $0x10] sm:$0xff] %v4720_v36  ;;  %v4684_v14 = vmul.f32 %v9150_v35, %v4646_v1  ;;  %v4721_v16 = vadd.f32 %v9156_v9, %v4683_v2  ;;  %v4647_v45 = vmul.f32 %v6141_v29, %v9009_v43  ;;  %v4509_v12 = vpop.xlane.xlu1 %4508 }
 0xa5b   : > { %v6143_v25 = vpop.eup %6142  ;;  %v4590_v20 = vadd.f32 1e-05, %v4558_v38  ;;  %6152 = vrsqrt.f32 %v4589_v57  ;;  %v4559_v8 = vmul.f32 0.0078125, %v4509_v12 }
 0xa5c   : > { %v4722_v44 = vadd.f32 %v9156_v9, %v4684_v14  ;;  %v4648_v39 = vmul.f32 %v6143_v25, %v9014_v63  ;;  %4753 = vst [vmem:[%s9164_s11 + $0x18] sm:$0xff] %v4721_v16  ;;  %v4685_v13 = vmul.f32 %v9150_v35, %v4647_v45 }
 0xa5d   : > { %6154 = vrsqrt.f32 %v4590_v20  ;;  %v6145_v19 = vpop.eup %6144  ;;  %v4591_v47 = vadd.f32 1e-05, %v4559_v8 }
 0xa5e   : > { %v4511_v54 = vpop.xlane.xlu0 %4510  ;;  %4754 = vst [vmem:[%s9164_s11 + $0x20] sm:$0xff] %v4722_v44  ;;  %v4686_v43 = vmul.f32 %v9150_v35, %v4648_v39  ;;  %v4723_v4 = vadd.f32 %v9156_v9, %v4685_v13  ;;  %v4649_v63 = vmul.f32 %v6145_v19, %v9021_v27 }
 0xa5f   : > { %v4560_v5 = vmul.f32 0.0078125, %v4511_v54  ;;  %v6147_v18 = vpop.eup %6146  ;;  %6156 = vrsqrt.f32 %v4591_v47 }
 0xa60   : > { %v4513_v42 = vpop.xlane.xlu1 %4512  ;;  %v4724_v46 = vadd.f32 %v9156_v9, %v4686_v43  ;;  %v4650_v51 = vmul.f32 %v6147_v18, %v9024_v59  ;;  %4755 = vst [vmem:[%s9164_s11 + $0x28] sm:$0xff] %v4723_v4  ;;  %v4687_v0 = vmul.f32 %v9150_v35, %v4649_v63 }
 0xa61   : > { %v4592_v48 = vadd.f32 1e-05, %v4560_v5  ;;  %v4561_v55 = vmul.f32 0.0078125, %v4513_v42  ;;  %v6149_v34 = vpop.eup %6148 }
 0xa62   : > { %4756 = vst [vmem:[%s9164_s11 + $0x30] sm:$0xff] %v4724_v46  ;;  %v4688_v50 = vmul.f32 %v9150_v35, %v4650_v51  ;;  %v4725_v52 = vadd.f32 %v9156_v9, %v4687_v0  ;;  %v4651_v37 = vmul.f32 %v6149_v34, %v9029_v56 }
 0xa63   : > { %6158 = vrsqrt.f32 %v4592_v48  ;;  %v4593_v31 = vadd.f32 1e-05, %v4561_v55  ;;  %v6151_v27 = vpop.eup %6150 }
 0xa64   : > { %v4726_v59 = vadd.f32 %v9156_v9, %v4688_v50  ;;  %v4652_v49 = vmul.f32 %v6151_v27, %v9032_v21  ;;  %4757 = vst [vmem:[%s9164_s11 + $0x38] sm:$0xff] %v4725_v52  ;;  %v4689_v1 = vmul.f32 %v9150_v35, %v4651_v37 }
 0xa65   : > { %6160 = vrsqrt.f32 %v4593_v31  ;;  %v6153_v2 = vpop.eup %6152 }
 0xa66   : > { %v4515_v36 = vpop.xlane.xlu0 %4514  ;;  %4758 = vst [vmem:[%s9164_s11 + $0x40] sm:$0xff] %v4726_v59  ;;  %v4690_v38 = vmul.f32 %v9150_v35, %v4652_v49  ;;  %v4727_v56 = vadd.f32 %v9156_v9, %v4689_v1  ;;  %v4653_v57 = vmul.f32 %v6153_v2, %v9041_v24 }
 0xa67   : > { %v4562_v3 = vmul.f32 0.0078125, %v4515_v36  ;;  %v6155_v14 = vpop.eup %6154 }
 0xa68   : > { %v4517_v29 = vpop.xlane.xlu1 %4516  ;;  %v4728_v16 = vadd.f32 %v9156_v9, %v4690_v38  ;;  %v4654_v45 = vmul.f32 %v6155_v14, %v9044_v58  ;;  %4759 = vst [vmem:[%s9164_s11 + $0x48] sm:$0xff] %v4727_v56  ;;  %v4691_v20 = vmul.f32 %v9150_v35, %v4653_v57 }
 0xa69   : > { %v4594_v25 = vadd.f32 1e-05, %v4562_v3  ;;  %v4563_v21 = vmul.f32 0.0078125, %v4517_v29  ;;  %v6157_v44 = vpop.eup %6156 }
 0xa6a   : > { %4760 = vst [vmem:[%s9164_s11 + $0x50] sm:$0xff] %v4728_v16  ;;  %v4692_v39 = vmul.f32 %v9150_v35, %v4654_v45  ;;  %v4729_v24 = vadd.f32 %v9156_v9, %v4691_v20  ;;  %v4655_v54 = vmul.f32 %v6157_v44, %v9049_v22 }
 0xa6b   : > { %6162 = vrsqrt.f32 %v4594_v25  ;;  %v4595_v12 = vadd.f32 1e-05, %v4563_v21 }
 0xa6c   : > { %v4730_v13 = vadd.f32 %v9156_v9, %v4692_v39  ;;  %4761 = vst [vmem:[%s9164_s11 + $0x58] sm:$0xff] %v4729_v24  ;;  %v4693_v19 = vmul.f32 %v9150_v35, %v4655_v54 }
 0xa6d   : > { %v6159_v8 = vpop.eup %6158  ;;  %6164 = vrsqrt.f32 %v4595_v12 }
 0xa6e   : > { %v4656_v58 = vmul.f32 %v6159_v8, %v9056_v7  ;;  %v4519_v5 = vpop.xlane.xlu0 %4518  ;;  %4762 = vst [vmem:[%s9164_s11 + $0x60] sm:$0xff] %v4730_v13  ;;  %v4731_v22 = vadd.f32 %v9156_v9, %v4693_v19 }
 0xa6f   : > { %v4564_v43 = vmul.f32 0.0078125, %v4519_v5  ;;  %v6161_v47 = vpop.eup %6160 }
 0xa70   : > { %v4694_v18 = vmul.f32 %v9150_v35, %v4656_v58  ;;  %v4521_v4 = vpop.xlane.xlu1 %4520  ;;  %v4657_v63 = vmul.f32 %v6161_v47, %v9061_v10  ;;  %4763 = vst [vmem:[%s9164_s11 + $0x68] sm:$0xff] %v4731_v22 }
 0xa71   : > { %v4596_v48 = vadd.f32 1e-05, %v4564_v43  ;;  %v4565_v42 = vmul.f32 0.0078125, %v4521_v4 }
 0xa72   : > { %v4732_v7 = vadd.f32 %v9156_v9, %v4694_v18  ;;  %v4695_v46 = vmul.f32 %v9150_v35, %v4657_v63 }
 0xa73   : > { %6166 = vrsqrt.f32 %v4596_v48  ;;  %v4597_v51 = vadd.f32 1e-05, %v4565_v42 }
 0xa74   : > { %4764 = vst [vmem:[%s9164_s11 + $0x70] sm:$0xff] %v4732_v7  ;;  %v4733_v0 = vadd.f32 %v9156_v9, %v4695_v46 }
 0xa75   : > { %v6163_v55 = vpop.eup %6162  ;;  %6168 = vrsqrt.f32 %v4597_v51 }
 0xa76   : > { %v4658_v34 = vmul.f32 %v6163_v55, %v9068_v32  ;;  %4765 = vst [vmem:[%s9164_s11 + $0x78] sm:$0xff] %v4733_v0 }
 0xa77   : > { %v6165_v50 = vpop.eup %6164 }
 0xa78   : > { %v4696_v10 = vmul.f32 %v9150_v35, %v4658_v34  ;;  %v4659_v31 = vmul.f32 %v6165_v50, %v9071_v41 }
 0xa7a   : > { %v4734_v27 = vadd.f32 %v9156_v9, %v4696_v10  ;;  %v4697_v52 = vmul.f32 %v9150_v35, %v4659_v31 }
 0xa7c   : > { %4766 = vst [vmem:[%s9164_s11 + $0x80] sm:$0xff] %v4734_v27  ;;  %v4735_v37 = vadd.f32 %v9156_v9, %v4697_v52 }
 0xa7d   : > { %v6167_v59 = vpop.eup %6166 }
 0xa7e   : > { %4767 = vst [vmem:[%s9164_s11 + $0x88] sm:$0xff] %v4735_v37  ;;  %v4660_v49 = vmul.f32 %v6167_v59, %v9078_v53 }
 0xa7f   : > { %v6169_v32 = vpop.eup %6168 }
 0xa80   : > { %v4698_v36 = vmul.f32 %v9150_v35, %v4660_v49  ;;  %v4661_v1 = vmul.f32 %v6169_v32, %v9081_v17 }
 0xa82   : > { %v4736_v3 = vadd.f32 %v9156_v9, %v4698_v36  ;;  %v4699_v41 = vmul.f32 %v9150_v35, %v4661_v1 }
 0xa84   : > { %4768 = vst [vmem:[%s9164_s11 + $0x90] sm:$0xff] %v4736_v3  ;;  %v4737_v2 = vadd.f32 %v9156_v9, %v4699_v41 }
 0xa86   : > { %4769 = vst [vmem:[%s9164_s11 + $0x98] sm:$0xff] %v4737_v2 }
 0xa9e   : > { %v4523_v38 = vpop.xlane.xlu0 %4522 }
 0xa9f   : > { %v4566_v29 = vmul.f32 0.0078125, %v4523_v38 }
 0xaa0   : > { %v4525_v14 = vpop.xlane.xlu1 %4524 }
 0xaa1   : > { %v4598_v56 = vadd.f32 1e-05, %v4566_v29  ;;  %v4567_v57 = vmul.f32 0.0078125, %v4525_v14 }
 0xaa3   : > { %6170 = vrsqrt.f32 %v4598_v56  ;;  %v4599_v53 = vadd.f32 1e-05, %v4567_v57 }
 0xaa5   : > { %6172 = vrsqrt.f32 %v4599_v53 }
 0xaac   : > { %v4527_v25 = vpop.xlane.xlu0 %4526 }
 0xaad   : > { %v6171_v21 = vpop.eup %6170  ;;  %v4568_v17 = vmul.f32 0.0078125, %v4527_v25 }
 0xaae   : > { %v4662_v16 = vmul.f32 %v6171_v21, %v9088_v30  ;;  %v4529_v45 = vpop.xlane.xlu1 %4528 }
 0xaaf   : > { %v6173_v20 = vpop.eup %6172  ;;  %v4600_v12 = vadd.f32 1e-05, %v4568_v17  ;;  %v4569_v44 = vmul.f32 0.0078125, %v4529_v45 }
 0xab0   : > { %v4700_v39 = vmul.f32 %v9150_v35, %v4662_v16  ;;  %v4663_v8 = vmul.f32 %v6173_v20, %v9091_v26 }
 0xab1   : > { %6174 = vrsqrt.f32 %v4600_v12  ;;  %v4601_v24 = vadd.f32 1e-05, %v4569_v44 }
 0xab2   : > { %v4738_v54 = vadd.f32 %v9156_v9, %v4700_v39  ;;  %v4701_v13 = vmul.f32 %v9150_v35, %v4663_v8 }
 0xab3   : > { %6176 = vrsqrt.f32 %v4601_v24 }
 0xab4   : > { %4770 = vst [vmem:[%s9164_s11 + $0xa0] sm:$0xff] %v4738_v54  ;;  %v4739_v58 = vadd.f32 %v9156_v9, %v4701_v13 }
 0xab6   : > { %4771 = vst [vmem:[%s9164_s11 + $0xa8] sm:$0xff] %v4739_v58 }
 0xab8   : > { %v4531_v30 = vpop.xlane.xlu0 %4530 }
 0xab9   : > { %v4570_v5 = vmul.f32 0.0078125, %v4531_v30 }
 0xaba   : > { %v4533_v47 = vpop.xlane.xlu1 %4532 }
 0xabb   : > { %v6175_v19 = vpop.eup %6174  ;;  %v4602_v43 = vadd.f32 1e-05, %v4570_v5  ;;  %v4571_v26 = vmul.f32 0.0078125, %v4533_v47 }
 0xabc   : > { %v4664_v18 = vmul.f32 %v6175_v19, %v9098_v60 }
 0xabd   : > { %v6177_v4 = vpop.eup %6176  ;;  %6178 = vrsqrt.f32 %v4602_v43  ;;  %v4603_v48 = vadd.f32 1e-05, %v4571_v26 }
 0xabe   : > { %v4702_v22 = vmul.f32 %v9150_v35, %v4664_v18  ;;  %v4665_v63 = vmul.f32 %v6177_v4, %v9101_v61 }
 0xabf   : > { %6180 = vrsqrt.f32 %v4603_v48 }
 0xac0   : > { %v4740_v42 = vadd.f32 %v9156_v9, %v4702_v22  ;;  %v4703_v7 = vmul.f32 %v9150_v35, %v4665_v63  ;;  %v4535_v46 = vpop.xlane.xlu0 %4534 }
 0xac1   : > { %v4572_v51 = vmul.f32 0.0078125, %v4535_v46 }
 0xac2   : > { %4772 = vst [vmem:[%s9164_s11 + $0xb0] sm:$0xff] %v4740_v42  ;;  %v4741_v55 = vadd.f32 %v9156_v9, %v4703_v7  ;;  %v4537_v60 = vpop.xlane.xlu1 %4536 }
 0xac3   : > { %v4604_v0 = vadd.f32 1e-05, %v4572_v51  ;;  %v4573_v34 = vmul.f32 0.0078125, %v4537_v60 }
 0xac4   : > { %4773 = vst [vmem:[%s9164_s11 + $0xb8] sm:$0xff] %v4741_v55 }
 0xac5   : > { %6182 = vrsqrt.f32 %v4604_v0  ;;  %v4605_v50 = vadd.f32 1e-05, %v4573_v34 }
 0xac7   : > { %v6179_v10 = vpop.eup %6178  ;;  %6184 = vrsqrt.f32 %v4605_v50 }
 0xac8   : > { %v4666_v61 = vmul.f32 %v6179_v10, %v9108_v23  ;;  %v4539_v31 = vpop.xlane.xlu0 %4538 }
 0xac9   : > { %v4574_v27 = vmul.f32 0.0078125, %v4539_v31  ;;  %v6181_v52 = vpop.eup %6180 }
 0xaca   : > { %v4704_v37 = vmul.f32 %v9150_v35, %v4666_v61  ;;  %v4541_v59 = vpop.xlane.xlu1 %4540  ;;  %v4667_v49 = vmul.f32 %v6181_v52, %v9113_v62 }
 0xacb   : > { %v4606_v32 = vadd.f32 1e-05, %v4574_v27  ;;  %v4575_v36 = vmul.f32 0.0078125, %v4541_v59 }
 0xacc   : > { %v4742_v1 = vadd.f32 %v9156_v9, %v4704_v37  ;;  %v4705_v3 = vmul.f32 %v9150_v35, %v4667_v49 }
 0xacd   : > { %6186 = vrsqrt.f32 %v4606_v32  ;;  %v4607_v41 = vadd.f32 1e-05, %v4575_v36 }
 0xace   : > { %4774 = vst [vmem:[%s9164_s11 + $0xc0] sm:$0xff] %v4742_v1  ;;  %v4743_v23 = vadd.f32 %v9156_v9, %v4705_v3 }
 0xacf   : > { %v6183_v2 = vpop.eup %6182  ;;  %6188 = vrsqrt.f32 %v4607_v41 }
 0xad0   : > { %v4668_v38 = vmul.f32 %v6183_v2, %v9118_v15  ;;  %v4543_v29 = vpop.xlane.xlu0 %4542  ;;  %4775 = vst [vmem:[%s9164_s11 + $0xc8] sm:$0xff] %v4743_v23 }
 0xad1   : > { %v6185_v14 = vpop.eup %6184  ;;  %v4576_v62 = vmul.f32 0.0078125, %v4543_v29 }
 0xad2   : > { %v4706_v56 = vmul.f32 %v9150_v35, %v4668_v38  ;;  %v4669_v57 = vmul.f32 %v6185_v14, %v9121_v28  ;;  %v4545_v17 = vpop.xlane.xlu1 %4544 }
 0xad3   : > { %v4608_v53 = vadd.f32 1e-05, %v4576_v62  ;;  %v4577_v16 = vmul.f32 0.0078125, %v4545_v17 }
 0xad4   : > { %v4744_v25 = vadd.f32 %v9156_v9, %v4706_v56  ;;  %v4707_v21 = vmul.f32 %v9150_v35, %v4669_v57 }
 0xad5   : > { %6190 = vrsqrt.f32 %v4608_v53  ;;  %v4609_v20 = vadd.f32 1e-05, %v4577_v16 }
 0xad6   : > { %4776 = vst [vmem:[%s9164_s11 + $0xd0] sm:$0xff] %v4744_v25  ;;  %v4745_v15 = vadd.f32 %v9156_v9, %v4707_v21 }
 0xad7   : > { %v6187_v45 = vpop.eup %6186  ;;  %6192 = vrsqrt.f32 %v4609_v20 }
 0xad8   : > { %4777 = vst [vmem:[%s9164_s11 + $0xd8] sm:$0xff] %v4745_v15  ;;  %v4670_v12 = vmul.f32 %v6187_v45, %v9128_v33 }
 0xad9   : > { %v6189_v28 = vpop.eup %6188 }
 0xada   : > { %v4708_v44 = vmul.f32 %v9150_v35, %v4670_v12  ;;  %v4671_v39 = vmul.f32 %v6189_v28, %v9131_v40 }
 0xadc   : > { %v4746_v8 = vadd.f32 %v9156_v9, %v4708_v44  ;;  %v4709_v24 = vmul.f32 %v9150_v35, %v4671_v39 }
 0xade   : > { %4778 = vst [vmem:[%s9164_s11 + $0xe0] sm:$0xff] %v4746_v8  ;;  %v4747_v54 = vadd.f32 %v9156_v9, %v4709_v24 }
 0xadf   : > { %v6191_v13 = vpop.eup %6190 }
 0xae0   : > { %4779 = vst [vmem:[%s9164_s11 + $0xe8] sm:$0xff] %v4747_v54  ;;  %v4672_v33 = vmul.f32 %v6191_v13, %v9138_v11 }
 0xae1   : > { %v6193_v30 = vpop.eup %6192 }
 0xae2   : > { %v4710_v58 = vmul.f32 %v9150_v35, %v4672_v33  ;;  %v4673_v40 = vmul.f32 %v6193_v30, %v9143_v6 }
 0xae4   : > { %v4748_v5 = vadd.f32 %v9156_v9, %v4710_v58  ;;  %v4711_v19 = vmul.f32 %v9150_v35, %v4673_v40 }
 0xae6   : > { %4780 = vst [vmem:[%s9164_s11 + $0xf0] sm:$0xff] %v4748_v5  ;;  %v4749_v11 = vadd.f32 %v9156_v9, %v4711_v19 }
 0xae8   : > { %4781 = vst [vmem:[%s9164_s11 + $0xf8] sm:$0xff] %v4749_v11 }
 0xae9   : > { %6381 = shalt.err (!%p6378_p13)
}
 0xaea   : > { %s6382_s21 = scalar_lea.hbm %s9292_s12, 4096  ;;  %s6386_s11 = scalar_lea.hbm %s9560_s19, 8192 }
 0xaeb   : > { %p6383_p9 = scmp.ne.s32.totalorder %s9292_s12, %s6382_s21  ;;  %p6387_p4 = scmp.lt.u32.totalorder %s9292_s12, %s9560_s19 }
 0xaec   : > { %p6388_p8 = scmp.lt.u32.totalorder %s6386_s11, %s6382_s21  ;;  %p6390_p3 = scmp.lt.u32.totalorder %s6382_s21, %s9292_s12 }
 0xaed   : > { %p6384_p0 = pnand %p6383_p9, %p6688_p10 }
 0xaee   : > { %p6389_p6 = por %p6388_p8, %p6387_p4 }
 0xaef   : > { %p6385_p11 = pneg %p6384_p0 }
 0xaf0   : > { %p6391_p5 = por %p6390_p3, %p6389_p6 }
 0xaf2   : > { %p6392_p7 = pnand %p6391_p5, %p6385_p11 }
 0xaf4   : > { %6395 = shalt.err (!%p6392_p7)
}
 0xaf5   : > { %s6457_s25 = smov 128   ;;  %s6458_s14 = smov 8  }
 0xaf6   : > { %5492 = dma.vmem_to_hbm [thread:$0]  (%p6688_p10), %s9294_s18, 4096, %s9292_s12, %s4783_s30, %s6457_s25, %s6457_s25, %s6458_s14  }
 0xaf7 PF: > { %s9561_s29 = sld [smem:[#allocation16_spill]]  ;;  %s9562_s16 = sld [smem:[#allocation17_spill]] }
 0xaf8   : > { %p9564_p1 = scmp.ge.s32.totalorder %s6442_s28, 2 }
 0xafd   : > { %s4811_s22 = sand.u32 1, %s9561_s29   ;;  %p9563_p12 = scmp.ne.s32.totalorder %s9562_s16, 0 }
 0xafe   : > { %s4812_s21 = scalar_lea.sflag [#allocation4], %s4811_s22 }
 0xaff   : > { %p5512_p2 = pnand %p9564_p1, %p9563_p12 }
 0xb01   : > { %6425 = dma.done.wait (!%p5512_p2), %s4812_s21, 4096  }
 0xb02   : > { %6427 = vsyncadd (!%p5512_p2), %s4812_s21, 4294963200  ;;  %p28_p13 = scmp.ge.s32.totalorder %s6678_s15, 4   ;;  %s9565_s25 = smov %s6434_s26 }
 0xb03   : > { %s9566_s26 = smov %s6438_s27  ;;  %s9567_s27 = smov %s6694_s24 }
 0xb04   : > { %s9568_s28 = smov %s6678_s15  ;;  %30 = sbr.rel (!%p28_p13) target bundleno = 13 (0xd), region = 133 }
 0xb0b   :  { %4817 = vsyncpa [#allocation3], 1 }
 0xb0c   :  { %4819 = vsyncpa [#allocation3 + $0x1], 1 }
 0xb0d   :  { %4820 = vsyncpa [#allocation6], 1 }
 0xb0e   :  { %4821 = vsyncpa [#allocation9], 1 }
 0xb0f   :  { %4822 = vsyncpa [#allocation4], 1 }
 0xb10   :  { %4824 = vsyncpa [#allocation4 + $0x1], 1 }

</bundles_post_ra>
